<compile_context>
chip_gen: v7x
topology: tpu7x:2x2x1
jax: 0.10.0
libtpu: 0.0.40
codegen_flags: <defaults>
</compile_context>

<pallas_src>
import functools

import jax
import jax.numpy as jnp
from jax.experimental import pallas as pl
from jax.experimental.pallas import tpu as pltpu


def _round_up(v, m):
    return (v + m - 1) // m * m


def _cdiv(a, b):
    return (a + b - 1) // b


def _vmem_capacity_bytes():
    try:
        return int(pltpu.get_tpu_info().vmem_capacity_bytes)
    except Exception:
        return 64 * 1024 * 1024          # conservative (v7x per-TC) fallback


def _pick_row_tile(total, cap):
    """Row-tile (multiple of 8, <= cap) and padded total; prefers exact divisors."""
    total8 = _round_up(max(total, 1), 8)
    cap = max(8, (cap // 8) * 8)
    if cap >= total8:
        return total8, total8
    for t in range(cap, max(8, cap // 2) - 1, -8):   # clean divisor -> no padding
        if total8 % t == 0:
            return t, total8
    n = _cdiv(total8, cap)
    t = _round_up(_cdiv(total8, n), 8)
    return t, t * n


# ---------------------------------------------------------------------------
# Stage 1: ZW[m, i*Jp + j] = sum_k z[m,k] * W[i,k,j]   (column-tiled MXU matmul)
# ---------------------------------------------------------------------------
def _zw_kernel(z_ref, w_ref, o_ref):
    # z_ref: [tm, Kp] bf16   w_ref: [Kp, tn] bf16 (resident per column tile)
    # o_ref: [tm, tn] bf16   (f32 MXU accumulation, bf16 writeback)
    o_ref[...] = jnp.dot(z_ref[...], w_ref[...],
                         preferred_element_type=jnp.float32).astype(o_ref.dtype)


# ---------------------------------------------------------------------------
# Stage 2: out[b, z, x, y] = sum_{i,j} x[b,x,i] ZW[b,z,i,j] y[b,y,j]
#        = (X @ ZW[b,z]) @ Y^T    (two bf16 MXU matmuls, f32 accumulation)
# ---------------------------------------------------------------------------
def _score_kernel(x_ref, yT_ref, zw_ref, o_ref, *, tz):
    # x_ref : [1, tx, Ip]   bf16
    # yT_ref: [1, Jp, Syp]  bf16  (pre-transposed y -> no in-loop transpose)
    # zw_ref: [tz, Ip, Jp]  bf16
    # o_ref : [1, tz, tx, Syp] f32 (Syp % 128 == 0 -> lane-dense stores)
    xb = x_ref[0]
    ybT = yT_ref[0]
    for t in range(tz):                      # static, fully unrolled
        xw = jnp.dot(xb, zw_ref[t], preferred_element_type=jnp.float32)
        o_ref[0, t] = jnp.dot(xw.astype(jnp.bfloat16), ybT,
                              preferred_element_type=jnp.float32)


def triaffine_pallas(x, y, z, weight, *, bias_x=False, bias_y=False):
    B, S, n_in = x.shape
    I = n_in + int(bias_x)
    J = n_in + int(bias_y)
    K = n_in
    assert weight.shape == (I, K, J)

    # Feature axes padded to 128 (lane-clean); output lane axis padded to 128.
    Ip, Jp, Kp = _round_up(I, 128), _round_up(J, 128), _round_up(K, 128)
    Sy_p = _round_up(S, 128)

    cap = _vmem_capacity_bytes()
    budget = int(cap * 0.65)                 # tile-sizing budget (pipeline headroom)

    # ----- stage-2 tiles: z tile (tz) and x-row tile (tx) ---------------------
    tz = 8
    while tz > 1 and 4 * tz * Ip * Jp + 4 * Jp * Sy_p > budget // 2:
        tz //= 2                             # only for very large n_in
    Sz_p = _round_up(S, tz)
    n_z = Sz_p // tz
    fixed2 = 4 * tz * Ip * Jp + 4 * Jp * Sy_p        # bf16 ZW + yT, double-buffered
    per_tx = 8 * tz * Sy_p + 4 * Ip + 4 * Jp         # f32 out (x2) + bf16 x (x2) + xw
    tx_cap = max(8, (budget - fixed2) // per_tx)
    tx, Sx_p = _pick_row_tile(S, tx_cap)
    n_x = Sx_p // tx
    foot2 = fixed2 + tx * per_tx

    # ----- stage-1 tiles: z-row tile (tm), W2d column tile (tn = k*Jp, k | Ip) --
    M = B * Sz_p
    tm = min(256, _round_up(M, 8))           # multiple of 8 (hence of tz)
    M_p = _round_up(M, tm)
    Ncols = Ip * Jp
    tn, foot1 = Jp, 0
    for k in [Ip, 128, 64, 32, 16, 8, 4, 2, 1]:
        if Ip % k:
            continue
        cand = k * Jp
        # bf16 z (x2) + bf16 W tile (x2) + bf16 out (x2) + f32 matmul result
        f = 4 * tm * Kp + 4 * Kp * cand + 4 * tm * cand + 4 * tm * cand
        if f <= budget or k == 1:
            tn, foot1 = cand, f
            break
    n_c = Ncols // tn

    limit1 = min(int(cap * 0.9), foot1 + (16 << 20))
    limit2 = min(int(cap * 0.9), foot2 + (16 << 20))

    # ----- operand staging (bf16 MXU inputs; zero padding is a mathematical no-op)
    # NOTE: for repeated calls with a fixed parameter, `w2d` is a pure function of
    # `weight` and should be precomputed/cached once outside this wrapper.
    bf = jnp.bfloat16
    x_p = jnp.pad(x.astype(bf), ((0, 0), (0, Sx_p - S), (0, Ip - n_in)))
    if bias_x:
        x_p = x_p.at[:, :S, n_in].set(1.0)
    y_p = jnp.pad(y.astype(bf), ((0, 0), (0, Sy_p - S), (0, Jp - n_in)))
    if bias_y:
        y_p = y_p.at[:, :S, n_in].set(1.0)
    yT_p = jnp.transpose(y_p, (0, 2, 1))                         # [B, Jp, Sy_p]

    z_p = jnp.pad(z.astype(bf), ((0, 0), (0, Sz_p - S), (0, Kp - K)))
    z2 = jnp.pad(z_p.reshape(B * Sz_p, Kp), ((0, M_p - M), (0, 0)))

    # W2d[k, i*Jp + j] = W[i, k, j]
    w2d = jnp.pad(jnp.transpose(weight.astype(bf), (1, 0, 2)),   # [K, I, J]
                  ((0, Kp - K), (0, Ip - I), (0, Jp - J))).reshape(Kp, Ncols)

    # ----- stage 1: column-tiled MXU matmul over all (b, z) rows --------------
    zw_flat = pl.pallas_call(
        _zw_kernel,
        out_shape=jax.ShapeDtypeStruct((M_p, Ncols), bf),
        grid_spec=pltpu.PrefetchScalarGridSpec(
            num_scalar_prefetch=0,
            grid=(n_c, M_p // tm),           # cols outer -> W tile resident over rows
            in_specs=[
                pl.BlockSpec((tm, Kp), lambda c, m: (m, 0)),     # z rows (stream)
                pl.BlockSpec((Kp, tn), lambda c, m: (0, c)),     # W2d column tile
            ],
            out_specs=pl.BlockSpec((tm, tn), lambda c, m: (m, c)),
        ),
        compiler_params=pltpu.CompilerParams(
            dimension_semantics=("parallel", "parallel"),
            vmem_limit_bytes=limit1),
    )(z2, w2d)
    zw3 = zw_flat.reshape(M_p, Ip, Jp)       # free trailing-dim split

    # ----- stage 2: per (b, z-tile, x-tile) two MXU matmuls -------------------
    out_p = pl.pallas_call(
        functools.partial(_score_kernel, tz=tz),
        out_shape=jax.ShapeDtypeStruct((B, Sz_p, Sx_p, Sy_p), jnp.float32),
        grid_spec=pltpu.PrefetchScalarGridSpec(
            num_scalar_prefetch=0,
            grid=(B, n_z, n_x),
            in_specs=[
                pl.BlockSpec((1, tx, Ip), lambda b, zt, xt: (b, xt, 0)),   # x rows
                pl.BlockSpec((1, Jp, Sy_p), lambda b, zt, xt: (b, 0, 0)),  # y^T
                pl.BlockSpec((tz, Ip, Jp),
                             lambda b, zt, xt: (b * n_z + zt, 0, 0)),      # ZW tile
            ],
            out_specs=pl.BlockSpec((1, tz, tx, Sy_p),
                                   lambda b, zt, xt: (b, zt, xt, 0)),
        ),
        compiler_params=pltpu.CompilerParams(
            dimension_semantics=("parallel", "parallel", "parallel"),
            vmem_limit_bytes=limit2),
    )(x_p, yT_p, zw3)

    if (Sz_p, Sx_p, Sy_p) != (S, S, S):
        out_p = out_p[:, :S, :S, :S]
    return out_p


def triaffine_ref(x, y, z, weight, *, bias_x=False, bias_y=False):
    """Plain-JAX f32 reference mirroring the PyTorch forward."""
    if bias_x:
        x = jnp.concatenate([x, jnp.ones_like(x[..., :1])], axis=-1)
    if bias_y:
        y = jnp.concatenate([y, jnp.ones_like(y[..., :1])], axis=-1)
    w = jnp.einsum('bzk,ikj->bzij', z, weight)
    return jnp.einsum('bxi,bzij,byj->bzxy', x, w, y)


if __name__ == "__main__":
    B, S, n_in = 2, 8, 32
    bias_x, bias_y = True, True

    key = jax.random.PRNGKey(0)
    kx, ky, kz, kw = jax.random.split(key, 4)
    x = jax.random.normal(kx, (B, S, n_in), jnp.float32)
    y = jax.random.normal(ky, (B, S, n_in), jnp.float32)
    z = jax.random.normal(kz, (B, S, n_in), jnp.float32)
    # The module's reset_parameters() zeros the weight (trivial output); use a
    # deterministic random weight of the same shape for a meaningful check.
    weight = 0.1 * jax.random.normal(
        kw, (n_in + int(bias_x), n_in, n_in + int(bias_y)), jnp.float32)

    out = triaffine_pallas(x, y, z, weight, bias_x=bias_x, bias_y=bias_y)
    out = jax.block_until_ready(out)
    assert out.shape == (B, S, S, S)

    ref = triaffine_ref(x, y, z, weight, bias_x=bias_x, bias_y=bias_y)
    scale = float(jnp.max(jnp.abs(ref)))
    err = float(jnp.max(jnp.abs(out - ref)))
    # bf16 MXU operands with f32 accumulation -> allow bf16-level relative error
    # vs. the pure-f32 reference.
    assert err <= 3e-2 * scale + 1e-3, (err, scale)
    print("KERNEL_OK")
</pallas_src>

<mosaic_0001>
module attributes {stable_mosaic.version = 11 : i64} {
  func.func @_zw_kernel(%arg0: i32, %arg1: i32, %arg2: memref<16x128xbf16, #tpu.memory_space<vmem>>, %arg3: memref<128x16384xbf16, #tpu.memory_space<vmem>>, %arg4: memref<16x16384xbf16, #tpu.memory_space<vmem>>) attributes {dimension_semantics = [#tpu.dimension_semantics<parallel>, #tpu.dimension_semantics<parallel>], iteration_bounds = array<i64: 1, 1>, scalar_prefetch = 0 : i64, scratch_operands = 0 : i64, tpu.core_type = #tpu.core_type<tc>, window_params = [{transform_indices = @transform_0, window_bounds = array<i64: 16, 128>}, {transform_indices = @transform_1, window_bounds = array<i64: 128, 16384>}, {transform_indices = @transform_2, window_bounds = array<i64: 16, 16384>}]} {
    %c0 = arith.constant 0 : index
    %c0_0 = arith.constant 0 : index
    %0 = vector.load %arg2[%c0, %c0_0] : memref<16x128xbf16, #tpu.memory_space<vmem>>, vector<16x128xbf16>
    %c0_1 = arith.constant 0 : index
    %c0_2 = arith.constant 0 : index
    %1 = vector.load %arg3[%c0_1, %c0_2] : memref<128x16384xbf16, #tpu.memory_space<vmem>>, vector<128x16384xbf16>
    %cst = arith.constant dense<0.000000e+00> : vector<16x16384xf32>
    %2 = tpu.matmul %0, %1, %cst {dimension_numbers = #tpu.dot_dimension_numbers<[1], [0], [0], [1], [0, 0, 1, 1], [], []>} : vector<16x128xbf16>, vector<128x16384xbf16>, vector<16x16384xf32> -> vector<16x16384xf32>
    %3 = arith.truncf %2 : vector<16x16384xf32> to vector<16x16384xbf16>
    %c0_3 = arith.constant 0 : index
    %c0_4 = arith.constant 0 : index
    %4 = vector.load %arg4[%c0_3, %c0_4] : memref<16x16384xbf16, #tpu.memory_space<vmem>>, vector<16x16384xbf16>
    tpu.vector_store %arg4[%c0_3, %c0_4], %3 {strides = array<i32>} : memref<16x16384xbf16, #tpu.memory_space<vmem>>, vector<16x16384xbf16>,
    return
  }
  func.func @transform_0(%arg0: i32, %arg1: i32) -> (i32, i32) {
    %c0_i32 = arith.constant 0 : i32
    %c0_i32_0 = arith.constant 0 : i32
    return %arg1, %c0_i32 : i32, i32
  }
  func.func @transform_1(%arg0: i32, %arg1: i32) -> (i32, i32) {
    %c0_i32 = arith.constant 0 : i32
    %c0_i32_0 = arith.constant 0 : i32
    return %c0_i32, %arg0 : i32, i32
  }
  func.func @transform_2(%arg0: i32, %arg1: i32) -> (i32, i32) {
    %c0_i32 = arith.constant 0 : i32
    return %arg1, %arg0 : i32, i32
  }
}

</mosaic_0001>

<bundles_post_ra>
// kernel: tpu_custom_call.1
= control target key start
LH: loop header
LB: loop body
LE: loop exit
PB: predicated region body
PF: predicated region fallthrough
CT: control target
= control target key end

     0   :  { %7 = vsyncpa [#allocation3], 0  ;;  %s11434_s0 = inlined_call_operand.hbm [shape: bf16[16,128], index: 0, kind: input, shape index: {}]   ;;  %s11435_s1 = inlined_call_operand.hbm [shape: bf16[128,16384], index: 1, kind: input, shape index: {}]   ;;  %s11436_s2 = inlined_call_operand.hbm [shape: bf16[16,16384], index: 2, kind: output, shape index: {}]  }
   0x1   :  { %8 = vsyncpa [#allocation6], 0 }
   0x2   :  { %9 = vsyncpa [#allocation4], 0  ;;  %s11227_s9 = smov [#allocation2]   ;;  %s11155_s13 = scalar_lea.hbm %s11434_s0, 128 }
   0x3   :  { %s15_s10 = sshll.u32 %s11227_s9, 4  ;;  %p11156_p0 = scmp.ne.s32.totalorder %s11434_s0, %s11155_s13  ;;  %s16_s10 = int_to_ptr.vmem [resolvable:$true] %s15_s10 }
   0x4   :  { %p11159_p1 = scmp.lt.u32.totalorder %s11155_s13, %s11434_s0 }
   0x6   :  { %p11161_p2 = pnand %p11159_p1, %p11156_p0 }
   0x8   :  { %11164 = shalt.err (!%p11161_p2)
}
   0x9   :  { %s11165_s18 = scalar_lea.vmem %s16_s10, 128  ;;  %p11170_p4 = scmp.lt.s32.totalorder %s16_s10, %s16_s10 }
   0xa   :  { %p11166_p3 = scmp.ne.s32.totalorder %s16_s10, %s11165_s18  ;;  %p11171_p5 = scmp.lt.s32.totalorder %s11165_s18, %s11165_s18 }
   0xc   :  { %p11172_p6 = por %p11171_p5, %p11170_p4 }
   0xe   :  { %p11173_p7 = pnand %p11172_p6, %p11166_p3 }
  0x10   :  { %11176 = shalt.err (!%p11173_p7)
}
  0x11   :  { %s11228_s19 = smov 64   ;;  %s11229_s20 = smov 4  }
  0x12   :  { %21 = dma.hbm_to_vmem [thread:$0]  %s11434_s0, 128, %s16_s10, [#allocation3], %s11228_s19, %s11228_s19, %s11229_s20  }
  0x13   :  { %s11230_s23 = smov [#allocation5]   ;;  %s11177_s27 = scalar_lea.hbm %s11435_s1, 131072 }
  0x14   :  { %s27_s24 = sshll.u32 %s11230_s23, 4  ;;  %p11178_p8 = scmp.ne.s32.totalorder %s11435_s1, %s11177_s27  ;;  %s28_s24 = int_to_ptr.vmem [resolvable:$true] %s27_s24 }
  0x15   :  { %p11181_p9 = scmp.lt.u32.totalorder %s11177_s27, %s11435_s1 }
  0x17   :  { %p11183_p10 = pnand %p11181_p9, %p11178_p8 }
  0x19   :  { %11186 = shalt.err (!%p11183_p10)
}
  0x1a   :  { %s11187_s4 = scalar_lea.vmem %s28_s24, 131072  ;;  %p11192_p12 = scmp.lt.s32.totalorder %s28_s24, %s28_s24 }
  0x1b   :  { %p11188_p11 = scmp.ne.s32.totalorder %s28_s24, %s11187_s4  ;;  %p11193_p13 = scmp.lt.s32.totalorder %s11187_s4, %s11187_s4 }
  0x1d   :  { %p11194_p0 = por %p11193_p13, %p11192_p12 }
  0x1f   :  { %p11195_p1 = pnand %p11194_p0, %p11188_p11 }
  0x21   :  { %11198 = shalt.err (!%p11195_p1)
}
  0x22   :  { %s11231_s0 = smov 8192   ;;  %s11232_s5 = smov 512  }
  0x23   :  { %33 = dma.hbm_to_vmem [thread:$0]  %s11435_s1, 131072, %s28_s24, [#allocation6], %s11231_s0, %s11231_s0, %s11232_s5  }
  0x24   :  { %11221 = dma.done.wait [#allocation3], 128  }
  0x25   :  { %11222 = vsyncadd [#allocation3], 4294967168 }
  0x26   :  { %11223 = dma.done.wait [#allocation6], 131072  }
  0x27   :  { %11224 = vsyncadd [#allocation6], 4294836224  ;;  %v11233_v0 = vmov 0   ;;  %v43_v1 = vld [vmem:[#allocation5] sm:$0xff]  ;;  %v44_v3 = vld [vmem:[#allocation5 + $0x8] sm:$0xff]  ;;  %s11234_s1 = smov [#allocation7]  }
  0x28   :  { %6225 = vmatprep.mubr.bf16.mxu0 %v11233_v0  ;;  %6268 = vmatprep.mubr.bf16.mxu1 %v11233_v0  ;;  %v107_v2 = vld [vmem:[#allocation5 + $0x200] sm:$0xff]  ;;  %v108_v5 = vld [vmem:[#allocation5 + $0x208] sm:$0xff]  ;;  %v45_v63 = vld [vmem:[#allocation5 + $0x10] sm:$0xff]  ;;  %s9846_s8 = sshll.u32 %s11234_s1, 4  ;;  %s9847_s8 = int_to_ptr.vmem [resolvable:$true] %s9846_s8 }
  0x29   :  { %v9861_v4 = vcombine.high %v43_v1, %v107_v2  ;;  %v9860_v6 = vcombine.low %v43_v1, %v107_v2  ;;  %v171_v7 = vld [vmem:[#allocation5 + $0x400] sm:$0xff]  ;;  %v9863_v9 = vcombine.high %v44_v3, %v108_v5  ;;  %v9862_v10 = vcombine.low %v44_v3, %v108_v5  ;;  %v172_v12 = vld [vmem:[#allocation5 + $0x408] sm:$0xff]  ;;  %v109_v1 = vld [vmem:[#allocation5 + $0x210] sm:$0xff]  ;;  %s11199_s9 = scalar_lea.vmem %s9847_s8, 16384  ;;  %p11204_p3 = scmp.lt.s32.totalorder %s9847_s8, %s9847_s8 }
  0x2a   :  { %v235_v8 = vld [vmem:[#allocation5 + $0x600] sm:$0xff]  ;;  %v236_v13 = vld [vmem:[#allocation5 + $0x608] sm:$0xff]  ;;  %v46_v2 = vld [vmem:[#allocation5 + $0x18] sm:$0xff]  ;;  %p11200_p2 = scmp.ne.s32.totalorder %s9847_s8, %s11199_s9  ;;  %p11205_p4 = scmp.lt.s32.totalorder %s11199_s9, %s11199_s9 }
  0x2b   :  { %v9989_v11 = vcombine.high %v171_v7, %v235_v8  ;;  %v299_v14 = vld [vmem:[#allocation5 + $0x800] sm:$0xff]  ;;  %6193 = vmatprep.subr.bf16.mxu0 %v9861_v4  ;;  %v9991_v15 = vcombine.high %v172_v12, %v236_v13  ;;  %v300_v17 = vld [vmem:[#allocation5 + $0x808] sm:$0xff]  ;;  %6236 = vmatprep.subr.bf16.mxu1 %v9863_v9  ;;  %v9988_v19 = vcombine.low %v171_v7, %v235_v8  ;;  %v110_v3 = vld [vmem:[#allocation5 + $0x218] sm:$0xff] }
  0x2c   :  { %v363_v16 = vld [vmem:[#allocation5 + $0xa00] sm:$0xff]  ;;  %v364_v18 = vld [vmem:[#allocation5 + $0xa08] sm:$0xff]  ;;  %6194 = vmatpush1.bf16.msra.mxu0 %v9860_v6  ;;  %6237 = vmatpush1.bf16.msra.mxu1 %v9862_v10  ;;  %v9990_v20 = vcombine.low %v172_v12, %v236_v13  ;;  %v9865_v6 = vcombine.high %v45_v63, %v109_v1  ;;  %v9867_v7 = vcombine.high %v46_v2, %v110_v3  ;;  %v173_v8 = vld [vmem:[#allocation5 + $0x410] sm:$0xff]  ;;  %p11206_p5 = por %p11205_p4, %p11204_p3 }
  0x2d   :  { %6195 = vmatprep.subr.bf16.mxu0 %v9989_v11  ;;  %v10117_v21 = vcombine.high %v299_v14, %v363_v16  ;;  %6238 = vmatprep.subr.bf16.mxu1 %v9991_v15  ;;  %v10119_v22 = vcombine.high %v300_v17, %v364_v18  ;;  %v427_v23 = vld [vmem:[#allocation5 + $0xc00] sm:$0xff]  ;;  %v428_v25 = vld [vmem:[#allocation5 + $0xc08] sm:$0xff]  ;;  %v10116_v27 = vcombine.low %v299_v14, %v363_v16  ;;  %v237_v9 = vld [vmem:[#allocation5 + $0x610] sm:$0xff] }
  0x2e   :  { %v491_v24 = vld [vmem:[#allocation5 + $0xe00] sm:$0xff]  ;;  %v492_v26 = vld [vmem:[#allocation5 + $0xe08] sm:$0xff]  ;;  %v10118_v28 = vcombine.low %v300_v17, %v364_v18  ;;  %v11279_v10 = vld [vmem:[#allocation2] sm:$0xff]   ;;  %v9864_v13 = vcombine.low %v45_v63, %v109_v1  ;;  %v9866_v14 = vcombine.low %v46_v2, %v110_v3  ;;  %v9993_v15 = vcombine.high %v173_v8, %v237_v9  ;;  %p11207_p6 = pnand %p11206_p5, %p11200_p2 }
  0x2f   :  { %v10245_v29 = vcombine.high %v427_v23, %v491_v24  ;;  %v10247_v30 = vcombine.high %v428_v25, %v492_v26  ;;  %v555_v31 = vld [vmem:[#allocation5 + $0x1000] sm:$0xff]  ;;  %v556_v33 = vld [vmem:[#allocation5 + $0x1008] sm:$0xff]  ;;  %v10244_v35 = vcombine.low %v427_v23, %v491_v24  ;;  %v10246_v36 = vcombine.low %v428_v25, %v492_v26  ;;  %v174_v11 = vld [vmem:[#allocation5 + $0x418] sm:$0xff] }
  0x30   :  { %6196 = vmatpush1.bf16.msra.mxu0 %v9988_v19  ;;  %6239 = vmatpush1.bf16.msra.mxu1 %v9990_v20  ;;  %v619_v32 = vld [vmem:[#allocation5 + $0x1200] sm:$0xff]  ;;  %v620_v34 = vld [vmem:[#allocation5 + $0x1208] sm:$0xff]  ;;  %v238_v12 = vld [vmem:[#allocation5 + $0x618] sm:$0xff] }
  0x31   :  { %6197 = vmatprep.subr.bf16.mxu0 %v10117_v21  ;;  %6240 = vmatprep.subr.bf16.mxu1 %v10119_v22  ;;  %v10373_v37 = vcombine.high %v555_v31, %v619_v32  ;;  %v10375_v38 = vcombine.high %v556_v33, %v620_v34  ;;  %v683_v39 = vld [vmem:[#allocation5 + $0x1400] sm:$0xff]  ;;  %v684_v41 = vld [vmem:[#allocation5 + $0x1408] sm:$0xff]  ;;  %v10372_v43 = vcombine.low %v555_v31, %v619_v32  ;;  %v301_v17 = vld [vmem:[#allocation5 + $0x810] sm:$0xff] }
  0x32   :  { %v747_v40 = vld [vmem:[#allocation5 + $0x1600] sm:$0xff]  ;;  %v748_v42 = vld [vmem:[#allocation5 + $0x1608] sm:$0xff]  ;;  %v10374_v44 = vcombine.low %v556_v33, %v620_v34  ;;  %v9995_v16 = vcombine.high %v174_v11, %v238_v12  ;;  %v365_v18 = vld [vmem:[#allocation5 + $0xa10] sm:$0xff]  ;;  %v9992_v21 = vcombine.low %v173_v8, %v237_v9  ;;  %v9994_v22 = vcombine.low %v174_v11, %v238_v12 }
  0x33   :  { %v10501_v45 = vcombine.high %v683_v39, %v747_v40  ;;  %v10503_v46 = vcombine.high %v684_v41, %v748_v42  ;;  %v811_v47 = vld [vmem:[#allocation5 + $0x1800] sm:$0xff]  ;;  %v812_v49 = vld [vmem:[#allocation5 + $0x1808] sm:$0xff]  ;;  %v10500_v51 = vcombine.low %v683_v39, %v747_v40  ;;  %v10502_v52 = vcombine.low %v684_v41, %v748_v42  ;;  %v302_v19 = vld [vmem:[#allocation5 + $0x818] sm:$0xff] }
  0x34   :  { %6198 = vmatpush1.bf16.msra.mxu0 %v10116_v27  ;;  %6241 = vmatpush1.bf16.msra.mxu1 %v10118_v28  ;;  %v875_v48 = vld [vmem:[#allocation5 + $0x1a00] sm:$0xff]  ;;  %v876_v50 = vld [vmem:[#allocation5 + $0x1a08] sm:$0xff]  ;;  %v366_v20 = vld [vmem:[#allocation5 + $0xa18] sm:$0xff]  ;;  %v10121_v23 = vcombine.high %v301_v17, %v365_v18 }
  0x35   :  { %6199 = vmatprep.subr.bf16.mxu0 %v10245_v29  ;;  %6242 = vmatprep.subr.bf16.mxu1 %v10247_v30  ;;  %v10629_v53 = vcombine.high %v811_v47, %v875_v48  ;;  %v10631_v54 = vcombine.high %v812_v49, %v876_v50  ;;  %v939_v55 = vld [vmem:[#allocation5 + $0x1c00] sm:$0xff]  ;;  %v940_v57 = vld [vmem:[#allocation5 + $0x1c08] sm:$0xff]  ;;  %v10628_v59 = vcombine.low %v811_v47, %v875_v48  ;;  %v429_v25 = vld [vmem:[#allocation5 + $0xc10] sm:$0xff] }
  0x36   :  { %v1003_v56 = vld [vmem:[#allocation5 + $0x1e00] sm:$0xff]  ;;  %v1004_v58 = vld [vmem:[#allocation5 + $0x1e08] sm:$0xff]  ;;  %v10630_v60 = vcombine.low %v812_v49, %v876_v50  ;;  %v10123_v24 = vcombine.high %v302_v19, %v366_v20  ;;  %v493_v26 = vld [vmem:[#allocation5 + $0xe10] sm:$0xff]  ;;  %v10120_v29 = vcombine.low %v301_v17, %v365_v18  ;;  %v10122_v30 = vcombine.low %v302_v19, %v366_v20 }
  0x37   :  { %v10757_v61 = vcombine.high %v939_v55, %v1003_v56  ;;  %v10759_v62 = vcombine.high %v940_v57, %v1004_v58  ;;  %v10756_v4 = vcombine.low %v939_v55, %v1003_v56  ;;  %v10758_v5 = vcombine.low %v940_v57, %v1004_v58  ;;  %v430_v27 = vld [vmem:[#allocation5 + $0xc18] sm:$0xff]  ;;  %v557_v33 = vld [vmem:[#allocation5 + $0x1010] sm:$0xff]  ;;  %v47_v2 = vld [vmem:[#allocation5 + $0x20] sm:$0xff] }
  0x38   :  { %6200 = vmatpush1.bf16.msra.mxu0 %v10244_v35  ;;  %6243 = vmatpush1.bf16.msra.mxu1 %v10246_v36  ;;  %v494_v28 = vld [vmem:[#allocation5 + $0xe18] sm:$0xff]  ;;  %v10249_v31 = vcombine.high %v429_v25, %v493_v26  ;;  %v621_v34 = vld [vmem:[#allocation5 + $0x1210] sm:$0xff]  ;;  %v111_v3 = vld [vmem:[#allocation5 + $0x220] sm:$0xff] }
  0x39   :  { %6201 = vmatprep.subr.bf16.mxu0 %v10373_v37  ;;  %6244 = vmatprep.subr.bf16.mxu1 %v10375_v38  ;;  %v10251_v32 = vcombine.high %v430_v27, %v494_v28  ;;  %v558_v35 = vld [vmem:[#allocation5 + $0x1018] sm:$0xff]  ;;  %v10248_v37 = vcombine.low %v429_v25, %v493_v26  ;;  %v10250_v38 = vcombine.low %v430_v27, %v494_v28  ;;  %v685_v41 = vld [vmem:[#allocation5 + $0x1410] sm:$0xff]  ;;  %v175_v11 = vld [vmem:[#allocation5 + $0x420] sm:$0xff] }
  0x3a   :  { %v622_v36 = vld [vmem:[#allocation5 + $0x1218] sm:$0xff]  ;;  %v10377_v39 = vcombine.high %v557_v33, %v621_v34  ;;  %v749_v42 = vld [vmem:[#allocation5 + $0x1610] sm:$0xff]  ;;  %v9869_v8 = vcombine.high %v47_v2, %v111_v3  ;;  %v239_v12 = vld [vmem:[#allocation5 + $0x620] sm:$0xff] }
  0x3b   :  { %v10379_v40 = vcombine.high %v558_v35, %v622_v36  ;;  %v10505_v47 = vcombine.high %v685_v41, %v749_v42  ;;  %v813_v49 = vld [vmem:[#allocation5 + $0x1810] sm:$0xff]  ;;  %v9997_v17 = vcombine.high %v175_v11, %v239_v12  ;;  %v303_v19 = vld [vmem:[#allocation5 + $0x820] sm:$0xff] }
  0x3c   :  { %6202 = vmatpush1.bf16.msra.mxu0 %v10372_v43  ;;  %6245 = vmatpush1.bf16.msra.mxu1 %v10374_v44  ;;  %v686_v43 = vld [vmem:[#allocation5 + $0x1418] sm:$0xff]  ;;  %v877_v50 = vld [vmem:[#allocation5 + $0x1a10] sm:$0xff]  ;;  %v367_v20 = vld [vmem:[#allocation5 + $0xa20] sm:$0xff] }
  0x3d   :  { %6203 = vmatprep.subr.bf16.mxu0 %v10501_v45  ;;  %6246 = vmatprep.subr.bf16.mxu1 %v10503_v46  ;;  %v750_v44 = vld [vmem:[#allocation5 + $0x1618] sm:$0xff]  ;;  %v10376_v45 = vcombine.low %v557_v33, %v621_v34  ;;  %v10378_v46 = vcombine.low %v558_v35, %v622_v36  ;;  %v10633_v55 = vcombine.high %v813_v49, %v877_v50  ;;  %v941_v57 = vld [vmem:[#allocation5 + $0x1c10] sm:$0xff]  ;;  %v431_v27 = vld [vmem:[#allocation5 + $0xc20] sm:$0xff] }
  0x3e   :  { %v10507_v48 = vcombine.high %v686_v43, %v750_v44  ;;  %v1005_v58 = vld [vmem:[#allocation5 + $0x1e10] sm:$0xff]  ;;  %v10125_v25 = vcombine.high %v303_v19, %v367_v20  ;;  %v495_v28 = vld [vmem:[#allocation5 + $0xe20] sm:$0xff] }
  0x3f   :  { %v10761_v63 = vcombine.high %v941_v57, %v1005_v58  ;;  %v10253_v33 = vcombine.high %v431_v27, %v495_v28  ;;  %v559_v35 = vld [vmem:[#allocation5 + $0x1020] sm:$0xff] }
  0x40   :  { %6204 = vmatpush1.bf16.msra.mxu0 %v10500_v51  ;;  %6247 = vmatpush1.bf16.msra.mxu1 %v10502_v52  ;;  %v814_v51 = vld [vmem:[#allocation5 + $0x1818] sm:$0xff]  ;;  %v623_v36 = vld [vmem:[#allocation5 + $0x1220] sm:$0xff] }
  0x41   :  { %6205 = vmatprep.subr.bf16.mxu0 %v10629_v53  ;;  %6248 = vmatprep.subr.bf16.mxu1 %v10631_v54  ;;  %v878_v52 = vld [vmem:[#allocation5 + $0x1a18] sm:$0xff]  ;;  %v10504_v53 = vcombine.low %v685_v41, %v749_v42  ;;  %v10506_v54 = vcombine.low %v686_v43, %v750_v44  ;;  %v10381_v41 = vcombine.high %v559_v35, %v623_v36  ;;  %v687_v43 = vld [vmem:[#allocation5 + $0x1420] sm:$0xff] }
  0x42   :  { %v10635_v56 = vcombine.high %v814_v51, %v878_v52  ;;  %v751_v44 = vld [vmem:[#allocation5 + $0x1620] sm:$0xff] }
  0x44   :  { %6206 = vmatpush1.bf16.msra.mxu0 %v10628_v59  ;;  %6249 = vmatpush1.bf16.msra.mxu1 %v10630_v60  ;;  %v942_v59 = vld [vmem:[#allocation5 + $0x1c18] sm:$0xff] }
  0x45   :  { %6207 = vmatprep.subr.bf16.mxu0 %v10757_v61  ;;  %6250 = vmatprep.subr.bf16.mxu1 %v10759_v62  ;;  %v1006_v60 = vld [vmem:[#allocation5 + $0x1e18] sm:$0xff]  ;;  %v10632_v61 = vcombine.low %v813_v49, %v877_v50  ;;  %v10634_v62 = vcombine.low %v814_v51, %v878_v52  ;;  %v10509_v49 = vcombine.high %v687_v43, %v751_v44  ;;  %v815_v51 = vld [vmem:[#allocation5 + $0x1820] sm:$0xff] }
  0x46   :  { %v10763_v1 = vcombine.high %v942_v59, %v1006_v60  ;;  %v879_v52 = vld [vmem:[#allocation5 + $0x1a20] sm:$0xff] }
  0x48   :  { %6208 = vmatpush1.bf16.msra.mxu0 %v10756_v4  ;;  %6251 = vmatpush1.bf16.msra.mxu1 %v10758_v5  ;;  %v48_v4 = vld [vmem:[#allocation5 + $0x28] sm:$0xff] }
  0x49   :  { %6279 = vmatprep.subr.bf16.mxu0 %v9865_v6  ;;  %6322 = vmatprep.subr.bf16.mxu1 %v9867_v7  ;;  %v112_v5 = vld [vmem:[#allocation5 + $0x228] sm:$0xff]  ;;  %v10760_v6 = vcombine.low %v941_v57, %v1005_v58  ;;  %v10762_v7 = vcombine.low %v942_v59, %v1006_v60  ;;  %v10637_v57 = vcombine.high %v815_v51, %v879_v52  ;;  %v943_v59 = vld [vmem:[#allocation5 + $0x1c20] sm:$0xff] }
  0x4a   :  { %v9871_v9 = vcombine.high %v48_v4, %v112_v5  ;;  %v1007_v60 = vld [vmem:[#allocation5 + $0x1e20] sm:$0xff] }
  0x4b   :  { %6226 = vmatmul.mubr.bf16.vlgmr.msra.gmra.mrb[0].mxu0 %v11279_v10  ;;  %6269 = vmatmul.mubr.bf16.vlgmr.msra.gmra.mrb[0].mxu1 %v11279_v10 }
  0x4c   :  { %6280 = vmatpush1.bf16.msra.mxu0 %v9864_v13  ;;  %6323 = vmatpush1.bf16.msra.mxu1 %v9866_v14  ;;  %v176_v13 = vld [vmem:[#allocation5 + $0x428] sm:$0xff] }
  0x4d   :  { %6281 = vmatprep.subr.bf16.mxu0 %v9993_v15  ;;  %6324 = vmatprep.subr.bf16.mxu1 %v9995_v16  ;;  %v240_v14 = vld [vmem:[#allocation5 + $0x628] sm:$0xff]  ;;  %v9868_v15 = vcombine.low %v47_v2, %v111_v3  ;;  %v9870_v16 = vcombine.low %v48_v4, %v112_v5  ;;  %v10765_v2 = vcombine.high %v943_v59, %v1007_v60  ;;  %v49_v4 = vld [vmem:[#allocation5 + $0x30] sm:$0xff] }
  0x4e   :  { %6311 = vmatprep.mubr.bf16.mxu0 %v11233_v0  ;;  %6354 = vmatprep.mubr.bf16.mxu1 %v11233_v0  ;;  %v9999_v18 = vcombine.high %v176_v13, %v240_v14  ;;  %v113_v5 = vld [vmem:[#allocation5 + $0x230] sm:$0xff] }
  0x50   :  { %6282 = vmatpush1.bf16.msra.mxu0 %v9992_v21  ;;  %6325 = vmatpush1.bf16.msra.mxu1 %v9994_v22  ;;  %v304_v21 = vld [vmem:[#allocation5 + $0x828] sm:$0xff] }
  0x51   :  { %6283 = vmatprep.subr.bf16.mxu0 %v10121_v23  ;;  %6326 = vmatprep.subr.bf16.mxu1 %v10123_v24  ;;  %v368_v22 = vld [vmem:[#allocation5 + $0xa28] sm:$0xff]  ;;  %v9996_v23 = vcombine.low %v175_v11, %v239_v12  ;;  %v9998_v24 = vcombine.low %v176_v13, %v240_v14  ;;  %v9873_v11 = vcombine.high %v49_v4, %v113_v5  ;;  %v177_v13 = vld [vmem:[#allocation5 + $0x430] sm:$0xff] }
  0x52   :  { %v10127_v26 = vcombine.high %v304_v21, %v368_v22  ;;  %v241_v14 = vld [vmem:[#allocation5 + $0x630] sm:$0xff] }
  0x54   :  { %6284 = vmatpush1.bf16.msra.mxu0 %v10120_v29  ;;  %6327 = vmatpush1.bf16.msra.mxu1 %v10122_v30  ;;  %v432_v29 = vld [vmem:[#allocation5 + $0xc28] sm:$0xff] }
  0x55   :  { %6285 = vmatprep.subr.bf16.mxu0 %v10249_v31  ;;  %6328 = vmatprep.subr.bf16.mxu1 %v10251_v32  ;;  %v496_v30 = vld [vmem:[#allocation5 + $0xe28] sm:$0xff]  ;;  %v10124_v31 = vcombine.low %v303_v19, %v367_v20  ;;  %v10126_v32 = vcombine.low %v304_v21, %v368_v22  ;;  %v10001_v19 = vcombine.high %v177_v13, %v241_v14  ;;  %v305_v21 = vld [vmem:[#allocation5 + $0x830] sm:$0xff] }
  0x56   :  { %v10255_v34 = vcombine.high %v432_v29, %v496_v30  ;;  %v369_v22 = vld [vmem:[#allocation5 + $0xa30] sm:$0xff] }
  0x58   :  { %6286 = vmatpush1.bf16.msra.mxu0 %v10248_v37  ;;  %6329 = vmatpush1.bf16.msra.mxu1 %v10250_v38  ;;  %v560_v37 = vld [vmem:[#allocation5 + $0x1028] sm:$0xff] }
  0x59   :  { %6287 = vmatprep.subr.bf16.mxu0 %v10377_v39  ;;  %6330 = vmatprep.subr.bf16.mxu1 %v10379_v40  ;;  %v624_v38 = vld [vmem:[#allocation5 + $0x1228] sm:$0xff]  ;;  %v10252_v39 = vcombine.low %v431_v27, %v495_v28  ;;  %v10254_v40 = vcombine.low %v432_v29, %v496_v30  ;;  %v10129_v27 = vcombine.high %v305_v21, %v369_v22  ;;  %v433_v29 = vld [vmem:[#allocation5 + $0xc30] sm:$0xff] }
  0x5a   :  { %v10383_v42 = vcombine.high %v560_v37, %v624_v38  ;;  %v497_v30 = vld [vmem:[#allocation5 + $0xe30] sm:$0xff] }
  0x5c   :  { %6288 = vmatpush1.bf16.msra.mxu0 %v10376_v45  ;;  %6331 = vmatpush1.bf16.msra.mxu1 %v10378_v46  ;;  %v688_v45 = vld [vmem:[#allocation5 + $0x1428] sm:$0xff] }
  0x5d   :  { %6289 = vmatprep.subr.bf16.mxu0 %v10505_v47  ;;  %6332 = vmatprep.subr.bf16.mxu1 %v10507_v48  ;;  %v752_v46 = vld [vmem:[#allocation5 + $0x1628] sm:$0xff]  ;;  %v10380_v47 = vcombine.low %v559_v35, %v623_v36  ;;  %v10382_v48 = vcombine.low %v560_v37, %v624_v38  ;;  %v10257_v35 = vcombine.high %v433_v29, %v497_v30  ;;  %v561_v37 = vld [vmem:[#allocation5 + $0x1030] sm:$0xff] }
  0x5e   :  { %v10511_v50 = vcombine.high %v688_v45, %v752_v46  ;;  %v625_v38 = vld [vmem:[#allocation5 + $0x1230] sm:$0xff] }
  0x60   :  { %6290 = vmatpush1.bf16.msra.mxu0 %v10504_v53  ;;  %6333 = vmatpush1.bf16.msra.mxu1 %v10506_v54  ;;  %v816_v53 = vld [vmem:[#allocation5 + $0x1828] sm:$0xff] }
  0x61   :  { %6291 = vmatprep.subr.bf16.mxu0 %v10633_v55  ;;  %6334 = vmatprep.subr.bf16.mxu1 %v10635_v56  ;;  %v880_v54 = vld [vmem:[#allocation5 + $0x1a28] sm:$0xff]  ;;  %v10508_v55 = vcombine.low %v687_v43, %v751_v44  ;;  %v10510_v56 = vcombine.low %v688_v45, %v752_v46  ;;  %v10385_v43 = vcombine.high %v561_v37, %v625_v38  ;;  %v689_v45 = vld [vmem:[#allocation5 + $0x1430] sm:$0xff] }
  0x62   :  { %v10639_v58 = vcombine.high %v816_v53, %v880_v54  ;;  %v753_v46 = vld [vmem:[#allocation5 + $0x1630] sm:$0xff] }
  0x64   :  { %6292 = vmatpush1.bf16.msra.mxu0 %v10632_v61  ;;  %6335 = vmatpush1.bf16.msra.mxu1 %v10634_v62  ;;  %v944_v61 = vld [vmem:[#allocation5 + $0x1c28] sm:$0xff] }
  0x65   :  { %6293 = vmatprep.subr.bf16.mxu0 %v10761_v63  ;;  %6336 = vmatprep.subr.bf16.mxu1 %v10763_v1  ;;  %v1008_v62 = vld [vmem:[#allocation5 + $0x1e28] sm:$0xff]  ;;  %v10636_v63 = vcombine.low %v815_v51, %v879_v52  ;;  %v10638_v1 = vcombine.low %v816_v53, %v880_v54  ;;  %v10513_v51 = vcombine.high %v689_v45, %v753_v46  ;;  %v817_v53 = vld [vmem:[#allocation5 + $0x1830] sm:$0xff] }
  0x66   :  { %v10767_v3 = vcombine.high %v944_v61, %v1008_v62  ;;  %v881_v54 = vld [vmem:[#allocation5 + $0x1a30] sm:$0xff] }
  0x68   :  { %6294 = vmatpush1.bf16.msra.mxu0 %v10760_v6  ;;  %6337 = vmatpush1.bf16.msra.mxu1 %v10762_v7  ;;  %v50_v6 = vld [vmem:[#allocation5 + $0x38] sm:$0xff] }
  0x69   :  { %6365 = vmatprep.subr.bf16.mxu0 %v9869_v8  ;;  %6408 = vmatprep.subr.bf16.mxu1 %v9871_v9  ;;  %v114_v7 = vld [vmem:[#allocation5 + $0x238] sm:$0xff]  ;;  %v10764_v8 = vcombine.low %v943_v59, %v1007_v60  ;;  %v10766_v9 = vcombine.low %v944_v61, %v1008_v62  ;;  %v10641_v59 = vcombine.high %v817_v53, %v881_v54  ;;  %v945_v61 = vld [vmem:[#allocation5 + $0x1c30] sm:$0xff] }
  0x6a   :  { %v9875_v12 = vcombine.high %v50_v6, %v114_v7  ;;  %v1009_v62 = vld [vmem:[#allocation5 + $0x1e30] sm:$0xff] }
  0x6b   :  { %6312 = vmatmul.mubr.bf16.vlgmr.msra.gmra.mrb[4].mxu0 %v11279_v10  ;;  %6355 = vmatmul.mubr.bf16.vlgmr.msra.gmra.mrb[4].mxu1 %v11279_v10 }
  0x6c   :  { %6366 = vmatpush1.bf16.msra.mxu0 %v9868_v15  ;;  %6409 = vmatpush1.bf16.msra.mxu1 %v9870_v16  ;;  %v178_v15 = vld [vmem:[#allocation5 + $0x438] sm:$0xff] }
  0x6d   :  { %6367 = vmatprep.subr.bf16.mxu0 %v9997_v17  ;;  %6410 = vmatprep.subr.bf16.mxu1 %v9999_v18  ;;  %v242_v16 = vld [vmem:[#allocation5 + $0x638] sm:$0xff]  ;;  %v9872_v17 = vcombine.low %v49_v4, %v113_v5  ;;  %v9874_v18 = vcombine.low %v50_v6, %v114_v7  ;;  %v10769_v4 = vcombine.high %v945_v61, %v1009_v62  ;;  %v51_v6 = vld [vmem:[#allocation5 + $0x40] sm:$0xff] }
  0x6e   :  { %6397 = vmatprep.mubr.bf16.mxu0 %v11233_v0  ;;  %6440 = vmatprep.mubr.bf16.mxu1 %v11233_v0  ;;  %v10003_v20 = vcombine.high %v178_v15, %v242_v16  ;;  %v115_v7 = vld [vmem:[#allocation5 + $0x240] sm:$0xff] }
  0x70   :  { %6368 = vmatpush1.bf16.msra.mxu0 %v9996_v23  ;;  %6411 = vmatpush1.bf16.msra.mxu1 %v9998_v24  ;;  %v306_v23 = vld [vmem:[#allocation5 + $0x838] sm:$0xff] }
  0x71   :  { %6369 = vmatprep.subr.bf16.mxu0 %v10125_v25  ;;  %6412 = vmatprep.subr.bf16.mxu1 %v10127_v26  ;;  %v370_v24 = vld [vmem:[#allocation5 + $0xa38] sm:$0xff]  ;;  %v10000_v25 = vcombine.low %v177_v13, %v241_v14  ;;  %v10002_v26 = vcombine.low %v178_v15, %v242_v16  ;;  %v9877_v13 = vcombine.high %v51_v6, %v115_v7  ;;  %v179_v15 = vld [vmem:[#allocation5 + $0x440] sm:$0xff] }
  0x72   :  { %v10131_v28 = vcombine.high %v306_v23, %v370_v24  ;;  %v243_v16 = vld [vmem:[#allocation5 + $0x640] sm:$0xff] }
  0x74   :  { %6370 = vmatpush1.bf16.msra.mxu0 %v10124_v31  ;;  %6413 = vmatpush1.bf16.msra.mxu1 %v10126_v32  ;;  %v434_v31 = vld [vmem:[#allocation5 + $0xc38] sm:$0xff] }
  0x75   :  { %6371 = vmatprep.subr.bf16.mxu0 %v10253_v33  ;;  %6414 = vmatprep.subr.bf16.mxu1 %v10255_v34  ;;  %v498_v32 = vld [vmem:[#allocation5 + $0xe38] sm:$0xff]  ;;  %v10128_v33 = vcombine.low %v305_v21, %v369_v22  ;;  %v10130_v34 = vcombine.low %v306_v23, %v370_v24  ;;  %v10005_v21 = vcombine.high %v179_v15, %v243_v16  ;;  %v307_v23 = vld [vmem:[#allocation5 + $0x840] sm:$0xff] }
  0x76   :  { %v10259_v36 = vcombine.high %v434_v31, %v498_v32  ;;  %v371_v24 = vld [vmem:[#allocation5 + $0xa40] sm:$0xff] }
  0x78   :  { %6372 = vmatpush1.bf16.msra.mxu0 %v10252_v39  ;;  %6415 = vmatpush1.bf16.msra.mxu1 %v10254_v40  ;;  %v562_v39 = vld [vmem:[#allocation5 + $0x1038] sm:$0xff] }
  0x79   :  { %6373 = vmatprep.subr.bf16.mxu0 %v10381_v41  ;;  %6416 = vmatprep.subr.bf16.mxu1 %v10383_v42  ;;  %v626_v40 = vld [vmem:[#allocation5 + $0x1238] sm:$0xff]  ;;  %v10256_v41 = vcombine.low %v433_v29, %v497_v30  ;;  %v10258_v42 = vcombine.low %v434_v31, %v498_v32  ;;  %v10133_v29 = vcombine.high %v307_v23, %v371_v24  ;;  %v435_v31 = vld [vmem:[#allocation5 + $0xc40] sm:$0xff] }
  0x7a   :  { %v10387_v44 = vcombine.high %v562_v39, %v626_v40  ;;  %v499_v32 = vld [vmem:[#allocation5 + $0xe40] sm:$0xff] }
  0x7c   :  { %6374 = vmatpush1.bf16.msra.mxu0 %v10380_v47  ;;  %6417 = vmatpush1.bf16.msra.mxu1 %v10382_v48  ;;  %v690_v47 = vld [vmem:[#allocation5 + $0x1438] sm:$0xff] }
  0x7d   :  { %6375 = vmatprep.subr.bf16.mxu0 %v10509_v49  ;;  %6418 = vmatprep.subr.bf16.mxu1 %v10511_v50  ;;  %v754_v48 = vld [vmem:[#allocation5 + $0x1638] sm:$0xff]  ;;  %v10384_v49 = vcombine.low %v561_v37, %v625_v38  ;;  %v10386_v50 = vcombine.low %v562_v39, %v626_v40  ;;  %v10261_v37 = vcombine.high %v435_v31, %v499_v32  ;;  %v563_v39 = vld [vmem:[#allocation5 + $0x1040] sm:$0xff] }
  0x7e   :  { %v10515_v52 = vcombine.high %v690_v47, %v754_v48  ;;  %v627_v40 = vld [vmem:[#allocation5 + $0x1240] sm:$0xff] }
  0x80   :  { %6376 = vmatpush1.bf16.msra.mxu0 %v10508_v55  ;;  %6419 = vmatpush1.bf16.msra.mxu1 %v10510_v56  ;;  %v818_v55 = vld [vmem:[#allocation5 + $0x1838] sm:$0xff] }
  0x81   :  { %6377 = vmatprep.subr.bf16.mxu0 %v10637_v57  ;;  %6420 = vmatprep.subr.bf16.mxu1 %v10639_v58  ;;  %v882_v56 = vld [vmem:[#allocation5 + $0x1a38] sm:$0xff]  ;;  %v10512_v57 = vcombine.low %v689_v45, %v753_v46  ;;  %v10514_v58 = vcombine.low %v690_v47, %v754_v48  ;;  %v10389_v45 = vcombine.high %v563_v39, %v627_v40  ;;  %v691_v47 = vld [vmem:[#allocation5 + $0x1440] sm:$0xff] }
  0x82   :  { %v10643_v60 = vcombine.high %v818_v55, %v882_v56  ;;  %v755_v48 = vld [vmem:[#allocation5 + $0x1640] sm:$0xff] }
  0x84   :  { %6378 = vmatpush1.bf16.msra.mxu0 %v10636_v63  ;;  %6421 = vmatpush1.bf16.msra.mxu1 %v10638_v1  ;;  %v946_v63 = vld [vmem:[#allocation5 + $0x1c38] sm:$0xff] }
  0x85   :  { %6379 = vmatprep.subr.bf16.mxu0 %v10765_v2  ;;  %6422 = vmatprep.subr.bf16.mxu1 %v10767_v3  ;;  %v1010_v1 = vld [vmem:[#allocation5 + $0x1e38] sm:$0xff]  ;;  %v10640_v2 = vcombine.low %v817_v53, %v881_v54  ;;  %v10642_v3 = vcombine.low %v818_v55, %v882_v56  ;;  %v10517_v53 = vcombine.high %v691_v47, %v755_v48  ;;  %v819_v55 = vld [vmem:[#allocation5 + $0x1840] sm:$0xff] }
  0x86   :  { %v10771_v5 = vcombine.high %v946_v63, %v1010_v1  ;;  %v883_v56 = vld [vmem:[#allocation5 + $0x1a40] sm:$0xff] }
  0x88   :  { %6380 = vmatpush1.bf16.msra.mxu0 %v10764_v8  ;;  %6423 = vmatpush1.bf16.msra.mxu1 %v10766_v9  ;;  %v52_v8 = vld [vmem:[#allocation5 + $0x48] sm:$0xff] }
  0x89   :  { %6451 = vmatprep.subr.bf16.mxu0 %v9873_v11  ;;  %6494 = vmatprep.subr.bf16.mxu1 %v9875_v12  ;;  %v116_v9 = vld [vmem:[#allocation5 + $0x248] sm:$0xff]  ;;  %v10768_v11 = vcombine.low %v945_v61, %v1009_v62  ;;  %v10770_v12 = vcombine.low %v946_v63, %v1010_v1  ;;  %v10645_v61 = vcombine.high %v819_v55, %v883_v56  ;;  %v947_v63 = vld [vmem:[#allocation5 + $0x1c40] sm:$0xff] }
  0x8a   :  { %v9879_v14 = vcombine.high %v52_v8, %v116_v9  ;;  %v1011_v1 = vld [vmem:[#allocation5 + $0x1e40] sm:$0xff] }
  0x8b   :  { %6398 = vmatmul.mubr.bf16.vlgmr.msra.gmra.mrb[8].mxu0 %v11279_v10  ;;  %6441 = vmatmul.mubr.bf16.vlgmr.msra.gmra.mrb[8].mxu1 %v11279_v10 }
  0x8c   :  { %6452 = vmatpush1.bf16.msra.mxu0 %v9872_v17  ;;  %6495 = vmatpush1.bf16.msra.mxu1 %v9874_v18  ;;  %v180_v17 = vld [vmem:[#allocation5 + $0x448] sm:$0xff] }
  0x8d   :  { %6453 = vmatprep.subr.bf16.mxu0 %v10001_v19  ;;  %6496 = vmatprep.subr.bf16.mxu1 %v10003_v20  ;;  %v244_v18 = vld [vmem:[#allocation5 + $0x648] sm:$0xff]  ;;  %v9876_v19 = vcombine.low %v51_v6, %v115_v7  ;;  %v9878_v20 = vcombine.low %v52_v8, %v116_v9  ;;  %v10773_v6 = vcombine.high %v947_v63, %v1011_v1  ;;  %v53_v8 = vld [vmem:[#allocation5 + $0x50] sm:$0xff] }
  0x8e   :  { %6483 = vmatprep.mubr.bf16.mxu0 %v11233_v0  ;;  %6526 = vmatprep.mubr.bf16.mxu1 %v11233_v0  ;;  %v10007_v22 = vcombine.high %v180_v17, %v244_v18  ;;  %v117_v9 = vld [vmem:[#allocation5 + $0x250] sm:$0xff] }
  0x90   :  { %6454 = vmatpush1.bf16.msra.mxu0 %v10000_v25  ;;  %6497 = vmatpush1.bf16.msra.mxu1 %v10002_v26  ;;  %v308_v25 = vld [vmem:[#allocation5 + $0x848] sm:$0xff] }
  0x91   :  { %6455 = vmatprep.subr.bf16.mxu0 %v10129_v27  ;;  %6498 = vmatprep.subr.bf16.mxu1 %v10131_v28  ;;  %v372_v26 = vld [vmem:[#allocation5 + $0xa48] sm:$0xff]  ;;  %v10004_v27 = vcombine.low %v179_v15, %v243_v16  ;;  %v10006_v28 = vcombine.low %v180_v17, %v244_v18  ;;  %v9881_v15 = vcombine.high %v53_v8, %v117_v9  ;;  %v181_v17 = vld [vmem:[#allocation5 + $0x450] sm:$0xff] }
  0x92   :  { %v10135_v30 = vcombine.high %v308_v25, %v372_v26  ;;  %v245_v18 = vld [vmem:[#allocation5 + $0x650] sm:$0xff] }
  0x94   :  { %6456 = vmatpush1.bf16.msra.mxu0 %v10128_v33  ;;  %6499 = vmatpush1.bf16.msra.mxu1 %v10130_v34  ;;  %v436_v33 = vld [vmem:[#allocation5 + $0xc48] sm:$0xff] }
  0x95   :  { %6457 = vmatprep.subr.bf16.mxu0 %v10257_v35  ;;  %6500 = vmatprep.subr.bf16.mxu1 %v10259_v36  ;;  %v500_v34 = vld [vmem:[#allocation5 + $0xe48] sm:$0xff]  ;;  %v10132_v35 = vcombine.low %v307_v23, %v371_v24  ;;  %v10134_v36 = vcombine.low %v308_v25, %v372_v26  ;;  %v10009_v23 = vcombine.high %v181_v17, %v245_v18  ;;  %v309_v25 = vld [vmem:[#allocation5 + $0x850] sm:$0xff] }
  0x96   :  { %v10263_v38 = vcombine.high %v436_v33, %v500_v34  ;;  %v373_v26 = vld [vmem:[#allocation5 + $0xa50] sm:$0xff] }
  0x98   :  { %6458 = vmatpush1.bf16.msra.mxu0 %v10256_v41  ;;  %6501 = vmatpush1.bf16.msra.mxu1 %v10258_v42  ;;  %v564_v41 = vld [vmem:[#allocation5 + $0x1048] sm:$0xff] }
  0x99   :  { %6459 = vmatprep.subr.bf16.mxu0 %v10385_v43  ;;  %6502 = vmatprep.subr.bf16.mxu1 %v10387_v44  ;;  %v628_v42 = vld [vmem:[#allocation5 + $0x1248] sm:$0xff]  ;;  %v10260_v43 = vcombine.low %v435_v31, %v499_v32  ;;  %v10262_v44 = vcombine.low %v436_v33, %v500_v34  ;;  %v10137_v31 = vcombine.high %v309_v25, %v373_v26  ;;  %v437_v33 = vld [vmem:[#allocation5 + $0xc50] sm:$0xff] }
  0x9a   :  { %v10391_v46 = vcombine.high %v564_v41, %v628_v42  ;;  %v501_v34 = vld [vmem:[#allocation5 + $0xe50] sm:$0xff] }
  0x9c   :  { %6460 = vmatpush1.bf16.msra.mxu0 %v10384_v49  ;;  %6503 = vmatpush1.bf16.msra.mxu1 %v10386_v50  ;;  %v692_v49 = vld [vmem:[#allocation5 + $0x1448] sm:$0xff] }
  0x9d   :  { %6461 = vmatprep.subr.bf16.mxu0 %v10513_v51  ;;  %6504 = vmatprep.subr.bf16.mxu1 %v10515_v52  ;;  %v756_v50 = vld [vmem:[#allocation5 + $0x1648] sm:$0xff]  ;;  %v10388_v51 = vcombine.low %v563_v39, %v627_v40  ;;  %v10390_v52 = vcombine.low %v564_v41, %v628_v42  ;;  %v565_v40 = vld [vmem:[#allocation5 + $0x1050] sm:$0xff]  ;;  %v566_v42 = vld [vmem:[#allocation5 + $0x1058] sm:$0xff] }
  0x9e   :  { %v10519_v54 = vcombine.high %v692_v49, %v756_v50  ;;  %v629_v41 = vld [vmem:[#allocation5 + $0x1250] sm:$0xff] }
  0xa0   :  { %6462 = vmatpush1.bf16.msra.mxu0 %v10512_v57  ;;  %6505 = vmatpush1.bf16.msra.mxu1 %v10514_v58  ;;  %v820_v57 = vld [vmem:[#allocation5 + $0x1848] sm:$0xff] }
  0xa1   :  { %6463 = vmatprep.subr.bf16.mxu0 %v10641_v59  ;;  %6506 = vmatprep.subr.bf16.mxu1 %v10643_v60  ;;  %v884_v58 = vld [vmem:[#allocation5 + $0x1a48] sm:$0xff]  ;;  %v10516_v59 = vcombine.low %v691_v47, %v755_v48  ;;  %v10518_v60 = vcombine.low %v692_v49, %v756_v50  ;;  %v693_v48 = vld [vmem:[#allocation5 + $0x1450] sm:$0xff]  ;;  %v694_v50 = vld [vmem:[#allocation5 + $0x1458] sm:$0xff] }
  0xa2   :  { %v10647_v62 = vcombine.high %v820_v57, %v884_v58  ;;  %v757_v49 = vld [vmem:[#allocation5 + $0x1650] sm:$0xff] }
  0xa4   :  { %6464 = vmatpush1.bf16.msra.mxu0 %v10640_v2  ;;  %6507 = vmatpush1.bf16.msra.mxu1 %v10642_v3  ;;  %v948_v2 = vld [vmem:[#allocation5 + $0x1c48] sm:$0xff] }
  0xa5   :  { %6465 = vmatprep.subr.bf16.mxu0 %v10769_v4  ;;  %6508 = vmatprep.subr.bf16.mxu1 %v10771_v5  ;;  %v1012_v3 = vld [vmem:[#allocation5 + $0x1e48] sm:$0xff]  ;;  %v10644_v4 = vcombine.low %v819_v55, %v883_v56  ;;  %v10646_v5 = vcombine.low %v820_v57, %v884_v58  ;;  %v821_v56 = vld [vmem:[#allocation5 + $0x1850] sm:$0xff]  ;;  %v822_v58 = vld [vmem:[#allocation5 + $0x1858] sm:$0xff] }
  0xa6   :  { %v10775_v7 = vcombine.high %v948_v2, %v1012_v3  ;;  %v885_v57 = vld [vmem:[#allocation5 + $0x1a50] sm:$0xff] }
  0xa8   :  { %6466 = vmatpush1.bf16.msra.mxu0 %v10768_v11  ;;  %6509 = vmatpush1.bf16.msra.mxu1 %v10770_v12  ;;  %v54_v11 = vld [vmem:[#allocation5 + $0x58] sm:$0xff] }
  0xa9   :  { %6537 = vmatprep.subr.bf16.mxu0 %v9877_v13  ;;  %6580 = vmatprep.subr.bf16.mxu1 %v9879_v14  ;;  %v118_v12 = vld [vmem:[#allocation5 + $0x258] sm:$0xff]  ;;  %v10772_v13 = vcombine.low %v947_v63, %v1011_v1  ;;  %v10774_v14 = vcombine.low %v948_v2, %v1012_v3  ;;  %v949_v1 = vld [vmem:[#allocation5 + $0x1c50] sm:$0xff] }
  0xaa   :  { %v9883_v16 = vcombine.high %v54_v11, %v118_v12  ;;  %v1013_v2 = vld [vmem:[#allocation5 + $0x1e50] sm:$0xff]  ;;  %v950_v3 = vld [vmem:[#allocation5 + $0x1c58] sm:$0xff] }
  0xab   :  { %6484 = vmatmul.mubr.bf16.vlgmr.msra.gmra.mrb[12].mxu0 %v11279_v10  ;;  %6527 = vmatmul.mubr.bf16.vlgmr.msra.gmra.mrb[12].mxu1 %v11279_v10 }
  0xac   :  { %6538 = vmatpush1.bf16.msra.mxu0 %v9876_v19  ;;  %6581 = vmatpush1.bf16.msra.mxu1 %v9878_v20  ;;  %v182_v19 = vld [vmem:[#allocation5 + $0x458] sm:$0xff] }
  0xad   :  { %6539 = vmatprep.subr.bf16.mxu0 %v10005_v21  ;;  %6582 = vmatprep.subr.bf16.mxu1 %v10007_v22  ;;  %v246_v20 = vld [vmem:[#allocation5 + $0x658] sm:$0xff]  ;;  %v9880_v21 = vcombine.low %v53_v8, %v117_v9  ;;  %v9882_v22 = vcombine.low %v54_v11, %v118_v12  ;;  %v55_v9 = vld [vmem:[#allocation5 + $0x60] sm:$0xff]  ;;  %v56_v12 = vld [vmem:[#allocation5 + $0x68] sm:$0xff] }
  0xae   :  { %6569 = vmatprep.mubr.bf16.mxu0 %v11233_v0  ;;  %6612 = vmatprep.mubr.bf16.mxu1 %v11233_v0  ;;  %v10011_v24 = vcombine.high %v182_v19, %v246_v20  ;;  %v119_v11 = vld [vmem:[#allocation5 + $0x260] sm:$0xff] }
  0xb0   :  { %6540 = vmatpush1.bf16.msra.mxu0 %v10004_v27  ;;  %6583 = vmatpush1.bf16.msra.mxu1 %v10006_v28  ;;  %v310_v27 = vld [vmem:[#allocation5 + $0x858] sm:$0xff] }
  0xb1   :  { %6541 = vmatprep.subr.bf16.mxu0 %v10133_v29  ;;  %6584 = vmatprep.subr.bf16.mxu1 %v10135_v30  ;;  %v374_v28 = vld [vmem:[#allocation5 + $0xa58] sm:$0xff]  ;;  %v10008_v29 = vcombine.low %v181_v17, %v245_v18  ;;  %v10010_v30 = vcombine.low %v182_v19, %v246_v20  ;;  %v183_v18 = vld [vmem:[#allocation5 + $0x460] sm:$0xff]  ;;  %v184_v20 = vld [vmem:[#allocation5 + $0x468] sm:$0xff] }
  0xb2   :  { %v10139_v32 = vcombine.high %v310_v27, %v374_v28  ;;  %v247_v19 = vld [vmem:[#allocation5 + $0x660] sm:$0xff] }
  0xb4   :  { %6542 = vmatpush1.bf16.msra.mxu0 %v10132_v35  ;;  %6585 = vmatpush1.bf16.msra.mxu1 %v10134_v36  ;;  %v438_v35 = vld [vmem:[#allocation5 + $0xc58] sm:$0xff] }
  0xb5   :  { %6543 = vmatprep.subr.bf16.mxu0 %v10261_v37  ;;  %6586 = vmatprep.subr.bf16.mxu1 %v10263_v38  ;;  %v502_v36 = vld [vmem:[#allocation5 + $0xe58] sm:$0xff]  ;;  %v10136_v37 = vcombine.low %v309_v25, %v373_v26  ;;  %v10265_v38 = vcombine.high %v437_v33, %v501_v34  ;;  %v311_v26 = vld [vmem:[#allocation5 + $0x860] sm:$0xff] }
  0xb6   :  { %v10267_v39 = vcombine.high %v438_v35, %v502_v36 }
  0xb8   :  { %6544 = vmatpush1.bf16.msra.mxu0 %v10260_v43  ;;  %6587 = vmatpush1.bf16.msra.mxu1 %v10262_v44  ;;  %v630_v43 = vld [vmem:[#allocation5 + $0x1258] sm:$0xff]  ;;  %v10264_v44 = vcombine.low %v437_v33, %v501_v34 }
  0xb9   :  { %6545 = vmatprep.subr.bf16.mxu0 %v10389_v45  ;;  %6588 = vmatprep.subr.bf16.mxu1 %v10391_v46  ;;  %v10266_v45 = vcombine.low %v438_v35, %v502_v36  ;;  %v10393_v46 = vcombine.high %v565_v40, %v629_v41  ;;  %v10395_v47 = vcombine.high %v566_v42, %v630_v43  ;;  %v439_v35 = vld [vmem:[#allocation5 + $0xc60] sm:$0xff] }
  0xba   :  { %v503_v36 = vld [vmem:[#allocation5 + $0xe60] sm:$0xff] }
  0xbc   :  { %6546 = vmatpush1.bf16.msra.mxu0 %v10388_v51  ;;  %6589 = vmatpush1.bf16.msra.mxu1 %v10390_v52  ;;  %v758_v51 = vld [vmem:[#allocation5 + $0x1658] sm:$0xff]  ;;  %v10392_v52 = vcombine.low %v565_v40, %v629_v41  ;;  %v10269_v40 = vcombine.high %v439_v35, %v503_v36 }
  0xbd   :  { %6547 = vmatprep.subr.bf16.mxu0 %v10517_v53  ;;  %6590 = vmatprep.subr.bf16.mxu1 %v10519_v54  ;;  %v10394_v53 = vcombine.low %v566_v42, %v630_v43  ;;  %v10521_v54 = vcombine.high %v693_v48, %v757_v49  ;;  %v10523_v55 = vcombine.high %v694_v50, %v758_v51  ;;  %v567_v42 = vld [vmem:[#allocation5 + $0x1060] sm:$0xff] }
  0xbe   :  { %v631_v43 = vld [vmem:[#allocation5 + $0x1260] sm:$0xff] }
  0xc0   :  { %6548 = vmatpush1.bf16.msra.mxu0 %v10516_v59  ;;  %6591 = vmatpush1.bf16.msra.mxu1 %v10518_v60  ;;  %v886_v59 = vld [vmem:[#allocation5 + $0x1a58] sm:$0xff]  ;;  %v10520_v60 = vcombine.low %v693_v48, %v757_v49  ;;  %v10397_v48 = vcombine.high %v567_v42, %v631_v43 }
  0xc1   :  { %6549 = vmatprep.subr.bf16.mxu0 %v10645_v61  ;;  %6592 = vmatprep.subr.bf16.mxu1 %v10647_v62  ;;  %v10522_v61 = vcombine.low %v694_v50, %v758_v51  ;;  %v10649_v62 = vcombine.high %v821_v56, %v885_v57  ;;  %v10651_v63 = vcombine.high %v822_v58, %v886_v59  ;;  %v695_v50 = vld [vmem:[#allocation5 + $0x1460] sm:$0xff] }
  0xc2   :  { %v759_v51 = vld [vmem:[#allocation5 + $0x1660] sm:$0xff] }
  0xc4   :  { %6550 = vmatpush1.bf16.msra.mxu0 %v10644_v4  ;;  %6593 = vmatpush1.bf16.msra.mxu1 %v10646_v5  ;;  %v1014_v4 = vld [vmem:[#allocation5 + $0x1e58] sm:$0xff]  ;;  %v10648_v5 = vcombine.low %v821_v56, %v885_v57  ;;  %v10525_v56 = vcombine.high %v695_v50, %v759_v51 }
  0xc5   :  { %6551 = vmatprep.subr.bf16.mxu0 %v10773_v6  ;;  %6594 = vmatprep.subr.bf16.mxu1 %v10775_v7  ;;  %v10650_v6 = vcombine.low %v822_v58, %v886_v59  ;;  %v10777_v7 = vcombine.high %v949_v1, %v1013_v2  ;;  %v10779_v8 = vcombine.high %v950_v3, %v1014_v4  ;;  %v823_v58 = vld [vmem:[#allocation5 + $0x1860] sm:$0xff] }
  0xc6   :  { %v887_v59 = vld [vmem:[#allocation5 + $0x1a60] sm:$0xff] }
  0xc8   :  { %6552 = vmatpush1.bf16.msra.mxu0 %v10772_v13  ;;  %6595 = vmatpush1.bf16.msra.mxu1 %v10774_v14  ;;  %v120_v13 = vld [vmem:[#allocation5 + $0x268] sm:$0xff]  ;;  %v10776_v14 = vcombine.low %v949_v1, %v1013_v2  ;;  %v10653_v1 = vcombine.high %v823_v58, %v887_v59 }
  0xc9   :  { %6623 = vmatprep.subr.bf16.mxu0 %v9881_v15  ;;  %6666 = vmatprep.subr.bf16.mxu1 %v9883_v16  ;;  %v10778_v15 = vcombine.low %v950_v3, %v1014_v4  ;;  %v9885_v16 = vcombine.high %v55_v9, %v119_v11  ;;  %v9887_v17 = vcombine.high %v56_v12, %v120_v13  ;;  %v951_v3 = vld [vmem:[#allocation5 + $0x1c60] sm:$0xff] }
  0xca   :  { %v1015_v4 = vld [vmem:[#allocation5 + $0x1e60] sm:$0xff] }
  0xcb   :  { %6570 = vmatmul.mubr.bf16.vlgmr.msra.gmra.mrb[16].mxu0 %v11279_v10  ;;  %6613 = vmatmul.mubr.bf16.vlgmr.msra.gmra.mrb[16].mxu1 %v11279_v10  ;;  %v10138_v10 = vcombine.low %v310_v27, %v374_v28  ;;  %v375_v27 = vld [vmem:[#allocation5 + $0xa60] sm:$0xff]  ;;  %v11301_v28 = vld [vmem:[#allocation2] sm:$0xff]  }
  0xcc   :  { %6624 = vmatpush1.bf16.msra.mxu0 %v9880_v21  ;;  %6667 = vmatpush1.bf16.msra.mxu1 %v9882_v22  ;;  %v248_v21 = vld [vmem:[#allocation5 + $0x668] sm:$0xff]  ;;  %v9884_v22 = vcombine.low %v55_v9, %v119_v11  ;;  %v10141_v33 = vcombine.high %v311_v26, %v375_v27  ;;  %v10781_v9 = vcombine.high %v951_v3, %v1015_v4 }
  0xcd   :  { %6625 = vmatprep.subr.bf16.mxu0 %v10009_v23  ;;  %6668 = vmatprep.subr.bf16.mxu1 %v10011_v24  ;;  %v9886_v23 = vcombine.low %v56_v12, %v120_v13  ;;  %v10013_v24 = vcombine.high %v183_v18, %v247_v19  ;;  %v10015_v25 = vcombine.high %v184_v20, %v248_v21  ;;  %v57_v12 = vld [vmem:[#allocation5 + $0x70] sm:$0xff] }
  0xce   :  { %6655 = vmatprep.mubr.bf16.mxu0 %v11233_v0  ;;  %6698 = vmatprep.mubr.bf16.mxu1 %v11233_v0  ;;  %v121_v13 = vld [vmem:[#allocation5 + $0x270] sm:$0xff] }
  0xd0   :  { %6626 = vmatpush1.bf16.msra.mxu0 %v10008_v29  ;;  %6669 = vmatpush1.bf16.msra.mxu1 %v10010_v30  ;;  %v312_v29 = vld [vmem:[#allocation5 + $0x868] sm:$0xff] }
  0xd1   :  { %6627 = vmatprep.subr.bf16.mxu0 %v10137_v31  ;;  %6670 = vmatprep.subr.bf16.mxu1 %v10139_v32  ;;  %v376_v30 = vld [vmem:[#allocation5 + $0xa68] sm:$0xff]  ;;  %v10012_v31 = vcombine.low %v183_v18, %v247_v19  ;;  %v10014_v32 = vcombine.low %v184_v20, %v248_v21  ;;  %v9889_v18 = vcombine.high %v57_v12, %v121_v13  ;;  %v185_v20 = vld [vmem:[#allocation5 + $0x470] sm:$0xff] }
  0xd2   :  { %v10143_v34 = vcombine.high %v312_v29, %v376_v30  ;;  %v249_v21 = vld [vmem:[#allocation5 + $0x670] sm:$0xff] }
  0xd4   :  { %6628 = vmatpush1.bf16.msra.mxu0 %v10136_v37  ;;  %6671 = vmatpush1.bf16.msra.mxu1 %v10138_v10  ;;  %v440_v37 = vld [vmem:[#allocation5 + $0xc68] sm:$0xff] }
  0xd5   :  { %6629 = vmatprep.subr.bf16.mxu0 %v10265_v38  ;;  %6672 = vmatprep.subr.bf16.mxu1 %v10267_v39  ;;  %v504_v10 = vld [vmem:[#allocation5 + $0xe68] sm:$0xff]  ;;  %v10140_v38 = vcombine.low %v311_v26, %v375_v27  ;;  %v10142_v39 = vcombine.low %v312_v29, %v376_v30  ;;  %v10017_v26 = vcombine.high %v185_v20, %v249_v21  ;;  %v313_v29 = vld [vmem:[#allocation5 + $0x870] sm:$0xff] }
  0xd6   :  { %v10271_v41 = vcombine.high %v440_v37, %v504_v10  ;;  %v377_v30 = vld [vmem:[#allocation5 + $0xa70] sm:$0xff] }
  0xd8   :  { %6630 = vmatpush1.bf16.msra.mxu0 %v10264_v44  ;;  %6673 = vmatpush1.bf16.msra.mxu1 %v10266_v45  ;;  %v568_v44 = vld [vmem:[#allocation5 + $0x1068] sm:$0xff] }
  0xd9   :  { %6631 = vmatprep.subr.bf16.mxu0 %v10393_v46  ;;  %6674 = vmatprep.subr.bf16.mxu1 %v10395_v47  ;;  %v632_v45 = vld [vmem:[#allocation5 + $0x1268] sm:$0xff]  ;;  %v10268_v46 = vcombine.low %v439_v35, %v503_v36  ;;  %v10270_v47 = vcombine.low %v440_v37, %v504_v10  ;;  %v10145_v35 = vcombine.high %v313_v29, %v377_v30  ;;  %v441_v37 = vld [vmem:[#allocation5 + $0xc70] sm:$0xff] }
  0xda   :  { %v10399_v49 = vcombine.high %v568_v44, %v632_v45  ;;  %v505_v10 = vld [vmem:[#allocation5 + $0xe70] sm:$0xff] }
  0xdc   :  { %6632 = vmatpush1.bf16.msra.mxu0 %v10392_v52  ;;  %6675 = vmatpush1.bf16.msra.mxu1 %v10394_v53  ;;  %v696_v52 = vld [vmem:[#allocation5 + $0x1468] sm:$0xff] }
  0xdd   :  { %6633 = vmatprep.subr.bf16.mxu0 %v10521_v54  ;;  %6676 = vmatprep.subr.bf16.mxu1 %v10523_v55  ;;  %v760_v53 = vld [vmem:[#allocation5 + $0x1668] sm:$0xff]  ;;  %v10396_v54 = vcombine.low %v567_v42, %v631_v43  ;;  %v10398_v55 = vcombine.low %v568_v44, %v632_v45  ;;  %v10273_v42 = vcombine.high %v441_v37, %v505_v10  ;;  %v569_v44 = vld [vmem:[#allocation5 + $0x1070] sm:$0xff] }
  0xde   :  { %v10527_v57 = vcombine.high %v696_v52, %v760_v53  ;;  %v633_v45 = vld [vmem:[#allocation5 + $0x1270] sm:$0xff] }
  0xe0   :  { %6634 = vmatpush1.bf16.msra.mxu0 %v10520_v60  ;;  %6677 = vmatpush1.bf16.msra.mxu1 %v10522_v61  ;;  %v824_v60 = vld [vmem:[#allocation5 + $0x1868] sm:$0xff] }
  0xe1   :  { %6635 = vmatprep.subr.bf16.mxu0 %v10649_v62  ;;  %6678 = vmatprep.subr.bf16.mxu1 %v10651_v63  ;;  %v888_v61 = vld [vmem:[#allocation5 + $0x1a68] sm:$0xff]  ;;  %v10524_v62 = vcombine.low %v695_v50, %v759_v51  ;;  %v10526_v63 = vcombine.low %v696_v52, %v760_v53  ;;  %v10401_v50 = vcombine.high %v569_v44, %v633_v45  ;;  %v697_v52 = vld [vmem:[#allocation5 + $0x1470] sm:$0xff] }
  0xe2   :  { %v10655_v2 = vcombine.high %v824_v60, %v888_v61  ;;  %v761_v53 = vld [vmem:[#allocation5 + $0x1670] sm:$0xff] }
  0xe4   :  { %6636 = vmatpush1.bf16.msra.mxu0 %v10648_v5  ;;  %6679 = vmatpush1.bf16.msra.mxu1 %v10650_v6  ;;  %v952_v5 = vld [vmem:[#allocation5 + $0x1c68] sm:$0xff] }
  0xe5   :  { %6637 = vmatprep.subr.bf16.mxu0 %v10777_v7  ;;  %6680 = vmatprep.subr.bf16.mxu1 %v10779_v8  ;;  %v1016_v6 = vld [vmem:[#allocation5 + $0x1e68] sm:$0xff]  ;;  %v10652_v7 = vcombine.low %v823_v58, %v887_v59  ;;  %v10654_v8 = vcombine.low %v824_v60, %v888_v61  ;;  %v10529_v58 = vcombine.high %v697_v52, %v761_v53  ;;  %v825_v60 = vld [vmem:[#allocation5 + $0x1870] sm:$0xff] }
  0xe6   :  { %v10783_v11 = vcombine.high %v952_v5, %v1016_v6  ;;  %v889_v61 = vld [vmem:[#allocation5 + $0x1a70] sm:$0xff] }
  0xe8   :  { %6638 = vmatpush1.bf16.msra.mxu0 %v10776_v14  ;;  %6681 = vmatpush1.bf16.msra.mxu1 %v10778_v15  ;;  %v58_v14 = vld [vmem:[#allocation5 + $0x78] sm:$0xff] }
  0xe9   :  { %6709 = vmatprep.subr.bf16.mxu0 %v9885_v16  ;;  %6752 = vmatprep.subr.bf16.mxu1 %v9887_v17  ;;  %v122_v15 = vld [vmem:[#allocation5 + $0x278] sm:$0xff]  ;;  %v10780_v16 = vcombine.low %v951_v3, %v1015_v4  ;;  %v10782_v17 = vcombine.low %v952_v5, %v1016_v6  ;;  %v10657_v3 = vcombine.high %v825_v60, %v889_v61  ;;  %v953_v6 = vld [vmem:[#allocation5 + $0x1c70] sm:$0xff] }
  0xea   :  { %v9891_v19 = vcombine.high %v58_v14, %v122_v15 }
  0xeb   :  { %6656 = vmatmul.mubr.bf16.vlgmr.msra.gmra.mrb[20].mxu0 %v11301_v28  ;;  %6699 = vmatmul.mubr.bf16.vlgmr.msra.gmra.mrb[20].mxu1 %v11301_v28 }
  0xec   :  { %6710 = vmatpush1.bf16.msra.mxu0 %v9884_v22  ;;  %6753 = vmatpush1.bf16.msra.mxu1 %v9886_v23  ;;  %v186_v22 = vld [vmem:[#allocation5 + $0x478] sm:$0xff] }
  0xed   :  { %6711 = vmatprep.subr.bf16.mxu0 %v10013_v24  ;;  %6754 = vmatprep.subr.bf16.mxu1 %v10015_v25  ;;  %v250_v23 = vld [vmem:[#allocation5 + $0x678] sm:$0xff]  ;;  %v9888_v24 = vcombine.low %v57_v12, %v121_v13  ;;  %v9890_v25 = vcombine.low %v58_v14, %v122_v15 }
  0xee   :  { %6741 = vmatprep.mubr.bf16.mxu0 %v11233_v0  ;;  %6784 = vmatprep.mubr.bf16.mxu1 %v11233_v0  ;;  %v10019_v27 = vcombine.high %v186_v22, %v250_v23  ;;  %v1018_v12 = vld [vmem:[#allocation5 + $0x1e78] sm:$0xff] }
  0xf0   :  { %6712 = vmatpush1.bf16.msra.mxu0 %v10012_v31  ;;  %6755 = vmatpush1.bf16.msra.mxu1 %v10014_v32  ;;  %v314_v31 = vld [vmem:[#allocation5 + $0x878] sm:$0xff] }
  0xf1   :  { %6713 = vmatprep.subr.bf16.mxu0 %v10141_v33  ;;  %6756 = vmatprep.subr.bf16.mxu1 %v10143_v34  ;;  %v378_v32 = vld [vmem:[#allocation5 + $0xa78] sm:$0xff]  ;;  %v10016_v33 = vcombine.low %v185_v20, %v249_v21  ;;  %v10018_v34 = vcombine.low %v186_v22, %v250_v23 }
  0xf2   :  { %v10147_v36 = vcombine.high %v314_v31, %v378_v32 }
  0xf4   :  { %6714 = vmatpush1.bf16.msra.mxu0 %v10140_v38  ;;  %6757 = vmatpush1.bf16.msra.mxu1 %v10142_v39  ;;  %v442_v38 = vld [vmem:[#allocation5 + $0xc78] sm:$0xff] }
  0xf5   :  { %6715 = vmatprep.subr.bf16.mxu0 %v10269_v40  ;;  %6758 = vmatprep.subr.bf16.mxu1 %v10271_v41  ;;  %v506_v39 = vld [vmem:[#allocation5 + $0xe78] sm:$0xff]  ;;  %v10144_v40 = vcombine.low %v313_v29, %v377_v30  ;;  %v10146_v41 = vcombine.low %v314_v31, %v378_v32  ;;  %v60_v29 = vld [vmem:[#allocation5 + $0x88] sm:$0xff] }
  0xf6   :  { %v10275_v43 = vcombine.high %v442_v38, %v506_v39  ;;  %v124_v30 = vld [vmem:[#allocation5 + $0x288] sm:$0xff] }
  0xf8   :  { %6716 = vmatpush1.bf16.msra.mxu0 %v10268_v46  ;;  %6759 = vmatpush1.bf16.msra.mxu1 %v10270_v47  ;;  %v570_v46 = vld [vmem:[#allocation5 + $0x1078] sm:$0xff] }
  0xf9   :  { %6717 = vmatprep.subr.bf16.mxu0 %v10397_v48  ;;  %6760 = vmatprep.subr.bf16.mxu1 %v10399_v49  ;;  %v634_v47 = vld [vmem:[#allocation5 + $0x1278] sm:$0xff]  ;;  %v10272_v48 = vcombine.low %v441_v37, %v505_v10  ;;  %v10274_v49 = vcombine.low %v442_v38, %v506_v39  ;;  %v188_v37 = vld [vmem:[#allocation5 + $0x488] sm:$0xff]  ;;  %v9894_v39 = vcombine.low %v60_v29, %v124_v30 }
  0xfa   :  { %v10403_v51 = vcombine.high %v570_v46, %v634_v47  ;;  %v252_v10 = vld [vmem:[#allocation5 + $0x688] sm:$0xff] }
  0xfc   :  { %6718 = vmatpush1.bf16.msra.mxu0 %v10396_v54  ;;  %6761 = vmatpush1.bf16.msra.mxu1 %v10398_v55  ;;  %v698_v54 = vld [vmem:[#allocation5 + $0x1478] sm:$0xff] }
  0xfd   :  { %6719 = vmatprep.subr.bf16.mxu0 %v10525_v56  ;;  %6762 = vmatprep.subr.bf16.mxu1 %v10527_v57  ;;  %v762_v55 = vld [vmem:[#allocation5 + $0x1678] sm:$0xff]  ;;  %v10400_v56 = vcombine.low %v569_v44, %v633_v45  ;;  %v10402_v57 = vcombine.low %v570_v46, %v634_v47  ;;  %v316_v44 = vld [vmem:[#allocation5 + $0x888] sm:$0xff]  ;;  %v10022_v47 = vcombine.low %v188_v37, %v252_v10 }
  0xfe   :  { %v10531_v59 = vcombine.high %v698_v54, %v762_v55  ;;  %v380_v45 = vld [vmem:[#allocation5 + $0xa88] sm:$0xff] }
 0x100   :  { %6720 = vmatpush1.bf16.msra.mxu0 %v10524_v62  ;;  %6763 = vmatpush1.bf16.msra.mxu1 %v10526_v63  ;;  %v826_v62 = vld [vmem:[#allocation5 + $0x1878] sm:$0xff] }
 0x101   :  { %6721 = vmatprep.subr.bf16.mxu0 %v10653_v1  ;;  %6764 = vmatprep.subr.bf16.mxu1 %v10655_v2  ;;  %v890_v63 = vld [vmem:[#allocation5 + $0x1a78] sm:$0xff]  ;;  %v10528_v1 = vcombine.low %v697_v52, %v761_v53  ;;  %v10530_v2 = vcombine.low %v698_v54, %v762_v55  ;;  %v444_v52 = vld [vmem:[#allocation5 + $0xc88] sm:$0xff]  ;;  %v10150_v55 = vcombine.low %v316_v44, %v380_v45 }
 0x102   :  { %v10659_v5 = vcombine.high %v826_v62, %v890_v63  ;;  %v10658_v20 = vcombine.low %v826_v62, %v890_v63  ;;  %v508_v53 = vld [vmem:[#allocation5 + $0xe88] sm:$0xff] }
 0x103   :  { %v10278_v63 = vcombine.low %v444_v52, %v508_v53 }
 0x104   :  { %6722 = vmatpush1.bf16.msra.mxu0 %v10652_v7  ;;  %6765 = vmatpush1.bf16.msra.mxu1 %v10654_v8  ;;  %v1017_v7 = vld [vmem:[#allocation5 + $0x1e70] sm:$0xff] }
 0x105   :  { %6723 = vmatprep.subr.bf16.mxu0 %v10781_v9  ;;  %6766 = vmatprep.subr.bf16.mxu1 %v10783_v11  ;;  %v954_v11 = vld [vmem:[#allocation5 + $0x1c78] sm:$0xff]  ;;  %v10785_v21 = vcombine.high %v953_v6, %v1017_v7  ;;  %v10784_v31 = vcombine.low %v953_v6, %v1017_v7  ;;  %v764_v6 = vld [vmem:[#allocation5 + $0x1688] sm:$0xff] }
 0x106   :  { %v10786_v32 = vcombine.low %v954_v11, %v1018_v12 }
 0x108   :  { %6724 = vmatpush1.bf16.msra.mxu0 %v10780_v16  ;;  %6767 = vmatpush1.bf16.msra.mxu1 %v10782_v17  ;;  %v10656_v16 = vcombine.low %v825_v60, %v889_v61  ;;  %v572_v60 = vld [vmem:[#allocation5 + $0x1088] sm:$0xff] }
 0x109   :  { %6795 = vmatprep.subr.bf16.mxu0 %v9889_v18  ;;  %6838 = vmatprep.subr.bf16.mxu1 %v9891_v19  ;;  %v636_v61 = vld [vmem:[#allocation5 + $0x1288] sm:$0xff] }
 0x10b   :  { %6742 = vmatmul.mubr.bf16.vlgmr.msra.gmra.mrb[24].mxu0 %v11301_v28  ;;  %6785 = vmatmul.mubr.bf16.vlgmr.msra.gmra.mrb[24].mxu1 %v11301_v28 }
 0x10c   :  { %6796 = vmatpush1.bf16.msra.mxu0 %v9888_v24  ;;  %6839 = vmatpush1.bf16.msra.mxu1 %v9890_v25  ;;  %v10787_v24 = vcombine.high %v954_v11, %v1018_v12  ;;  %v59_v25 = vld [vmem:[#allocation5 + $0x80] sm:$0xff] }
 0x10d   :  { %6797 = vmatprep.subr.bf16.mxu0 %v10017_v26  ;;  %6840 = vmatprep.subr.bf16.mxu1 %v10019_v27  ;;  %v123_v26 = vld [vmem:[#allocation5 + $0x280] sm:$0xff] }
 0x10e   :  { %6827 = vmatprep.mubr.bf16.mxu0 %v11233_v0  ;;  %6870 = vmatprep.mubr.bf16.mxu1 %v11233_v0  ;;  %v9892_v38 = vcombine.low %v59_v25, %v123_v26  ;;  %v827_v12 = vld [vmem:[#allocation5 + $0x1880] sm:$0xff] }
 0x110   :  { %6798 = vmatpush1.bf16.msra.mxu0 %v10016_v33  ;;  %6841 = vmatpush1.bf16.msra.mxu1 %v10018_v34  ;;  %v9893_v33 = vcombine.high %v59_v25, %v123_v26  ;;  %v9895_v34 = vcombine.high %v60_v29, %v124_v30  ;;  %v956_v25 = vld [vmem:[#allocation5 + $0x1c88] sm:$0xff] }
 0x111   :  { %6799 = vmatprep.subr.bf16.mxu0 %v10145_v35  ;;  %6842 = vmatprep.subr.bf16.mxu1 %v10147_v36  ;;  %v187_v35 = vld [vmem:[#allocation5 + $0x480] sm:$0xff]  ;;  %v1020_v26 = vld [vmem:[#allocation5 + $0x1e88] sm:$0xff] }
 0x112   :  { %v251_v36 = vld [vmem:[#allocation5 + $0x680] sm:$0xff] }
 0x113   :  { %v10020_v46 = vcombine.low %v187_v35, %v251_v36 }
 0x114   :  { %6800 = vmatpush1.bf16.msra.mxu0 %v10144_v40  ;;  %6843 = vmatpush1.bf16.msra.mxu1 %v10146_v41  ;;  %v10021_v40 = vcombine.high %v187_v35, %v251_v36  ;;  %v10023_v41 = vcombine.high %v188_v37, %v252_v10 }
 0x115   :  { %6801 = vmatprep.subr.bf16.mxu0 %v10273_v42  ;;  %6844 = vmatprep.subr.bf16.mxu1 %v10275_v43  ;;  %v315_v42 = vld [vmem:[#allocation5 + $0x880] sm:$0xff] }
 0x116   :  { %v379_v43 = vld [vmem:[#allocation5 + $0xa80] sm:$0xff] }
 0x117   :  { %v10148_v54 = vcombine.low %v315_v42, %v379_v43 }
 0x118   :  { %6802 = vmatpush1.bf16.msra.mxu0 %v10272_v48  ;;  %6845 = vmatpush1.bf16.msra.mxu1 %v10274_v49  ;;  %v10149_v48 = vcombine.high %v315_v42, %v379_v43  ;;  %v10151_v49 = vcombine.high %v316_v44, %v380_v45  ;;  %v62_v42 = vld [vmem:[#allocation5 + $0x98] sm:$0xff]  ;;  %v10790_v45 = vcombine.low %v956_v25, %v1020_v26 }
 0x119   :  { %6803 = vmatprep.subr.bf16.mxu0 %v10401_v50  ;;  %6846 = vmatprep.subr.bf16.mxu1 %v10403_v51  ;;  %v443_v50 = vld [vmem:[#allocation5 + $0xc80] sm:$0xff]  ;;  %v126_v43 = vld [vmem:[#allocation5 + $0x298] sm:$0xff] }
 0x11a   :  { %v507_v51 = vld [vmem:[#allocation5 + $0xe80] sm:$0xff] }
 0x11b   :  { %v10276_v62 = vcombine.low %v443_v50, %v507_v51 }
 0x11c   :  { %6804 = vmatpush1.bf16.msra.mxu0 %v10400_v56  ;;  %6847 = vmatpush1.bf16.msra.mxu1 %v10402_v57  ;;  %v10277_v56 = vcombine.high %v443_v50, %v507_v51  ;;  %v10279_v57 = vcombine.high %v444_v52, %v508_v53  ;;  %v190_v50 = vld [vmem:[#allocation5 + $0x498] sm:$0xff]  ;;  %v9898_v53 = vcombine.low %v62_v42, %v126_v43 }
 0x11d   :  { %6805 = vmatprep.subr.bf16.mxu0 %v10529_v58  ;;  %6848 = vmatprep.subr.bf16.mxu1 %v10531_v59  ;;  %v571_v58 = vld [vmem:[#allocation5 + $0x1080] sm:$0xff]  ;;  %v254_v51 = vld [vmem:[#allocation5 + $0x698] sm:$0xff] }
 0x11e   :  { %v6227_v4 = vpop.f32.mrb[0].mxu0  ;;  %v6270_v8 = vpop.f32.mrb[0].mxu1  ;;  %v635_v59 = vld [vmem:[#allocation5 + $0x1280] sm:$0xff] }
 0x11f   :  { %v6229_v9 = vpop.f32.mrb[1].mxu0  ;;  %v6272_v14 = vpop.f32.mrb[1].mxu1  ;;  %v10404_v7 = vcombine.low %v571_v58, %v635_v59 }
 0x120   :  { %v11012_v13 = vpack.c.bf16 %v6229_v9, %v6227_v4  ;;  %v6231_v15 = vpop.f32.mrb[2].mxu0  ;;  %6806 = vmatpush1.bf16.msra.mxu0 %v10528_v1  ;;  %v11013_v17 = vpack.c.bf16 %v6272_v14, %v6270_v8  ;;  %v6274_v18 = vpop.f32.mrb[2].mxu1  ;;  %6849 = vmatpush1.bf16.msra.mxu1 %v10530_v2  ;;  %v10405_v1 = vcombine.high %v571_v58, %v635_v59  ;;  %v763_v4 = vld [vmem:[#allocation5 + $0x1680] sm:$0xff]  ;;  %v828_v14 = vld [vmem:[#allocation5 + $0x1888] sm:$0xff]  ;;  %v318_v58 = vld [vmem:[#allocation5 + $0x898] sm:$0xff] }
 0x121   :  { %v6233_v19 = vpop.f32.mrb[3].mxu0  ;;  %6807 = vmatprep.subr.bf16.mxu0 %v10657_v3  ;;  %v6276_v23 = vpop.f32.mrb[3].mxu1  ;;  %6850 = vmatprep.subr.bf16.mxu1 %v10659_v5  ;;  %v10407_v2 = vcombine.high %v572_v60, %v636_v61  ;;  %v699_v3 = vld [vmem:[#allocation5 + $0x1480] sm:$0xff]  ;;  %v700_v5 = vld [vmem:[#allocation5 + $0x1488] sm:$0xff]  ;;  %v10406_v8 = vcombine.low %v572_v60, %v636_v61  ;;  %v382_v59 = vld [vmem:[#allocation5 + $0xa98] sm:$0xff]  ;;  %v10026_v61 = vcombine.low %v190_v50, %v254_v51 }
 0x122   :  { %9713 = vst [vmem:[#allocation7] sm:$0xff] %v11012_v13  ;;  %v11076_v22 = vpack.c.bf16 %v6233_v19, %v6231_v15  ;;  %9714 = vst [vmem:[#allocation7 + $0x8] sm:$0xff] %v11013_v17  ;;  %v11077_v27 = vpack.c.bf16 %v6276_v23, %v6274_v18  ;;  %v10533_v9 = vcombine.high %v699_v3, %v763_v4  ;;  %v891_v13 = vld [vmem:[#allocation5 + $0x1a80] sm:$0xff]  ;;  %v892_v15 = vld [vmem:[#allocation5 + $0x1a88] sm:$0xff] }
 0x123   :  { %v10535_v11 = vcombine.high %v700_v5, %v764_v6  ;;  %v10534_v17 = vcombine.low %v700_v5, %v764_v6  ;;  %v10661_v18 = vcombine.high %v827_v12, %v891_v13  ;;  %v10662_v35 = vcombine.low %v828_v14, %v892_v15 }
 0x124   :  { %9777 = vst [vmem:[#allocation7 + $0x200] sm:$0xff] %v11076_v22  ;;  %6808 = vmatpush1.bf16.msra.mxu0 %v10656_v16  ;;  %9778 = vst [vmem:[#allocation7 + $0x208] sm:$0xff] %v11077_v27  ;;  %6851 = vmatpush1.bf16.msra.mxu1 %v10658_v20  ;;  %v10532_v16 = vcombine.low %v699_v3, %v763_v4  ;;  %v10663_v20 = vcombine.high %v828_v14, %v892_v15  ;;  %v1019_v22 = vld [vmem:[#allocation5 + $0x1e80] sm:$0xff]  ;;  %v446_v3 = vld [vmem:[#allocation5 + $0xc98] sm:$0xff] }
 0x125   :  { %6809 = vmatprep.subr.bf16.mxu0 %v10785_v21  ;;  %6852 = vmatprep.subr.bf16.mxu1 %v10787_v24  ;;  %v955_v21 = vld [vmem:[#allocation5 + $0x1c80] sm:$0xff]  ;;  %v510_v4 = vld [vmem:[#allocation5 + $0xe98] sm:$0xff]  ;;  %v10154_v6 = vcombine.low %v318_v58, %v382_v59 }
 0x126   :  { %v10789_v36 = vcombine.high %v955_v21, %v1019_v22  ;;  %v10788_v44 = vcombine.low %v955_v21, %v1019_v22  ;;  %v10282_v15 = vcombine.low %v446_v3, %v510_v4  ;;  %v766_v21 = vld [vmem:[#allocation5 + $0x1698] sm:$0xff] }
 0x128   :  { %6810 = vmatpush1.bf16.msra.mxu0 %v10784_v31  ;;  %6853 = vmatpush1.bf16.msra.mxu1 %v10786_v32  ;;  %v10660_v31 = vcombine.low %v827_v12, %v891_v13  ;;  %v574_v12 = vld [vmem:[#allocation5 + $0x1098] sm:$0xff] }
 0x129   :  { %6881 = vmatprep.subr.bf16.mxu0 %v9893_v33  ;;  %6924 = vmatprep.subr.bf16.mxu1 %v9895_v34  ;;  %v638_v13 = vld [vmem:[#allocation5 + $0x1298] sm:$0xff] }
 0x12b   :  { %6828 = vmatmul.mubr.bf16.vlgmr.msra.gmra.mrb[28].mxu0 %v11301_v28  ;;  %6871 = vmatmul.mubr.bf16.vlgmr.msra.gmra.mrb[28].mxu1 %v11301_v28 }
 0x12c   :  { %6882 = vmatpush1.bf16.msra.mxu0 %v9892_v38  ;;  %6925 = vmatpush1.bf16.msra.mxu1 %v9894_v39  ;;  %v10791_v38 = vcombine.high %v956_v25, %v1020_v26  ;;  %v61_v39 = vld [vmem:[#allocation5 + $0x90] sm:$0xff] }
 0x12d   :  { %6883 = vmatprep.subr.bf16.mxu0 %v10021_v40  ;;  %6926 = vmatprep.subr.bf16.mxu1 %v10023_v41  ;;  %v125_v40 = vld [vmem:[#allocation5 + $0x290] sm:$0xff] }
 0x12e   :  { %6913 = vmatprep.mubr.bf16.mxu0 %v11233_v0  ;;  %6956 = vmatprep.mubr.bf16.mxu1 %v11233_v0  ;;  %v9896_v52 = vcombine.low %v61_v39, %v125_v40  ;;  %v829_v26 = vld [vmem:[#allocation5 + $0x1890] sm:$0xff] }
 0x130   :  { %6884 = vmatpush1.bf16.msra.mxu0 %v10020_v46  ;;  %6927 = vmatpush1.bf16.msra.mxu1 %v10022_v47  ;;  %v9897_v46 = vcombine.high %v61_v39, %v125_v40  ;;  %v9899_v47 = vcombine.high %v62_v42, %v126_v43  ;;  %v958_v39 = vld [vmem:[#allocation5 + $0x1c98] sm:$0xff] }
 0x131   :  { %6885 = vmatprep.subr.bf16.mxu0 %v10149_v48  ;;  %6928 = vmatprep.subr.bf16.mxu1 %v10151_v49  ;;  %v189_v48 = vld [vmem:[#allocation5 + $0x490] sm:$0xff]  ;;  %v1022_v40 = vld [vmem:[#allocation5 + $0x1e98] sm:$0xff] }
 0x132   :  { %v253_v49 = vld [vmem:[#allocation5 + $0x690] sm:$0xff] }
 0x133   :  { %v10024_v60 = vcombine.low %v189_v48, %v253_v49 }
 0x134   :  { %6886 = vmatpush1.bf16.msra.mxu0 %v10148_v54  ;;  %6929 = vmatpush1.bf16.msra.mxu1 %v10150_v55  ;;  %v10025_v54 = vcombine.high %v189_v48, %v253_v49  ;;  %v10027_v55 = vcombine.high %v190_v50, %v254_v51 }
 0x135   :  { %6887 = vmatprep.subr.bf16.mxu0 %v10277_v56  ;;  %6930 = vmatprep.subr.bf16.mxu1 %v10279_v57  ;;  %v317_v56 = vld [vmem:[#allocation5 + $0x890] sm:$0xff] }
 0x136   :  { %v381_v57 = vld [vmem:[#allocation5 + $0xa90] sm:$0xff] }
 0x137   :  { %v10152_v5 = vcombine.low %v317_v56, %v381_v57 }
 0x138   :  { %6888 = vmatpush1.bf16.msra.mxu0 %v10276_v62  ;;  %6931 = vmatpush1.bf16.msra.mxu1 %v10278_v63  ;;  %v10153_v62 = vcombine.high %v317_v56, %v381_v57  ;;  %v10155_v63 = vcombine.high %v318_v58, %v382_v59  ;;  %v64_v56 = vld [vmem:[#allocation5 + $0xa8] sm:$0xff]  ;;  %v10794_v59 = vcombine.low %v958_v39, %v1022_v40 }
 0x139   :  { %6889 = vmatprep.subr.bf16.mxu0 %v10405_v1  ;;  %6932 = vmatprep.subr.bf16.mxu1 %v10407_v2  ;;  %v445_v1 = vld [vmem:[#allocation5 + $0xc90] sm:$0xff]  ;;  %v128_v57 = vld [vmem:[#allocation5 + $0x2a8] sm:$0xff] }
 0x13a   :  { %v509_v2 = vld [vmem:[#allocation5 + $0xe90] sm:$0xff] }
 0x13b   :  { %v10280_v14 = vcombine.low %v445_v1, %v509_v2 }
 0x13c   :  { %6890 = vmatpush1.bf16.msra.mxu0 %v10404_v7  ;;  %6933 = vmatpush1.bf16.msra.mxu1 %v10406_v8  ;;  %v10281_v7 = vcombine.high %v445_v1, %v509_v2  ;;  %v10283_v8 = vcombine.high %v446_v3, %v510_v4  ;;  %v192_v1 = vld [vmem:[#allocation5 + $0x4a8] sm:$0xff]  ;;  %v9902_v4 = vcombine.low %v64_v56, %v128_v57 }
 0x13d   :  { %6891 = vmatprep.subr.bf16.mxu0 %v10533_v9  ;;  %6934 = vmatprep.subr.bf16.mxu1 %v10535_v11  ;;  %v573_v9 = vld [vmem:[#allocation5 + $0x1090] sm:$0xff]  ;;  %v256_v2 = vld [vmem:[#allocation5 + $0x6a8] sm:$0xff] }
 0x13e   :  { %v6313_v19 = vpop.f32.mrb[4].mxu0  ;;  %v6356_v23 = vpop.f32.mrb[4].mxu1  ;;  %v637_v11 = vld [vmem:[#allocation5 + $0x1290] sm:$0xff] }
 0x13f   :  { %v6315_v24 = vpop.f32.mrb[5].mxu0  ;;  %v6358_v29 = vpop.f32.mrb[5].mxu1  ;;  %v10408_v22 = vcombine.low %v573_v9, %v637_v11 }
 0x140   :  { %v11014_v27 = vpack.c.bf16 %v6315_v24, %v6313_v19  ;;  %v6317_v30 = vpop.f32.mrb[6].mxu0  ;;  %6892 = vmatpush1.bf16.msra.mxu0 %v10532_v16  ;;  %v11015_v32 = vpack.c.bf16 %v6358_v29, %v6356_v23  ;;  %v6360_v33 = vpop.f32.mrb[6].mxu1  ;;  %6935 = vmatpush1.bf16.msra.mxu1 %v10534_v17  ;;  %v10409_v16 = vcombine.high %v573_v9, %v637_v11  ;;  %v765_v19 = vld [vmem:[#allocation5 + $0x1690] sm:$0xff]  ;;  %v830_v29 = vld [vmem:[#allocation5 + $0x1898] sm:$0xff]  ;;  %v320_v9 = vld [vmem:[#allocation5 + $0x8a8] sm:$0xff] }
 0x141   :  { %v6319_v34 = vpop.f32.mrb[7].mxu0  ;;  %6893 = vmatprep.subr.bf16.mxu0 %v10661_v18  ;;  %v6362_v10 = vpop.f32.mrb[7].mxu1  ;;  %6936 = vmatprep.subr.bf16.mxu1 %v10663_v20  ;;  %v10411_v17 = vcombine.high %v574_v12, %v638_v13  ;;  %v701_v18 = vld [vmem:[#allocation5 + $0x1490] sm:$0xff]  ;;  %v702_v20 = vld [vmem:[#allocation5 + $0x1498] sm:$0xff]  ;;  %v10410_v23 = vcombine.low %v574_v12, %v638_v13  ;;  %v384_v11 = vld [vmem:[#allocation5 + $0xaa8] sm:$0xff]  ;;  %v10030_v13 = vcombine.low %v192_v1, %v256_v2 }
 0x142   :  { %9715 = vst [vmem:[#allocation7 + $0x10] sm:$0xff] %v11014_v27  ;;  %v11078_v37 = vpack.c.bf16 %v6319_v34, %v6317_v30  ;;  %9716 = vst [vmem:[#allocation7 + $0x18] sm:$0xff] %v11015_v32  ;;  %v11079_v41 = vpack.c.bf16 %v6362_v10, %v6360_v33  ;;  %v10537_v24 = vcombine.high %v701_v18, %v765_v19  ;;  %v893_v27 = vld [vmem:[#allocation5 + $0x1a90] sm:$0xff]  ;;  %v894_v30 = vld [vmem:[#allocation5 + $0x1a98] sm:$0xff] }
 0x143   :  { %v10539_v25 = vcombine.high %v702_v20, %v766_v21  ;;  %v10538_v32 = vcombine.low %v702_v20, %v766_v21  ;;  %v10665_v33 = vcombine.high %v829_v26, %v893_v27  ;;  %v10666_v48 = vcombine.low %v830_v29, %v894_v30 }
 0x144   :  { %9779 = vst [vmem:[#allocation7 + $0x210] sm:$0xff] %v11078_v37  ;;  %6894 = vmatpush1.bf16.msra.mxu0 %v10660_v31  ;;  %9780 = vst [vmem:[#allocation7 + $0x218] sm:$0xff] %v11079_v41  ;;  %6937 = vmatpush1.bf16.msra.mxu1 %v10662_v35  ;;  %v10536_v31 = vcombine.low %v701_v18, %v765_v19  ;;  %v10667_v35 = vcombine.high %v830_v29, %v894_v30  ;;  %v1021_v37 = vld [vmem:[#allocation5 + $0x1e90] sm:$0xff]  ;;  %v448_v18 = vld [vmem:[#allocation5 + $0xca8] sm:$0xff] }
 0x145   :  { %6895 = vmatprep.subr.bf16.mxu0 %v10789_v36  ;;  %6938 = vmatprep.subr.bf16.mxu1 %v10791_v38  ;;  %v957_v36 = vld [vmem:[#allocation5 + $0x1c90] sm:$0xff]  ;;  %v512_v19 = vld [vmem:[#allocation5 + $0xea8] sm:$0xff] }
 0x146   :  { %v10793_v49 = vcombine.high %v957_v36, %v1021_v37  ;;  %v10792_v58 = vcombine.low %v957_v36, %v1021_v37  ;;  %v10286_v29 = vcombine.low %v448_v18, %v512_v19 }
 0x148   :  { %6896 = vmatpush1.bf16.msra.mxu0 %v10788_v44  ;;  %6939 = vmatpush1.bf16.msra.mxu1 %v10790_v45  ;;  %v10664_v44 = vcombine.low %v829_v26, %v893_v27  ;;  %v640_v26 = vld [vmem:[#allocation5 + $0x12a8] sm:$0xff] }
 0x149   :  { %6967 = vmatprep.subr.bf16.mxu0 %v9897_v46  ;;  %7010 = vmatprep.subr.bf16.mxu1 %v9899_v47 }
 0x14b   :  { %6914 = vmatmul.mubr.bf16.vlgmr.msra.gmra.mrb[32].mxu0 %v11301_v28  ;;  %6957 = vmatmul.mubr.bf16.vlgmr.msra.gmra.mrb[32].mxu1 %v11301_v28 }
 0x14c   :  { %6968 = vmatpush1.bf16.msra.mxu0 %v9896_v52  ;;  %7011 = vmatpush1.bf16.msra.mxu1 %v9898_v53  ;;  %v10795_v52 = vcombine.high %v958_v39, %v1022_v40  ;;  %v63_v53 = vld [vmem:[#allocation5 + $0xa0] sm:$0xff] }
 0x14d   :  { %6969 = vmatprep.subr.bf16.mxu0 %v10025_v54  ;;  %7012 = vmatprep.subr.bf16.mxu1 %v10027_v55  ;;  %v127_v54 = vld [vmem:[#allocation5 + $0x2a0] sm:$0xff] }
 0x14e   :  { %6999 = vmatprep.mubr.bf16.mxu0 %v11233_v0  ;;  %7042 = vmatprep.mubr.bf16.mxu1 %v11233_v0  ;;  %v9900_v3 = vcombine.low %v63_v53, %v127_v54  ;;  %v831_v39 = vld [vmem:[#allocation5 + $0x18a0] sm:$0xff] }
 0x14f   :  { %v895_v40 = vld [vmem:[#allocation5 + $0x1aa0] sm:$0xff] }
 0x150   :  { %6970 = vmatpush1.bf16.msra.mxu0 %v10024_v60  ;;  %7013 = vmatpush1.bf16.msra.mxu1 %v10026_v61  ;;  %v9901_v60 = vcombine.high %v63_v53, %v127_v54  ;;  %v9903_v61 = vcombine.high %v64_v56, %v128_v57  ;;  %v1024_v53 = vld [vmem:[#allocation5 + $0x1ea8] sm:$0xff]  ;;  %v10668_v57 = vcombine.low %v831_v39, %v895_v40 }
 0x151   :  { %6971 = vmatprep.subr.bf16.mxu0 %v10153_v62  ;;  %7014 = vmatprep.subr.bf16.mxu1 %v10155_v63  ;;  %v191_v62 = vld [vmem:[#allocation5 + $0x4a0] sm:$0xff] }
 0x152   :  { %v255_v63 = vld [vmem:[#allocation5 + $0x6a0] sm:$0xff] }
 0x153   :  { %v10028_v12 = vcombine.low %v191_v62, %v255_v63 }
 0x154   :  { %6972 = vmatpush1.bf16.msra.mxu0 %v10152_v5  ;;  %7015 = vmatpush1.bf16.msra.mxu1 %v10154_v6  ;;  %v10029_v5 = vcombine.high %v191_v62, %v255_v63  ;;  %v10031_v6 = vcombine.high %v192_v1, %v256_v2 }
 0x155   :  { %6973 = vmatprep.subr.bf16.mxu0 %v10281_v7  ;;  %7016 = vmatprep.subr.bf16.mxu1 %v10283_v8  ;;  %v319_v7 = vld [vmem:[#allocation5 + $0x8a0] sm:$0xff] }
 0x156   :  { %v383_v8 = vld [vmem:[#allocation5 + $0xaa0] sm:$0xff] }
 0x157   :  { %v10156_v20 = vcombine.low %v319_v7, %v383_v8 }
 0x158   :  { %6974 = vmatpush1.bf16.msra.mxu0 %v10280_v14  ;;  %7017 = vmatpush1.bf16.msra.mxu1 %v10282_v15  ;;  %v10157_v14 = vcombine.high %v319_v7, %v383_v8  ;;  %v10159_v15 = vcombine.high %v320_v9, %v384_v11  ;;  %v130_v7 = vld [vmem:[#allocation5 + $0x2b8] sm:$0xff] }
 0x159   :  { %6975 = vmatprep.subr.bf16.mxu0 %v10409_v16  ;;  %7018 = vmatprep.subr.bf16.mxu1 %v10411_v17  ;;  %v447_v16 = vld [vmem:[#allocation5 + $0xca0] sm:$0xff] }
 0x15a   :  { %v511_v17 = vld [vmem:[#allocation5 + $0xea0] sm:$0xff] }
 0x15b   :  { %v10285_v21 = vcombine.high %v447_v16, %v511_v17  ;;  %v10284_v27 = vcombine.low %v447_v16, %v511_v17  ;;  %v258_v16 = vld [vmem:[#allocation5 + $0x6b8] sm:$0xff] }
 0x15c   :  { %6976 = vmatpush1.bf16.msra.mxu0 %v10408_v22  ;;  %7019 = vmatpush1.bf16.msra.mxu1 %v10410_v23  ;;  %v10287_v22 = vcombine.high %v448_v18, %v512_v19  ;;  %v575_v23 = vld [vmem:[#allocation5 + $0x10a0] sm:$0xff] }
 0x15d   :  { %6977 = vmatprep.subr.bf16.mxu0 %v10537_v24  ;;  %7020 = vmatprep.subr.bf16.mxu1 %v10539_v25  ;;  %v639_v24 = vld [vmem:[#allocation5 + $0x12a0] sm:$0xff]  ;;  %v576_v25 = vld [vmem:[#allocation5 + $0x10a8] sm:$0xff] }
 0x15e   :  { %v6399_v34 = vpop.f32.mrb[8].mxu0  ;;  %v6442_v10 = vpop.f32.mrb[8].mxu1  ;;  %v10413_v30 = vcombine.high %v575_v23, %v639_v24  ;;  %v10412_v36 = vcombine.low %v575_v23, %v639_v24  ;;  %v10414_v37 = vcombine.low %v576_v25, %v640_v26  ;;  %v322_v23 = vld [vmem:[#allocation5 + $0x8b8] sm:$0xff] }
 0x15f   :  { %v6401_v38 = vpop.f32.mrb[9].mxu0  ;;  %v6444_v42 = vpop.f32.mrb[9].mxu1  ;;  %v386_v24 = vld [vmem:[#allocation5 + $0xab8] sm:$0xff] }
 0x160   :  { %v11016_v41 = vpack.c.bf16 %v6401_v38, %v6399_v34  ;;  %v6403_v43 = vpop.f32.mrb[10].mxu0  ;;  %6978 = vmatpush1.bf16.msra.mxu0 %v10536_v31  ;;  %v11017_v45 = vpack.c.bf16 %v6444_v42, %v6442_v10  ;;  %v6446_v46 = vpop.f32.mrb[10].mxu1  ;;  %7021 = vmatpush1.bf16.msra.mxu1 %v10538_v32  ;;  %v10415_v31 = vcombine.high %v576_v25, %v640_v26  ;;  %v703_v32 = vld [vmem:[#allocation5 + $0x14a0] sm:$0xff]  ;;  %v704_v34 = vld [vmem:[#allocation5 + $0x14a8] sm:$0xff] }
 0x161   :  { %v6405_v47 = vpop.f32.mrb[11].mxu0  ;;  %6979 = vmatprep.subr.bf16.mxu0 %v10665_v33  ;;  %v6448_v51 = vpop.f32.mrb[11].mxu1  ;;  %7022 = vmatprep.subr.bf16.mxu1 %v10667_v35  ;;  %v767_v33 = vld [vmem:[#allocation5 + $0x16a0] sm:$0xff]  ;;  %v768_v35 = vld [vmem:[#allocation5 + $0x16a8] sm:$0xff] }
 0x162   :  { %9717 = vst [vmem:[#allocation7 + $0x20] sm:$0xff] %v11016_v41  ;;  %v11080_v50 = vpack.c.bf16 %v6405_v47, %v6403_v43  ;;  %9718 = vst [vmem:[#allocation7 + $0x28] sm:$0xff] %v11017_v45  ;;  %v11081_v55 = vpack.c.bf16 %v6448_v51, %v6446_v46  ;;  %v10541_v10 = vcombine.high %v703_v32, %v767_v33  ;;  %v832_v41 = vld [vmem:[#allocation5 + $0x18a8] sm:$0xff] }
 0x163   :  { %v10543_v38 = vcombine.high %v704_v34, %v768_v35  ;;  %v896_v42 = vld [vmem:[#allocation5 + $0x1aa8] sm:$0xff]  ;;  %v10540_v43 = vcombine.low %v703_v32, %v767_v33  ;;  %v10669_v45 = vcombine.high %v831_v39, %v895_v40  ;;  %v450_v32 = vld [vmem:[#allocation5 + $0xcb8] sm:$0xff] }
 0x164   :  { %9781 = vst [vmem:[#allocation7 + $0x220] sm:$0xff] %v11080_v50  ;;  %6980 = vmatpush1.bf16.msra.mxu0 %v10664_v44  ;;  %9782 = vst [vmem:[#allocation7 + $0x228] sm:$0xff] %v11081_v55  ;;  %7023 = vmatpush1.bf16.msra.mxu1 %v10666_v48  ;;  %v10542_v44 = vcombine.low %v704_v34, %v768_v35  ;;  %v10671_v47 = vcombine.high %v832_v41, %v896_v42  ;;  %v959_v48 = vld [vmem:[#allocation5 + $0x1ca0] sm:$0xff]  ;;  %v514_v33 = vld [vmem:[#allocation5 + $0xeb8] sm:$0xff] }
 0x165   :  { %6981 = vmatprep.subr.bf16.mxu0 %v10793_v49  ;;  %7024 = vmatprep.subr.bf16.mxu1 %v10795_v52  ;;  %v1023_v49 = vld [vmem:[#allocation5 + $0x1ea0] sm:$0xff]  ;;  %v960_v52 = vld [vmem:[#allocation5 + $0x1ca8] sm:$0xff]  ;;  %v10162_v35 = vcombine.low %v322_v23, %v386_v24  ;;  %v578_v39 = vld [vmem:[#allocation5 + $0x10b8] sm:$0xff] }
 0x166   :  { %v10797_v62 = vcombine.high %v959_v48, %v1023_v49  ;;  %v10799_v2 = vcombine.high %v960_v52, %v1024_v53  ;;  %v10796_v8 = vcombine.low %v959_v48, %v1023_v49  ;;  %v642_v40 = vld [vmem:[#allocation5 + $0x12b8] sm:$0xff] }
 0x167   :  { %v770_v48 = vld [vmem:[#allocation5 + $0x16b8] sm:$0xff] }
 0x168   :  { %6982 = vmatpush1.bf16.msra.mxu0 %v10792_v58  ;;  %7025 = vmatpush1.bf16.msra.mxu1 %v10794_v59 }
 0x169   :  { %7053 = vmatprep.subr.bf16.mxu0 %v9901_v60  ;;  %7096 = vmatprep.subr.bf16.mxu1 %v9903_v61  ;;  %v10670_v61 = vcombine.low %v832_v41, %v896_v42  ;;  %v10290_v42 = vcombine.low %v450_v32, %v514_v33 }
 0x16b   :  { %7000 = vmatmul.mubr.bf16.vlgmr.msra.gmra.mrb[36].mxu0 %v11301_v28  ;;  %7043 = vmatmul.mubr.bf16.vlgmr.msra.gmra.mrb[36].mxu1 %v11301_v28  ;;  %v10158_v28 = vcombine.low %v320_v9, %v384_v11  ;;  %v10798_v9 = vcombine.low %v960_v52, %v1024_v53  ;;  %v833_v53 = vld [vmem:[#allocation5 + $0x18b0] sm:$0xff] }
 0x16c   :  { %7054 = vmatpush1.bf16.msra.mxu0 %v9900_v3  ;;  %7097 = vmatpush1.bf16.msra.mxu1 %v9902_v4  ;;  %v65_v3 = vld [vmem:[#allocation5 + $0xb0] sm:$0xff] }
 0x16d   :  { %7055 = vmatprep.subr.bf16.mxu0 %v10029_v5  ;;  %7098 = vmatprep.subr.bf16.mxu1 %v10031_v6  ;;  %v129_v4 = vld [vmem:[#allocation5 + $0x2b0] sm:$0xff]  ;;  %v66_v6 = vld [vmem:[#allocation5 + $0xb8] sm:$0xff] }
 0x16e   :  { %7085 = vmatprep.mubr.bf16.mxu0 %v11233_v0  ;;  %7128 = vmatprep.mubr.bf16.mxu1 %v11233_v0  ;;  %v9905_v11 = vcombine.high %v65_v3, %v129_v4  ;;  %v9904_v17 = vcombine.low %v65_v3, %v129_v4  ;;  %v9906_v18 = vcombine.low %v66_v6, %v130_v7  ;;  %v962_v3 = vld [vmem:[#allocation5 + $0x1cb8] sm:$0xff] }
 0x16f   :  { %v1026_v4 = vld [vmem:[#allocation5 + $0x1eb8] sm:$0xff] }
 0x170   :  { %7056 = vmatpush1.bf16.msra.mxu0 %v10028_v12  ;;  %7099 = vmatpush1.bf16.msra.mxu1 %v10030_v13  ;;  %v9907_v12 = vcombine.high %v66_v6, %v130_v7  ;;  %v193_v13 = vld [vmem:[#allocation5 + $0x4b0] sm:$0xff] }
 0x171   :  { %7057 = vmatprep.subr.bf16.mxu0 %v10157_v14  ;;  %7100 = vmatprep.subr.bf16.mxu1 %v10159_v15  ;;  %v257_v14 = vld [vmem:[#allocation5 + $0x6b0] sm:$0xff]  ;;  %v194_v15 = vld [vmem:[#allocation5 + $0x4b8] sm:$0xff] }
 0x172   :  { %v10033_v19 = vcombine.high %v193_v13, %v257_v14  ;;  %v10032_v25 = vcombine.low %v193_v13, %v257_v14  ;;  %v10034_v26 = vcombine.low %v194_v15, %v258_v16 }
 0x174   :  { %7058 = vmatpush1.bf16.msra.mxu0 %v10156_v20  ;;  %7101 = vmatpush1.bf16.msra.mxu1 %v10158_v28  ;;  %v10035_v20 = vcombine.high %v194_v15, %v258_v16  ;;  %v321_v28 = vld [vmem:[#allocation5 + $0x8b0] sm:$0xff] }
 0x175   :  { %7059 = vmatprep.subr.bf16.mxu0 %v10285_v21  ;;  %7102 = vmatprep.subr.bf16.mxu1 %v10287_v22  ;;  %v385_v21 = vld [vmem:[#allocation5 + $0xab0] sm:$0xff]  ;;  %v11323_v22 = vld [vmem:[#allocation2] sm:$0xff]  }
 0x176   :  { %v10160_v34 = vcombine.low %v321_v28, %v385_v21 }
 0x178   :  { %7060 = vmatpush1.bf16.msra.mxu0 %v10284_v27  ;;  %7103 = vmatpush1.bf16.msra.mxu1 %v10286_v29  ;;  %v10161_v27 = vcombine.high %v321_v28, %v385_v21  ;;  %v10163_v29 = vcombine.high %v322_v23, %v386_v24  ;;  %v68_v28 = vld [vmem:[#allocation5 + $0xc8] sm:$0xff]  ;;  %v10802_v24 = vcombine.low %v962_v3, %v1026_v4 }
 0x179   :  { %7061 = vmatprep.subr.bf16.mxu0 %v10413_v30  ;;  %7104 = vmatprep.subr.bf16.mxu1 %v10415_v31  ;;  %v449_v30 = vld [vmem:[#allocation5 + $0xcb0] sm:$0xff]  ;;  %v132_v21 = vld [vmem:[#allocation5 + $0x2c8] sm:$0xff] }
 0x17a   :  { %v513_v31 = vld [vmem:[#allocation5 + $0xeb0] sm:$0xff] }
 0x17b   :  { %v10288_v41 = vcombine.low %v449_v30, %v513_v31 }
 0x17c   :  { %7062 = vmatpush1.bf16.msra.mxu0 %v10412_v36  ;;  %7105 = vmatpush1.bf16.msra.mxu1 %v10414_v37  ;;  %v10289_v36 = vcombine.high %v449_v30, %v513_v31  ;;  %v10291_v37 = vcombine.high %v450_v32, %v514_v33  ;;  %v196_v30 = vld [vmem:[#allocation5 + $0x4c8] sm:$0xff]  ;;  %v9910_v33 = vcombine.low %v68_v28, %v132_v21 }
 0x17d   :  { %7063 = vmatprep.subr.bf16.mxu0 %v10541_v10  ;;  %7106 = vmatprep.subr.bf16.mxu1 %v10543_v38  ;;  %v577_v10 = vld [vmem:[#allocation5 + $0x10b0] sm:$0xff]  ;;  %v260_v31 = vld [vmem:[#allocation5 + $0x6c8] sm:$0xff] }
 0x17e   :  { %v6485_v46 = vpop.f32.mrb[12].mxu0  ;;  %v6528_v50 = vpop.f32.mrb[12].mxu1  ;;  %v641_v38 = vld [vmem:[#allocation5 + $0x12b0] sm:$0xff] }
 0x17f   :  { %v6487_v51 = vpop.f32.mrb[13].mxu0  ;;  %v6530_v55 = vpop.f32.mrb[13].mxu1  ;;  %v10416_v49 = vcombine.low %v577_v10, %v641_v38 }
 0x180   :  { %v11018_v54 = vpack.c.bf16 %v6487_v51, %v6485_v46  ;;  %v6489_v56 = vpop.f32.mrb[14].mxu0  ;;  %7064 = vmatpush1.bf16.msra.mxu0 %v10540_v43  ;;  %v11019_v58 = vpack.c.bf16 %v6530_v55, %v6528_v50  ;;  %v6532_v59 = vpop.f32.mrb[14].mxu1  ;;  %7107 = vmatpush1.bf16.msra.mxu1 %v10542_v44  ;;  %v10417_v43 = vcombine.high %v577_v10, %v641_v38  ;;  %v769_v46 = vld [vmem:[#allocation5 + $0x16b0] sm:$0xff]  ;;  %v834_v55 = vld [vmem:[#allocation5 + $0x18b8] sm:$0xff]  ;;  %v324_v10 = vld [vmem:[#allocation5 + $0x8c8] sm:$0xff] }
 0x181   :  { %v6491_v60 = vpop.f32.mrb[15].mxu0  ;;  %7065 = vmatprep.subr.bf16.mxu0 %v10669_v45  ;;  %v6534_v1 = vpop.f32.mrb[15].mxu1  ;;  %7108 = vmatprep.subr.bf16.mxu1 %v10671_v47  ;;  %v10419_v44 = vcombine.high %v578_v39, %v642_v40  ;;  %v705_v45 = vld [vmem:[#allocation5 + $0x14b0] sm:$0xff]  ;;  %v706_v47 = vld [vmem:[#allocation5 + $0x14b8] sm:$0xff]  ;;  %v10418_v50 = vcombine.low %v578_v39, %v642_v40  ;;  %v388_v38 = vld [vmem:[#allocation5 + $0xac8] sm:$0xff]  ;;  %v10038_v40 = vcombine.low %v196_v30, %v260_v31 }
 0x182   :  { %9719 = vst [vmem:[#allocation7 + $0x30] sm:$0xff] %v11018_v54  ;;  %v11082_v63 = vpack.c.bf16 %v6491_v60, %v6489_v56  ;;  %9720 = vst [vmem:[#allocation7 + $0x38] sm:$0xff] %v11019_v58  ;;  %v11083_v5 = vpack.c.bf16 %v6534_v1, %v6532_v59  ;;  %v10545_v51 = vcombine.high %v705_v45, %v769_v46  ;;  %v897_v54 = vld [vmem:[#allocation5 + $0x1ab0] sm:$0xff]  ;;  %v898_v56 = vld [vmem:[#allocation5 + $0x1ab8] sm:$0xff] }
 0x183   :  { %v10547_v52 = vcombine.high %v706_v47, %v770_v48  ;;  %v10546_v58 = vcombine.low %v706_v47, %v770_v48  ;;  %v10673_v59 = vcombine.high %v833_v53, %v897_v54  ;;  %v10674_v13 = vcombine.low %v834_v55, %v898_v56 }
 0x184   :  { %9783 = vst [vmem:[#allocation7 + $0x230] sm:$0xff] %v11082_v63  ;;  %7066 = vmatpush1.bf16.msra.mxu0 %v10668_v57  ;;  %9784 = vst [vmem:[#allocation7 + $0x238] sm:$0xff] %v11083_v5  ;;  %7109 = vmatpush1.bf16.msra.mxu1 %v10670_v61  ;;  %v10544_v57 = vcombine.low %v705_v45, %v769_v46  ;;  %v10675_v61 = vcombine.high %v834_v55, %v898_v56  ;;  %v1025_v63 = vld [vmem:[#allocation5 + $0x1eb0] sm:$0xff]  ;;  %v452_v45 = vld [vmem:[#allocation5 + $0xcc8] sm:$0xff] }
 0x185   :  { %7067 = vmatprep.subr.bf16.mxu0 %v10797_v62  ;;  %7110 = vmatprep.subr.bf16.mxu1 %v10799_v2  ;;  %v961_v62 = vld [vmem:[#allocation5 + $0x1cb0] sm:$0xff]  ;;  %v516_v46 = vld [vmem:[#allocation5 + $0xec8] sm:$0xff]  ;;  %v10166_v48 = vcombine.low %v324_v10, %v388_v38 }
 0x186   :  { %v10801_v14 = vcombine.high %v961_v62, %v1025_v63  ;;  %v10800_v23 = vcombine.low %v961_v62, %v1025_v63  ;;  %v10294_v56 = vcombine.low %v452_v45, %v516_v46  ;;  %v772_v62 = vld [vmem:[#allocation5 + $0x16c8] sm:$0xff] }
 0x188   :  { %7068 = vmatpush1.bf16.msra.mxu0 %v10796_v8  ;;  %7111 = vmatpush1.bf16.msra.mxu1 %v10798_v9  ;;  %v10672_v8 = vcombine.low %v833_v53, %v897_v54  ;;  %v580_v53 = vld [vmem:[#allocation5 + $0x10c8] sm:$0xff] }
 0x189   :  { %7139 = vmatprep.subr.bf16.mxu0 %v9905_v11  ;;  %7182 = vmatprep.subr.bf16.mxu1 %v9907_v12  ;;  %v644_v54 = vld [vmem:[#allocation5 + $0x12c8] sm:$0xff] }
 0x18b   :  { %7086 = vmatmul.mubr.bf16.vlgmr.msra.gmra.mrb[40].mxu0 %v11323_v22  ;;  %7129 = vmatmul.mubr.bf16.vlgmr.msra.gmra.mrb[40].mxu1 %v11323_v22 }
 0x18c   :  { %7140 = vmatpush1.bf16.msra.mxu0 %v9904_v17  ;;  %7183 = vmatpush1.bf16.msra.mxu1 %v9906_v18  ;;  %v10803_v17 = vcombine.high %v962_v3, %v1026_v4  ;;  %v67_v18 = vld [vmem:[#allocation5 + $0xc0] sm:$0xff] }
 0x18d   :  { %7141 = vmatprep.subr.bf16.mxu0 %v10033_v19  ;;  %7184 = vmatprep.subr.bf16.mxu1 %v10035_v20  ;;  %v131_v19 = vld [vmem:[#allocation5 + $0x2c0] sm:$0xff] }
 0x18e   :  { %7171 = vmatprep.mubr.bf16.mxu0 %v11233_v0  ;;  %7214 = vmatprep.mubr.bf16.mxu1 %v11233_v0  ;;  %v9908_v32 = vcombine.low %v67_v18, %v131_v19  ;;  %v835_v4 = vld [vmem:[#allocation5 + $0x18c0] sm:$0xff] }
 0x190   :  { %7142 = vmatpush1.bf16.msra.mxu0 %v10032_v25  ;;  %7185 = vmatpush1.bf16.msra.mxu1 %v10034_v26  ;;  %v9909_v25 = vcombine.high %v67_v18, %v131_v19  ;;  %v9911_v26 = vcombine.high %v68_v28, %v132_v21  ;;  %v964_v18 = vld [vmem:[#allocation5 + $0x1cc8] sm:$0xff] }
 0x191   :  { %7143 = vmatprep.subr.bf16.mxu0 %v10161_v27  ;;  %7186 = vmatprep.subr.bf16.mxu1 %v10163_v29  ;;  %v195_v27 = vld [vmem:[#allocation5 + $0x4c0] sm:$0xff]  ;;  %v1028_v19 = vld [vmem:[#allocation5 + $0x1ec8] sm:$0xff] }
 0x192   :  { %v259_v29 = vld [vmem:[#allocation5 + $0x6c0] sm:$0xff] }
 0x193   :  { %v10036_v39 = vcombine.low %v195_v27, %v259_v29 }
 0x194   :  { %7144 = vmatpush1.bf16.msra.mxu0 %v10160_v34  ;;  %7187 = vmatpush1.bf16.msra.mxu1 %v10162_v35  ;;  %v10037_v34 = vcombine.high %v195_v27, %v259_v29  ;;  %v10039_v35 = vcombine.high %v196_v30, %v260_v31 }
 0x195   :  { %7145 = vmatprep.subr.bf16.mxu0 %v10289_v36  ;;  %7188 = vmatprep.subr.bf16.mxu1 %v10291_v37  ;;  %v323_v36 = vld [vmem:[#allocation5 + $0x8c0] sm:$0xff] }
 0x196   :  { %v387_v37 = vld [vmem:[#allocation5 + $0xac0] sm:$0xff] }
 0x197   :  { %v10164_v47 = vcombine.low %v323_v36, %v387_v37 }
 0x198   :  { %7146 = vmatpush1.bf16.msra.mxu0 %v10288_v41  ;;  %7189 = vmatpush1.bf16.msra.mxu1 %v10290_v42  ;;  %v10165_v41 = vcombine.high %v323_v36, %v387_v37  ;;  %v10167_v42 = vcombine.high %v324_v10, %v388_v38  ;;  %v70_v36 = vld [vmem:[#allocation5 + $0xd8] sm:$0xff]  ;;  %v10806_v38 = vcombine.low %v964_v18, %v1028_v19 }
 0x199   :  { %7147 = vmatprep.subr.bf16.mxu0 %v10417_v43  ;;  %7190 = vmatprep.subr.bf16.mxu1 %v10419_v44  ;;  %v451_v43 = vld [vmem:[#allocation5 + $0xcc0] sm:$0xff]  ;;  %v134_v37 = vld [vmem:[#allocation5 + $0x2d8] sm:$0xff] }
 0x19a   :  { %v515_v44 = vld [vmem:[#allocation5 + $0xec0] sm:$0xff] }
 0x19b   :  { %v10292_v55 = vcombine.low %v451_v43, %v515_v44 }
 0x19c   :  { %7148 = vmatpush1.bf16.msra.mxu0 %v10416_v49  ;;  %7191 = vmatpush1.bf16.msra.mxu1 %v10418_v50  ;;  %v10293_v49 = vcombine.high %v451_v43, %v515_v44  ;;  %v10295_v50 = vcombine.high %v452_v45, %v516_v46  ;;  %v198_v43 = vld [vmem:[#allocation5 + $0x4d8] sm:$0xff]  ;;  %v9914_v46 = vcombine.low %v70_v36, %v134_v37 }
 0x19d   :  { %7149 = vmatprep.subr.bf16.mxu0 %v10545_v51  ;;  %7192 = vmatprep.subr.bf16.mxu1 %v10547_v52  ;;  %v579_v51 = vld [vmem:[#allocation5 + $0x10c0] sm:$0xff]  ;;  %v262_v44 = vld [vmem:[#allocation5 + $0x6d8] sm:$0xff] }
 0x19e   :  { %v6571_v60 = vpop.f32.mrb[16].mxu0  ;;  %v6614_v1 = vpop.f32.mrb[16].mxu1  ;;  %v643_v52 = vld [vmem:[#allocation5 + $0x12c0] sm:$0xff] }
 0x19f   :  { %v6573_v2 = vpop.f32.mrb[17].mxu0  ;;  %v6616_v6 = vpop.f32.mrb[17].mxu1  ;;  %v10420_v63 = vcombine.low %v579_v51, %v643_v52 }
 0x1a0   :  { %v11020_v5 = vpack.c.bf16 %v6573_v2, %v6571_v60  ;;  %v6575_v7 = vpop.f32.mrb[18].mxu0  ;;  %7150 = vmatpush1.bf16.msra.mxu0 %v10544_v57  ;;  %v11021_v9 = vpack.c.bf16 %v6616_v6, %v6614_v1  ;;  %v6618_v11 = vpop.f32.mrb[18].mxu1  ;;  %7193 = vmatpush1.bf16.msra.mxu1 %v10546_v58  ;;  %v10421_v57 = vcombine.high %v579_v51, %v643_v52  ;;  %v771_v60 = vld [vmem:[#allocation5 + $0x16c0] sm:$0xff]  ;;  %v836_v6 = vld [vmem:[#allocation5 + $0x18c8] sm:$0xff]  ;;  %v326_v51 = vld [vmem:[#allocation5 + $0x8d8] sm:$0xff] }
 0x1a1   :  { %v6577_v12 = vpop.f32.mrb[19].mxu0  ;;  %7151 = vmatprep.subr.bf16.mxu0 %v10673_v59  ;;  %v6620_v16 = vpop.f32.mrb[19].mxu1  ;;  %7194 = vmatprep.subr.bf16.mxu1 %v10675_v61  ;;  %v10423_v58 = vcombine.high %v580_v53, %v644_v54  ;;  %v707_v59 = vld [vmem:[#allocation5 + $0x14c0] sm:$0xff]  ;;  %v708_v61 = vld [vmem:[#allocation5 + $0x14c8] sm:$0xff]  ;;  %v10422_v1 = vcombine.low %v580_v53, %v644_v54  ;;  %v390_v52 = vld [vmem:[#allocation5 + $0xad8] sm:$0xff]  ;;  %v10042_v54 = vcombine.low %v198_v43, %v262_v44 }
 0x1a2   :  { %9721 = vst [vmem:[#allocation7 + $0x40] sm:$0xff] %v11020_v5  ;;  %v11084_v15 = vpack.c.bf16 %v6577_v12, %v6575_v7  ;;  %9722 = vst [vmem:[#allocation7 + $0x48] sm:$0xff] %v11021_v9  ;;  %v11085_v20 = vpack.c.bf16 %v6620_v16, %v6618_v11  ;;  %v10549_v2 = vcombine.high %v707_v59, %v771_v60  ;;  %v899_v5 = vld [vmem:[#allocation5 + $0x1ac0] sm:$0xff]  ;;  %v900_v7 = vld [vmem:[#allocation5 + $0x1ac8] sm:$0xff] }
 0x1a3   :  { %v10551_v3 = vcombine.high %v708_v61, %v772_v62  ;;  %v10550_v9 = vcombine.low %v708_v61, %v772_v62  ;;  %v10677_v11 = vcombine.high %v835_v4, %v899_v5  ;;  %v10678_v27 = vcombine.low %v836_v6, %v900_v7 }
 0x1a4   :  { %9785 = vst [vmem:[#allocation7 + $0x240] sm:$0xff] %v11084_v15  ;;  %7152 = vmatpush1.bf16.msra.mxu0 %v10672_v8  ;;  %9786 = vst [vmem:[#allocation7 + $0x248] sm:$0xff] %v11085_v20  ;;  %7195 = vmatpush1.bf16.msra.mxu1 %v10674_v13  ;;  %v10548_v8 = vcombine.low %v707_v59, %v771_v60  ;;  %v10679_v13 = vcombine.high %v836_v6, %v900_v7  ;;  %v1027_v15 = vld [vmem:[#allocation5 + $0x1ec0] sm:$0xff]  ;;  %v454_v59 = vld [vmem:[#allocation5 + $0xcd8] sm:$0xff] }
 0x1a5   :  { %7153 = vmatprep.subr.bf16.mxu0 %v10801_v14  ;;  %7196 = vmatprep.subr.bf16.mxu1 %v10803_v17  ;;  %v963_v14 = vld [vmem:[#allocation5 + $0x1cc0] sm:$0xff]  ;;  %v518_v60 = vld [vmem:[#allocation5 + $0xed8] sm:$0xff]  ;;  %v10170_v62 = vcombine.low %v326_v51, %v390_v52 }
 0x1a6   :  { %v10805_v29 = vcombine.high %v963_v14, %v1027_v15  ;;  %v10804_v10 = vcombine.low %v963_v14, %v1027_v15  ;;  %v10298_v7 = vcombine.low %v454_v59, %v518_v60  ;;  %v774_v14 = vld [vmem:[#allocation5 + $0x16d8] sm:$0xff] }
 0x1a8   :  { %7154 = vmatpush1.bf16.msra.mxu0 %v10800_v23  ;;  %7197 = vmatpush1.bf16.msra.mxu1 %v10802_v24  ;;  %v10676_v23 = vcombine.low %v835_v4, %v899_v5  ;;  %v582_v4 = vld [vmem:[#allocation5 + $0x10d8] sm:$0xff] }
 0x1a9   :  { %7225 = vmatprep.subr.bf16.mxu0 %v9909_v25  ;;  %7268 = vmatprep.subr.bf16.mxu1 %v9911_v26  ;;  %v646_v5 = vld [vmem:[#allocation5 + $0x12d8] sm:$0xff] }
 0x1ab   :  { %7172 = vmatmul.mubr.bf16.vlgmr.msra.gmra.mrb[44].mxu0 %v11323_v22  ;;  %7215 = vmatmul.mubr.bf16.vlgmr.msra.gmra.mrb[44].mxu1 %v11323_v22 }
 0x1ac   :  { %7226 = vmatpush1.bf16.msra.mxu0 %v9908_v32  ;;  %7269 = vmatpush1.bf16.msra.mxu1 %v9910_v33  ;;  %v10807_v32 = vcombine.high %v964_v18, %v1028_v19  ;;  %v69_v33 = vld [vmem:[#allocation5 + $0xd0] sm:$0xff] }
 0x1ad   :  { %7227 = vmatprep.subr.bf16.mxu0 %v10037_v34  ;;  %7270 = vmatprep.subr.bf16.mxu1 %v10039_v35  ;;  %v133_v34 = vld [vmem:[#allocation5 + $0x2d0] sm:$0xff] }
 0x1ae   :  { %7257 = vmatprep.mubr.bf16.mxu0 %v11233_v0  ;;  %7300 = vmatprep.mubr.bf16.mxu1 %v11233_v0  ;;  %v9912_v45 = vcombine.low %v69_v33, %v133_v34  ;;  %v837_v19 = vld [vmem:[#allocation5 + $0x18d0] sm:$0xff] }
 0x1b0   :  { %7228 = vmatpush1.bf16.msra.mxu0 %v10036_v39  ;;  %7271 = vmatpush1.bf16.msra.mxu1 %v10038_v40  ;;  %v9913_v39 = vcombine.high %v69_v33, %v133_v34  ;;  %v9915_v40 = vcombine.high %v70_v36, %v134_v37  ;;  %v966_v33 = vld [vmem:[#allocation5 + $0x1cd8] sm:$0xff] }
 0x1b1   :  { %7229 = vmatprep.subr.bf16.mxu0 %v10165_v41  ;;  %7272 = vmatprep.subr.bf16.mxu1 %v10167_v42  ;;  %v197_v41 = vld [vmem:[#allocation5 + $0x4d0] sm:$0xff]  ;;  %v1030_v34 = vld [vmem:[#allocation5 + $0x1ed8] sm:$0xff] }
 0x1b2   :  { %v261_v42 = vld [vmem:[#allocation5 + $0x6d0] sm:$0xff] }
 0x1b3   :  { %v10040_v53 = vcombine.low %v197_v41, %v261_v42 }
 0x1b4   :  { %7230 = vmatpush1.bf16.msra.mxu0 %v10164_v47  ;;  %7273 = vmatpush1.bf16.msra.mxu1 %v10166_v48  ;;  %v10041_v47 = vcombine.high %v197_v41, %v261_v42  ;;  %v10043_v48 = vcombine.high %v198_v43, %v262_v44 }
 0x1b5   :  { %7231 = vmatprep.subr.bf16.mxu0 %v10293_v49  ;;  %7274 = vmatprep.subr.bf16.mxu1 %v10295_v50  ;;  %v325_v49 = vld [vmem:[#allocation5 + $0x8d0] sm:$0xff] }
 0x1b6   :  { %v389_v50 = vld [vmem:[#allocation5 + $0xad0] sm:$0xff] }
 0x1b7   :  { %v10168_v61 = vcombine.low %v325_v49, %v389_v50 }
 0x1b8   :  { %7232 = vmatpush1.bf16.msra.mxu0 %v10292_v55  ;;  %7275 = vmatpush1.bf16.msra.mxu1 %v10294_v56  ;;  %v10169_v55 = vcombine.high %v325_v49, %v389_v50  ;;  %v10171_v56 = vcombine.high %v326_v51, %v390_v52  ;;  %v72_v49 = vld [vmem:[#allocation5 + $0xe8] sm:$0xff]  ;;  %v10810_v52 = vcombine.low %v966_v33, %v1030_v34 }
 0x1b9   :  { %7233 = vmatprep.subr.bf16.mxu0 %v10421_v57  ;;  %7276 = vmatprep.subr.bf16.mxu1 %v10423_v58  ;;  %v453_v57 = vld [vmem:[#allocation5 + $0xcd0] sm:$0xff]  ;;  %v136_v50 = vld [vmem:[#allocation5 + $0x2e8] sm:$0xff] }
 0x1ba   :  { %v517_v58 = vld [vmem:[#allocation5 + $0xed0] sm:$0xff] }
 0x1bb   :  { %v10296_v6 = vcombine.low %v453_v57, %v517_v58 }
 0x1bc   :  { %7234 = vmatpush1.bf16.msra.mxu0 %v10420_v63  ;;  %7277 = vmatpush1.bf16.msra.mxu1 %v10422_v1  ;;  %v10297_v63 = vcombine.high %v453_v57, %v517_v58  ;;  %v10299_v1 = vcombine.high %v454_v59, %v518_v60  ;;  %v200_v57 = vld [vmem:[#allocation5 + $0x4e8] sm:$0xff]  ;;  %v9918_v60 = vcombine.low %v72_v49, %v136_v50 }
 0x1bd   :  { %7235 = vmatprep.subr.bf16.mxu0 %v10549_v2  ;;  %7278 = vmatprep.subr.bf16.mxu1 %v10551_v3  ;;  %v581_v2 = vld [vmem:[#allocation5 + $0x10d0] sm:$0xff]  ;;  %v264_v58 = vld [vmem:[#allocation5 + $0x6e8] sm:$0xff] }
 0x1be   :  { %v6657_v12 = vpop.f32.mrb[20].mxu0  ;;  %v6700_v16 = vpop.f32.mrb[20].mxu1  ;;  %v645_v3 = vld [vmem:[#allocation5 + $0x12d0] sm:$0xff] }
 0x1bf   :  { %v6659_v17 = vpop.f32.mrb[21].mxu0  ;;  %v6702_v28 = vpop.f32.mrb[21].mxu1  ;;  %v10424_v15 = vcombine.low %v581_v2, %v645_v3 }
 0x1c0   :  { %v11022_v20 = vpack.c.bf16 %v6659_v17, %v6657_v12  ;;  %v6661_v21 = vpop.f32.mrb[22].mxu0  ;;  %7236 = vmatpush1.bf16.msra.mxu0 %v10548_v8  ;;  %v11023_v24 = vpack.c.bf16 %v6702_v28, %v6700_v16  ;;  %v6704_v25 = vpop.f32.mrb[22].mxu1  ;;  %7279 = vmatpush1.bf16.msra.mxu1 %v10550_v9  ;;  %v10425_v8 = vcombine.high %v581_v2, %v645_v3  ;;  %v773_v12 = vld [vmem:[#allocation5 + $0x16d0] sm:$0xff]  ;;  %v838_v28 = vld [vmem:[#allocation5 + $0x18d8] sm:$0xff]  ;;  %v328_v2 = vld [vmem:[#allocation5 + $0x8e8] sm:$0xff] }
 0x1c1   :  { %v6663_v26 = vpop.f32.mrb[23].mxu0  ;;  %7237 = vmatprep.subr.bf16.mxu0 %v10677_v11  ;;  %v6706_v31 = vpop.f32.mrb[23].mxu1  ;;  %7280 = vmatprep.subr.bf16.mxu1 %v10679_v13  ;;  %v10427_v9 = vcombine.high %v582_v4, %v646_v5  ;;  %v709_v11 = vld [vmem:[#allocation5 + $0x14d0] sm:$0xff]  ;;  %v710_v13 = vld [vmem:[#allocation5 + $0x14d8] sm:$0xff]  ;;  %v10426_v16 = vcombine.low %v582_v4, %v646_v5  ;;  %v392_v3 = vld [vmem:[#allocation5 + $0xae8] sm:$0xff]  ;;  %v10046_v5 = vcombine.low %v200_v57, %v264_v58 }
 0x1c2   :  { %9723 = vst [vmem:[#allocation7 + $0x50] sm:$0xff] %v11022_v20  ;;  %v11086_v30 = vpack.c.bf16 %v6663_v26, %v6661_v21  ;;  %9724 = vst [vmem:[#allocation7 + $0x58] sm:$0xff] %v11023_v24  ;;  %v11087_v35 = vpack.c.bf16 %v6706_v31, %v6704_v25  ;;  %v10553_v17 = vcombine.high %v709_v11, %v773_v12  ;;  %v901_v20 = vld [vmem:[#allocation5 + $0x1ad0] sm:$0xff]  ;;  %v902_v21 = vld [vmem:[#allocation5 + $0x1ad8] sm:$0xff] }
 0x1c3   :  { %v10555_v18 = vcombine.high %v710_v13, %v774_v14  ;;  %v10554_v24 = vcombine.low %v710_v13, %v774_v14  ;;  %v10681_v25 = vcombine.high %v837_v19, %v901_v20  ;;  %v10682_v41 = vcombine.low %v838_v28, %v902_v21 }
 0x1c4   :  { %9787 = vst [vmem:[#allocation7 + $0x250] sm:$0xff] %v11086_v30  ;;  %7238 = vmatpush1.bf16.msra.mxu0 %v10676_v23  ;;  %9788 = vst [vmem:[#allocation7 + $0x258] sm:$0xff] %v11087_v35  ;;  %7281 = vmatpush1.bf16.msra.mxu1 %v10678_v27  ;;  %v10552_v23 = vcombine.low %v709_v11, %v773_v12  ;;  %v10683_v27 = vcombine.high %v838_v28, %v902_v21  ;;  %v1029_v30 = vld [vmem:[#allocation5 + $0x1ed0] sm:$0xff]  ;;  %v456_v11 = vld [vmem:[#allocation5 + $0xce8] sm:$0xff] }
 0x1c5   :  { %7239 = vmatprep.subr.bf16.mxu0 %v10805_v29  ;;  %7282 = vmatprep.subr.bf16.mxu1 %v10807_v32  ;;  %v965_v29 = vld [vmem:[#allocation5 + $0x1cd0] sm:$0xff]  ;;  %v520_v12 = vld [vmem:[#allocation5 + $0xee8] sm:$0xff]  ;;  %v10174_v14 = vcombine.low %v328_v2, %v392_v3 }
 0x1c6   :  { %v10809_v42 = vcombine.high %v965_v29, %v1029_v30  ;;  %v10808_v51 = vcombine.low %v965_v29, %v1029_v30  ;;  %v10302_v21 = vcombine.low %v456_v11, %v520_v12  ;;  %v776_v29 = vld [vmem:[#allocation5 + $0x16e8] sm:$0xff] }
 0x1c8   :  { %7240 = vmatpush1.bf16.msra.mxu0 %v10804_v10  ;;  %7283 = vmatpush1.bf16.msra.mxu1 %v10806_v38  ;;  %v10680_v10 = vcombine.low %v837_v19, %v901_v20  ;;  %v584_v19 = vld [vmem:[#allocation5 + $0x10e8] sm:$0xff] }
 0x1c9   :  { %7311 = vmatprep.subr.bf16.mxu0 %v9913_v39  ;;  %7354 = vmatprep.subr.bf16.mxu1 %v9915_v40  ;;  %v648_v20 = vld [vmem:[#allocation5 + $0x12e8] sm:$0xff] }
 0x1cb   :  { %7258 = vmatmul.mubr.bf16.vlgmr.msra.gmra.mrb[48].mxu0 %v11323_v22  ;;  %7301 = vmatmul.mubr.bf16.vlgmr.msra.gmra.mrb[48].mxu1 %v11323_v22 }
 0x1cc   :  { %7312 = vmatpush1.bf16.msra.mxu0 %v9912_v45  ;;  %7355 = vmatpush1.bf16.msra.mxu1 %v9914_v46  ;;  %v10811_v45 = vcombine.high %v966_v33, %v1030_v34  ;;  %v71_v46 = vld [vmem:[#allocation5 + $0xe0] sm:$0xff] }
 0x1cd   :  { %7313 = vmatprep.subr.bf16.mxu0 %v10041_v47  ;;  %7356 = vmatprep.subr.bf16.mxu1 %v10043_v48  ;;  %v135_v47 = vld [vmem:[#allocation5 + $0x2e0] sm:$0xff] }
 0x1ce   :  { %7343 = vmatprep.mubr.bf16.mxu0 %v11233_v0  ;;  %7386 = vmatprep.mubr.bf16.mxu1 %v11233_v0  ;;  %v9916_v59 = vcombine.low %v71_v46, %v135_v47  ;;  %v839_v34 = vld [vmem:[#allocation5 + $0x18e0] sm:$0xff] }
 0x1d0   :  { %7314 = vmatpush1.bf16.msra.mxu0 %v10040_v53  ;;  %7357 = vmatpush1.bf16.msra.mxu1 %v10042_v54  ;;  %v9917_v53 = vcombine.high %v71_v46, %v135_v47  ;;  %v9919_v54 = vcombine.high %v72_v49, %v136_v50  ;;  %v968_v46 = vld [vmem:[#allocation5 + $0x1ce8] sm:$0xff] }
 0x1d1   :  { %7315 = vmatprep.subr.bf16.mxu0 %v10169_v55  ;;  %7358 = vmatprep.subr.bf16.mxu1 %v10171_v56  ;;  %v199_v55 = vld [vmem:[#allocation5 + $0x4e0] sm:$0xff]  ;;  %v1032_v47 = vld [vmem:[#allocation5 + $0x1ee8] sm:$0xff] }
 0x1d2   :  { %v263_v56 = vld [vmem:[#allocation5 + $0x6e0] sm:$0xff] }
 0x1d3   :  { %v10044_v4 = vcombine.low %v199_v55, %v263_v56 }
 0x1d4   :  { %7316 = vmatpush1.bf16.msra.mxu0 %v10168_v61  ;;  %7359 = vmatpush1.bf16.msra.mxu1 %v10170_v62  ;;  %v10045_v61 = vcombine.high %v199_v55, %v263_v56  ;;  %v10047_v62 = vcombine.high %v200_v57, %v264_v58 }
 0x1d5   :  { %7317 = vmatprep.subr.bf16.mxu0 %v10297_v63  ;;  %7360 = vmatprep.subr.bf16.mxu1 %v10299_v1  ;;  %v327_v63 = vld [vmem:[#allocation5 + $0x8e0] sm:$0xff] }
 0x1d6   :  { %v391_v1 = vld [vmem:[#allocation5 + $0xae0] sm:$0xff] }
 0x1d7   :  { %v10172_v13 = vcombine.low %v327_v63, %v391_v1 }
 0x1d8   :  { %7318 = vmatpush1.bf16.msra.mxu0 %v10296_v6  ;;  %7361 = vmatpush1.bf16.msra.mxu1 %v10298_v7  ;;  %v10173_v6 = vcombine.high %v327_v63, %v391_v1  ;;  %v10175_v7 = vcombine.high %v328_v2, %v392_v3  ;;  %v74_v63 = vld [vmem:[#allocation5 + $0xf8] sm:$0xff]  ;;  %v10814_v3 = vcombine.low %v968_v46, %v1032_v47 }
 0x1d9   :  { %7319 = vmatprep.subr.bf16.mxu0 %v10425_v8  ;;  %7362 = vmatprep.subr.bf16.mxu1 %v10427_v9  ;;  %v455_v8 = vld [vmem:[#allocation5 + $0xce0] sm:$0xff]  ;;  %v138_v1 = vld [vmem:[#allocation5 + $0x2f8] sm:$0xff] }
 0x1da   :  { %v519_v9 = vld [vmem:[#allocation5 + $0xee0] sm:$0xff] }
 0x1db   :  { %v10300_v28 = vcombine.low %v455_v8, %v519_v9 }
 0x1dc   :  { %7320 = vmatpush1.bf16.msra.mxu0 %v10424_v15  ;;  %7363 = vmatpush1.bf16.msra.mxu1 %v10426_v16  ;;  %v10301_v15 = vcombine.high %v455_v8, %v519_v9  ;;  %v10303_v16 = vcombine.high %v456_v11, %v520_v12  ;;  %v202_v8 = vld [vmem:[#allocation5 + $0x4f8] sm:$0xff]  ;;  %v9922_v12 = vcombine.low %v74_v63, %v138_v1 }
 0x1dd   :  { %7321 = vmatprep.subr.bf16.mxu0 %v10553_v17  ;;  %7364 = vmatprep.subr.bf16.mxu1 %v10555_v18  ;;  %v583_v17 = vld [vmem:[#allocation5 + $0x10e0] sm:$0xff]  ;;  %v266_v9 = vld [vmem:[#allocation5 + $0x6f8] sm:$0xff] }
 0x1de   :  { %v6743_v26 = vpop.f32.mrb[24].mxu0  ;;  %v6786_v31 = vpop.f32.mrb[24].mxu1  ;;  %v647_v18 = vld [vmem:[#allocation5 + $0x12e0] sm:$0xff] }
 0x1df   :  { %v6745_v32 = vpop.f32.mrb[25].mxu0  ;;  %v6788_v36 = vpop.f32.mrb[25].mxu1  ;;  %v10428_v30 = vcombine.low %v583_v17, %v647_v18 }
 0x1e0   :  { %v11024_v35 = vpack.c.bf16 %v6745_v32, %v6743_v26  ;;  %v6747_v37 = vpop.f32.mrb[26].mxu0  ;;  %7322 = vmatpush1.bf16.msra.mxu0 %v10552_v23  ;;  %v11025_v38 = vpack.c.bf16 %v6788_v36, %v6786_v31  ;;  %v6790_v39 = vpop.f32.mrb[26].mxu1  ;;  %7365 = vmatpush1.bf16.msra.mxu1 %v10554_v24  ;;  %v10429_v23 = vcombine.high %v583_v17, %v647_v18  ;;  %v775_v26 = vld [vmem:[#allocation5 + $0x16e0] sm:$0xff]  ;;  %v840_v36 = vld [vmem:[#allocation5 + $0x18e8] sm:$0xff]  ;;  %v330_v17 = vld [vmem:[#allocation5 + $0x8f8] sm:$0xff] }
 0x1e1   :  { %v6749_v40 = vpop.f32.mrb[27].mxu0  ;;  %7323 = vmatprep.subr.bf16.mxu0 %v10681_v25  ;;  %v6792_v44 = vpop.f32.mrb[27].mxu1  ;;  %7366 = vmatprep.subr.bf16.mxu1 %v10683_v27  ;;  %v10431_v24 = vcombine.high %v584_v19, %v648_v20  ;;  %v711_v25 = vld [vmem:[#allocation5 + $0x14e0] sm:$0xff]  ;;  %v712_v27 = vld [vmem:[#allocation5 + $0x14e8] sm:$0xff]  ;;  %v10430_v31 = vcombine.low %v584_v19, %v648_v20  ;;  %v394_v18 = vld [vmem:[#allocation5 + $0xaf8] sm:$0xff]  ;;  %v10050_v20 = vcombine.low %v202_v8, %v266_v9 }
 0x1e2   :  { %9725 = vst [vmem:[#allocation7 + $0x60] sm:$0xff] %v11024_v35  ;;  %v11088_v43 = vpack.c.bf16 %v6749_v40, %v6747_v37  ;;  %9726 = vst [vmem:[#allocation7 + $0x68] sm:$0xff] %v11025_v38  ;;  %v11089_v48 = vpack.c.bf16 %v6792_v44, %v6790_v39  ;;  %v10557_v32 = vcombine.high %v711_v25, %v775_v26  ;;  %v903_v35 = vld [vmem:[#allocation5 + $0x1ae0] sm:$0xff]  ;;  %v904_v37 = vld [vmem:[#allocation5 + $0x1ae8] sm:$0xff] }
 0x1e3   :  { %v10559_v33 = vcombine.high %v712_v27, %v776_v29  ;;  %v10558_v38 = vcombine.low %v712_v27, %v776_v29  ;;  %v10685_v39 = vcombine.high %v839_v34, %v903_v35  ;;  %v10686_v55 = vcombine.low %v840_v36, %v904_v37 }
 0x1e4   :  { %9789 = vst [vmem:[#allocation7 + $0x260] sm:$0xff] %v11088_v43  ;;  %7324 = vmatpush1.bf16.msra.mxu0 %v10680_v10  ;;  %9790 = vst [vmem:[#allocation7 + $0x268] sm:$0xff] %v11089_v48  ;;  %7367 = vmatpush1.bf16.msra.mxu1 %v10682_v41  ;;  %v10556_v10 = vcombine.low %v711_v25, %v775_v26  ;;  %v10687_v41 = vcombine.high %v840_v36, %v904_v37  ;;  %v1031_v43 = vld [vmem:[#allocation5 + $0x1ee0] sm:$0xff]  ;;  %v458_v25 = vld [vmem:[#allocation5 + $0xcf8] sm:$0xff] }
 0x1e5   :  { %7325 = vmatprep.subr.bf16.mxu0 %v10809_v42  ;;  %7368 = vmatprep.subr.bf16.mxu1 %v10811_v45  ;;  %v967_v42 = vld [vmem:[#allocation5 + $0x1ce0] sm:$0xff]  ;;  %v522_v26 = vld [vmem:[#allocation5 + $0xef8] sm:$0xff] }
 0x1e6   :  { %v10813_v56 = vcombine.high %v967_v42, %v1031_v43  ;;  %v10812_v2 = vcombine.low %v967_v42, %v1031_v43  ;;  %v10306_v36 = vcombine.low %v458_v25, %v522_v26 }
 0x1e8   :  { %7326 = vmatpush1.bf16.msra.mxu0 %v10808_v51  ;;  %7369 = vmatpush1.bf16.msra.mxu1 %v10810_v52  ;;  %v10684_v51 = vcombine.low %v839_v34, %v903_v35  ;;  %v650_v34 = vld [vmem:[#allocation5 + $0x12f8] sm:$0xff] }
 0x1e9   :  { %7397 = vmatprep.subr.bf16.mxu0 %v9917_v53  ;;  %7440 = vmatprep.subr.bf16.mxu1 %v9919_v54 }
 0x1eb   :  { %7344 = vmatmul.mubr.bf16.vlgmr.msra.gmra.mrb[52].mxu0 %v11323_v22  ;;  %7387 = vmatmul.mubr.bf16.vlgmr.msra.gmra.mrb[52].mxu1 %v11323_v22 }
 0x1ec   :  { %7398 = vmatpush1.bf16.msra.mxu0 %v9916_v59  ;;  %7441 = vmatpush1.bf16.msra.mxu1 %v9918_v60  ;;  %v10815_v59 = vcombine.high %v968_v46, %v1032_v47  ;;  %v73_v60 = vld [vmem:[#allocation5 + $0xf0] sm:$0xff] }
 0x1ed   :  { %7399 = vmatprep.subr.bf16.mxu0 %v10045_v61  ;;  %7442 = vmatprep.subr.bf16.mxu1 %v10047_v62  ;;  %v137_v61 = vld [vmem:[#allocation5 + $0x2f0] sm:$0xff] }
 0x1ee   :  { %7429 = vmatprep.mubr.bf16.mxu0 %v11233_v0  ;;  %7472 = vmatprep.mubr.bf16.mxu1 %v11233_v0  ;;  %v9920_v11 = vcombine.low %v73_v60, %v137_v61  ;;  %v841_v46 = vld [vmem:[#allocation5 + $0x18f0] sm:$0xff] }
 0x1ef   :  { %v905_v47 = vld [vmem:[#allocation5 + $0x1af0] sm:$0xff] }
 0x1f0   :  { %7400 = vmatpush1.bf16.msra.mxu0 %v10044_v4  ;;  %7443 = vmatpush1.bf16.msra.mxu1 %v10046_v5  ;;  %v9921_v4 = vcombine.high %v73_v60, %v137_v61  ;;  %v9923_v5 = vcombine.high %v74_v63, %v138_v1  ;;  %v1034_v60 = vld [vmem:[#allocation5 + $0x1ef8] sm:$0xff]  ;;  %v10688_v1 = vcombine.low %v841_v46, %v905_v47 }
 0x1f1   :  { %7401 = vmatprep.subr.bf16.mxu0 %v10173_v6  ;;  %7444 = vmatprep.subr.bf16.mxu1 %v10175_v7  ;;  %v201_v6 = vld [vmem:[#allocation5 + $0x4f0] sm:$0xff] }
 0x1f2   :  { %v265_v7 = vld [vmem:[#allocation5 + $0x6f0] sm:$0xff] }
 0x1f3   :  { %v10048_v19 = vcombine.low %v201_v6, %v265_v7 }
 0x1f4   :  { %7402 = vmatpush1.bf16.msra.mxu0 %v10172_v13  ;;  %7445 = vmatpush1.bf16.msra.mxu1 %v10174_v14  ;;  %v10049_v13 = vcombine.high %v201_v6, %v265_v7  ;;  %v10051_v14 = vcombine.high %v202_v8, %v266_v9 }
 0x1f5   :  { %7403 = vmatprep.subr.bf16.mxu0 %v10301_v15  ;;  %7446 = vmatprep.subr.bf16.mxu1 %v10303_v16  ;;  %v329_v15 = vld [vmem:[#allocation5 + $0x8f0] sm:$0xff] }
 0x1f6   :  { %v393_v16 = vld [vmem:[#allocation5 + $0xaf0] sm:$0xff] }
 0x1f7   :  { %v10176_v27 = vcombine.low %v329_v15, %v393_v16 }
 0x1f8   :  { %7404 = vmatpush1.bf16.msra.mxu0 %v10300_v28  ;;  %7447 = vmatpush1.bf16.msra.mxu1 %v10302_v21  ;;  %v10177_v28 = vcombine.high %v329_v15, %v393_v16  ;;  %v10179_v21 = vcombine.high %v330_v17, %v394_v18  ;;  %v140_v15 = vld [vmem:[#allocation5 + $0x308] sm:$0xff] }
 0x1f9   :  { %7405 = vmatprep.subr.bf16.mxu0 %v10429_v23  ;;  %7448 = vmatprep.subr.bf16.mxu1 %v10431_v24  ;;  %v457_v23 = vld [vmem:[#allocation5 + $0xcf0] sm:$0xff] }
 0x1fa   :  { %v521_v24 = vld [vmem:[#allocation5 + $0xef0] sm:$0xff] }
 0x1fb   :  { %v10305_v29 = vcombine.high %v457_v23, %v521_v24  ;;  %v10304_v35 = vcombine.low %v457_v23, %v521_v24  ;;  %v268_v23 = vld [vmem:[#allocation5 + $0x708] sm:$0xff] }
 0x1fc   :  { %7406 = vmatpush1.bf16.msra.mxu0 %v10428_v30  ;;  %7449 = vmatpush1.bf16.msra.mxu1 %v10430_v31  ;;  %v10307_v30 = vcombine.high %v458_v25, %v522_v26  ;;  %v585_v31 = vld [vmem:[#allocation5 + $0x10f0] sm:$0xff] }
 0x1fd   :  { %7407 = vmatprep.subr.bf16.mxu0 %v10557_v32  ;;  %7450 = vmatprep.subr.bf16.mxu1 %v10559_v33  ;;  %v649_v32 = vld [vmem:[#allocation5 + $0x12f0] sm:$0xff]  ;;  %v586_v33 = vld [vmem:[#allocation5 + $0x10f8] sm:$0xff] }
 0x1fe   :  { %v6829_v40 = vpop.f32.mrb[28].mxu0  ;;  %v6872_v44 = vpop.f32.mrb[28].mxu1  ;;  %v10433_v37 = vcombine.high %v585_v31, %v649_v32  ;;  %v10432_v42 = vcombine.low %v585_v31, %v649_v32  ;;  %v10434_v43 = vcombine.low %v586_v33, %v650_v34  ;;  %v332_v31 = vld [vmem:[#allocation5 + $0x908] sm:$0xff] }
 0x1ff   :  { %v6831_v45 = vpop.f32.mrb[29].mxu0  ;;  %v6874_v49 = vpop.f32.mrb[29].mxu1  ;;  %v396_v32 = vld [vmem:[#allocation5 + $0xb08] sm:$0xff] }
 0x200   :  { %v11026_v48 = vpack.c.bf16 %v6831_v45, %v6829_v40  ;;  %v6833_v50 = vpop.f32.mrb[30].mxu0  ;;  %7408 = vmatpush1.bf16.msra.mxu0 %v10556_v10  ;;  %v11027_v52 = vpack.c.bf16 %v6874_v49, %v6872_v44  ;;  %v6876_v53 = vpop.f32.mrb[30].mxu1  ;;  %7451 = vmatpush1.bf16.msra.mxu1 %v10558_v38  ;;  %v10435_v10 = vcombine.high %v586_v33, %v650_v34  ;;  %v713_v38 = vld [vmem:[#allocation5 + $0x14f0] sm:$0xff]  ;;  %v714_v40 = vld [vmem:[#allocation5 + $0x14f8] sm:$0xff] }
 0x201   :  { %v6835_v54 = vpop.f32.mrb[31].mxu0  ;;  %7409 = vmatprep.subr.bf16.mxu0 %v10685_v39  ;;  %v6878_v58 = vpop.f32.mrb[31].mxu1  ;;  %7452 = vmatprep.subr.bf16.mxu1 %v10687_v41  ;;  %v777_v39 = vld [vmem:[#allocation5 + $0x16f0] sm:$0xff]  ;;  %v778_v41 = vld [vmem:[#allocation5 + $0x16f8] sm:$0xff] }
 0x202   :  { %9727 = vst [vmem:[#allocation7 + $0x70] sm:$0xff] %v11026_v48  ;;  %v11090_v57 = vpack.c.bf16 %v6835_v54, %v6833_v50  ;;  %9728 = vst [vmem:[#allocation7 + $0x78] sm:$0xff] %v11027_v52  ;;  %v11091_v62 = vpack.c.bf16 %v6878_v58, %v6876_v53  ;;  %v10561_v44 = vcombine.high %v713_v38, %v777_v39  ;;  %v842_v48 = vld [vmem:[#allocation5 + $0x18f8] sm:$0xff] }
 0x203   :  { %v10563_v45 = vcombine.high %v714_v40, %v778_v41  ;;  %v906_v49 = vld [vmem:[#allocation5 + $0x1af8] sm:$0xff]  ;;  %v10560_v50 = vcombine.low %v713_v38, %v777_v39  ;;  %v10689_v52 = vcombine.high %v841_v46, %v905_v47  ;;  %v460_v38 = vld [vmem:[#allocation5 + $0xd08] sm:$0xff] }
 0x204   :  { %9791 = vst [vmem:[#allocation7 + $0x270] sm:$0xff] %v11090_v57  ;;  %7410 = vmatpush1.bf16.msra.mxu0 %v10684_v51  ;;  %9792 = vst [vmem:[#allocation7 + $0x278] sm:$0xff] %v11091_v62  ;;  %7453 = vmatpush1.bf16.msra.mxu1 %v10686_v55  ;;  %v10562_v51 = vcombine.low %v714_v40, %v778_v41  ;;  %v10691_v54 = vcombine.high %v842_v48, %v906_v49  ;;  %v969_v55 = vld [vmem:[#allocation5 + $0x1cf0] sm:$0xff]  ;;  %v524_v39 = vld [vmem:[#allocation5 + $0xf08] sm:$0xff] }
 0x205   :  { %7411 = vmatprep.subr.bf16.mxu0 %v10813_v56  ;;  %7454 = vmatprep.subr.bf16.mxu1 %v10815_v59  ;;  %v1033_v56 = vld [vmem:[#allocation5 + $0x1ef0] sm:$0xff]  ;;  %v970_v59 = vld [vmem:[#allocation5 + $0x1cf8] sm:$0xff]  ;;  %v10182_v41 = vcombine.low %v332_v31, %v396_v32  ;;  %v588_v46 = vld [vmem:[#allocation5 + $0x1108] sm:$0xff] }
 0x206   :  { %v10817_v6 = vcombine.high %v969_v55, %v1033_v56  ;;  %v10819_v9 = vcombine.high %v970_v59, %v1034_v60  ;;  %v10816_v16 = vcombine.low %v969_v55, %v1033_v56  ;;  %v652_v47 = vld [vmem:[#allocation5 + $0x1308] sm:$0xff] }
 0x207   :  { %v780_v55 = vld [vmem:[#allocation5 + $0x1708] sm:$0xff] }
 0x208   :  { %7412 = vmatpush1.bf16.msra.mxu0 %v10812_v2  ;;  %7455 = vmatpush1.bf16.msra.mxu1 %v10814_v3 }
 0x209   :  { %7483 = vmatprep.subr.bf16.mxu0 %v9921_v4  ;;  %7526 = vmatprep.subr.bf16.mxu1 %v9923_v5  ;;  %v10690_v5 = vcombine.low %v842_v48, %v906_v49  ;;  %v10310_v49 = vcombine.low %v460_v38, %v524_v39 }
 0x20b   :  { %7430 = vmatmul.mubr.bf16.vlgmr.msra.gmra.mrb[56].mxu0 %v11323_v22  ;;  %7473 = vmatmul.mubr.bf16.vlgmr.msra.gmra.mrb[56].mxu1 %v11323_v22  ;;  %v10178_v22 = vcombine.low %v330_v17, %v394_v18  ;;  %v10818_v17 = vcombine.low %v970_v59, %v1034_v60  ;;  %v843_v60 = vld [vmem:[#allocation5 + $0x1900] sm:$0xff] }
 0x20c   :  { %7484 = vmatpush1.bf16.msra.mxu0 %v9920_v11  ;;  %7527 = vmatpush1.bf16.msra.mxu1 %v9922_v12  ;;  %v75_v11 = vld [vmem:[#allocation5 + $0x100] sm:$0xff] }
 0x20d   :  { %7485 = vmatprep.subr.bf16.mxu0 %v10049_v13  ;;  %7528 = vmatprep.subr.bf16.mxu1 %v10051_v14  ;;  %v139_v12 = vld [vmem:[#allocation5 + $0x300] sm:$0xff]  ;;  %v76_v14 = vld [vmem:[#allocation5 + $0x108] sm:$0xff] }
 0x20e   :  { %7515 = vmatprep.mubr.bf16.mxu0 %v11233_v0  ;;  %7558 = vmatprep.mubr.bf16.mxu1 %v11233_v0  ;;  %v9925_v18 = vcombine.high %v75_v11, %v139_v12  ;;  %v9924_v24 = vcombine.low %v75_v11, %v139_v12  ;;  %v9926_v25 = vcombine.low %v76_v14, %v140_v15  ;;  %v972_v11 = vld [vmem:[#allocation5 + $0x1d08] sm:$0xff] }
 0x20f   :  { %v1036_v12 = vld [vmem:[#allocation5 + $0x1f08] sm:$0xff] }
 0x210   :  { %7486 = vmatpush1.bf16.msra.mxu0 %v10048_v19  ;;  %7529 = vmatpush1.bf16.msra.mxu1 %v10050_v20  ;;  %v9927_v19 = vcombine.high %v76_v14, %v140_v15  ;;  %v203_v20 = vld [vmem:[#allocation5 + $0x500] sm:$0xff] }
 0x211   :  { %7487 = vmatprep.subr.bf16.mxu0 %v10177_v28  ;;  %7530 = vmatprep.subr.bf16.mxu1 %v10179_v21  ;;  %v267_v28 = vld [vmem:[#allocation5 + $0x700] sm:$0xff]  ;;  %v204_v21 = vld [vmem:[#allocation5 + $0x508] sm:$0xff] }
 0x212   :  { %v10053_v26 = vcombine.high %v203_v20, %v267_v28  ;;  %v10052_v33 = vcombine.low %v203_v20, %v267_v28  ;;  %v10054_v34 = vcombine.low %v204_v21, %v268_v23 }
 0x214   :  { %7488 = vmatpush1.bf16.msra.mxu0 %v10176_v27  ;;  %7531 = vmatpush1.bf16.msra.mxu1 %v10178_v22  ;;  %v10055_v27 = vcombine.high %v204_v21, %v268_v23  ;;  %v331_v22 = vld [vmem:[#allocation5 + $0x900] sm:$0xff] }
 0x215   :  { %7489 = vmatprep.subr.bf16.mxu0 %v10305_v29  ;;  %7532 = vmatprep.subr.bf16.mxu1 %v10307_v30  ;;  %v395_v29 = vld [vmem:[#allocation5 + $0xb00] sm:$0xff]  ;;  %v11345_v30 = vld [vmem:[#allocation2] sm:$0xff]  }
 0x216   :  { %v10180_v40 = vcombine.low %v331_v22, %v395_v29 }
 0x218   :  { %7490 = vmatpush1.bf16.msra.mxu0 %v10304_v35  ;;  %7533 = vmatpush1.bf16.msra.mxu1 %v10306_v36  ;;  %v10181_v35 = vcombine.high %v331_v22, %v395_v29  ;;  %v10183_v36 = vcombine.high %v332_v31, %v396_v32  ;;  %v78_v22 = vld [vmem:[#allocation5 + $0x118] sm:$0xff]  ;;  %v10822_v32 = vcombine.low %v972_v11, %v1036_v12 }
 0x219   :  { %7491 = vmatprep.subr.bf16.mxu0 %v10433_v37  ;;  %7534 = vmatprep.subr.bf16.mxu1 %v10435_v10  ;;  %v459_v37 = vld [vmem:[#allocation5 + $0xd00] sm:$0xff]  ;;  %v142_v29 = vld [vmem:[#allocation5 + $0x318] sm:$0xff] }
 0x21a   :  { %v523_v10 = vld [vmem:[#allocation5 + $0xf00] sm:$0xff] }
 0x21b   :  { %v10308_v48 = vcombine.low %v459_v37, %v523_v10 }
 0x21c   :  { %7492 = vmatpush1.bf16.msra.mxu0 %v10432_v42  ;;  %7535 = vmatpush1.bf16.msra.mxu1 %v10434_v43  ;;  %v10309_v42 = vcombine.high %v459_v37, %v523_v10  ;;  %v10311_v43 = vcombine.high %v460_v38, %v524_v39  ;;  %v206_v37 = vld [vmem:[#allocation5 + $0x518] sm:$0xff]  ;;  %v9930_v39 = vcombine.low %v78_v22, %v142_v29 }
 0x21d   :  { %7493 = vmatprep.subr.bf16.mxu0 %v10561_v44  ;;  %7536 = vmatprep.subr.bf16.mxu1 %v10563_v45  ;;  %v587_v44 = vld [vmem:[#allocation5 + $0x1100] sm:$0xff]  ;;  %v270_v10 = vld [vmem:[#allocation5 + $0x718] sm:$0xff] }
 0x21e   :  { %v6915_v53 = vpop.f32.mrb[32].mxu0  ;;  %v6958_v57 = vpop.f32.mrb[32].mxu1  ;;  %v651_v45 = vld [vmem:[#allocation5 + $0x1300] sm:$0xff] }
 0x21f   :  { %v6917_v58 = vpop.f32.mrb[33].mxu0  ;;  %v6960_v62 = vpop.f32.mrb[33].mxu1  ;;  %v10436_v56 = vcombine.low %v587_v44, %v651_v45 }
 0x220   :  { %v11028_v61 = vpack.c.bf16 %v6917_v58, %v6915_v53  ;;  %v6919_v63 = vpop.f32.mrb[34].mxu0  ;;  %7494 = vmatpush1.bf16.msra.mxu0 %v10560_v50  ;;  %v11029_v2 = vpack.c.bf16 %v6960_v62, %v6958_v57  ;;  %v6962_v3 = vpop.f32.mrb[34].mxu1  ;;  %7537 = vmatpush1.bf16.msra.mxu1 %v10562_v51  ;;  %v10437_v50 = vcombine.high %v587_v44, %v651_v45  ;;  %v779_v53 = vld [vmem:[#allocation5 + $0x1700] sm:$0xff]  ;;  %v844_v62 = vld [vmem:[#allocation5 + $0x1908] sm:$0xff]  ;;  %v334_v44 = vld [vmem:[#allocation5 + $0x918] sm:$0xff] }
 0x221   :  { %v6921_v4 = vpop.f32.mrb[35].mxu0  ;;  %7495 = vmatprep.subr.bf16.mxu0 %v10689_v52  ;;  %v6964_v8 = vpop.f32.mrb[35].mxu1  ;;  %7538 = vmatprep.subr.bf16.mxu1 %v10691_v54  ;;  %v10439_v51 = vcombine.high %v588_v46, %v652_v47  ;;  %v715_v52 = vld [vmem:[#allocation5 + $0x1500] sm:$0xff]  ;;  %v716_v54 = vld [vmem:[#allocation5 + $0x1508] sm:$0xff]  ;;  %v10438_v57 = vcombine.low %v588_v46, %v652_v47  ;;  %v398_v45 = vld [vmem:[#allocation5 + $0xb18] sm:$0xff]  ;;  %v10058_v47 = vcombine.low %v206_v37, %v270_v10 }
 0x222   :  { %9729 = vst [vmem:[#allocation7 + $0x80] sm:$0xff] %v11028_v61  ;;  %v11092_v7 = vpack.c.bf16 %v6921_v4, %v6919_v63  ;;  %9730 = vst [vmem:[#allocation7 + $0x88] sm:$0xff] %v11029_v2  ;;  %v11093_v13 = vpack.c.bf16 %v6964_v8, %v6962_v3  ;;  %v10565_v58 = vcombine.high %v715_v52, %v779_v53  ;;  %v907_v61 = vld [vmem:[#allocation5 + $0x1b00] sm:$0xff]  ;;  %v908_v63 = vld [vmem:[#allocation5 + $0x1b08] sm:$0xff] }
 0x223   :  { %v10567_v59 = vcombine.high %v716_v54, %v780_v55  ;;  %v10566_v2 = vcombine.low %v716_v54, %v780_v55  ;;  %v10693_v3 = vcombine.high %v843_v60, %v907_v61  ;;  %v10694_v20 = vcombine.low %v844_v62, %v908_v63 }
 0x224   :  { %9793 = vst [vmem:[#allocation7 + $0x280] sm:$0xff] %v11092_v7  ;;  %7496 = vmatpush1.bf16.msra.mxu0 %v10688_v1  ;;  %9794 = vst [vmem:[#allocation7 + $0x288] sm:$0xff] %v11093_v13  ;;  %7539 = vmatpush1.bf16.msra.mxu1 %v10690_v5  ;;  %v10564_v1 = vcombine.low %v715_v52, %v779_v53  ;;  %v10695_v5 = vcombine.high %v844_v62, %v908_v63  ;;  %v1035_v7 = vld [vmem:[#allocation5 + $0x1f00] sm:$0xff]  ;;  %v462_v52 = vld [vmem:[#allocation5 + $0xd18] sm:$0xff] }
 0x225   :  { %7497 = vmatprep.subr.bf16.mxu0 %v10817_v6  ;;  %7540 = vmatprep.subr.bf16.mxu1 %v10819_v9  ;;  %v971_v6 = vld [vmem:[#allocation5 + $0x1d00] sm:$0xff]  ;;  %v526_v53 = vld [vmem:[#allocation5 + $0xf18] sm:$0xff]  ;;  %v10186_v55 = vcombine.low %v334_v44, %v398_v45 }
 0x226   :  { %v10821_v28 = vcombine.high %v971_v6, %v1035_v7  ;;  %v10820_v31 = vcombine.low %v971_v6, %v1035_v7  ;;  %v10314_v63 = vcombine.low %v462_v52, %v526_v53  ;;  %v782_v6 = vld [vmem:[#allocation5 + $0x1718] sm:$0xff] }
 0x228   :  { %7498 = vmatpush1.bf16.msra.mxu0 %v10816_v16  ;;  %7541 = vmatpush1.bf16.msra.mxu1 %v10818_v17  ;;  %v10692_v16 = vcombine.low %v843_v60, %v907_v61  ;;  %v590_v60 = vld [vmem:[#allocation5 + $0x1118] sm:$0xff] }
 0x229   :  { %7569 = vmatprep.subr.bf16.mxu0 %v9925_v18  ;;  %7612 = vmatprep.subr.bf16.mxu1 %v9927_v19  ;;  %v654_v61 = vld [vmem:[#allocation5 + $0x1318] sm:$0xff] }
 0x22b   :  { %7516 = vmatmul.mubr.bf16.vlgmr.msra.gmra.mrb[60].mxu0 %v11345_v30  ;;  %7559 = vmatmul.mubr.bf16.vlgmr.msra.gmra.mrb[60].mxu1 %v11345_v30 }
 0x22c   :  { %7570 = vmatpush1.bf16.msra.mxu0 %v9924_v24  ;;  %7613 = vmatpush1.bf16.msra.mxu1 %v9926_v25  ;;  %v10823_v24 = vcombine.high %v972_v11, %v1036_v12  ;;  %v77_v25 = vld [vmem:[#allocation5 + $0x110] sm:$0xff] }
 0x22d   :  { %7571 = vmatprep.subr.bf16.mxu0 %v10053_v26  ;;  %7614 = vmatprep.subr.bf16.mxu1 %v10055_v27  ;;  %v141_v26 = vld [vmem:[#allocation5 + $0x310] sm:$0xff] }
 0x22e   :  { %7601 = vmatprep.mubr.bf16.mxu0 %v11233_v0  ;;  %7644 = vmatprep.mubr.bf16.mxu1 %v11233_v0  ;;  %v9928_v38 = vcombine.low %v77_v25, %v141_v26  ;;  %v845_v12 = vld [vmem:[#allocation5 + $0x1910] sm:$0xff] }
 0x230   :  { %7572 = vmatpush1.bf16.msra.mxu0 %v10052_v33  ;;  %7615 = vmatpush1.bf16.msra.mxu1 %v10054_v34  ;;  %v9929_v33 = vcombine.high %v77_v25, %v141_v26  ;;  %v9931_v34 = vcombine.high %v78_v22, %v142_v29  ;;  %v974_v25 = vld [vmem:[#allocation5 + $0x1d18] sm:$0xff] }
 0x231   :  { %7573 = vmatprep.subr.bf16.mxu0 %v10181_v35  ;;  %7616 = vmatprep.subr.bf16.mxu1 %v10183_v36  ;;  %v205_v35 = vld [vmem:[#allocation5 + $0x510] sm:$0xff]  ;;  %v1038_v26 = vld [vmem:[#allocation5 + $0x1f18] sm:$0xff] }
 0x232   :  { %v269_v36 = vld [vmem:[#allocation5 + $0x710] sm:$0xff] }
 0x233   :  { %v10056_v46 = vcombine.low %v205_v35, %v269_v36 }
 0x234   :  { %7574 = vmatpush1.bf16.msra.mxu0 %v10180_v40  ;;  %7617 = vmatpush1.bf16.msra.mxu1 %v10182_v41  ;;  %v10057_v40 = vcombine.high %v205_v35, %v269_v36  ;;  %v10059_v41 = vcombine.high %v206_v37, %v270_v10 }
 0x235   :  { %7575 = vmatprep.subr.bf16.mxu0 %v10309_v42  ;;  %7618 = vmatprep.subr.bf16.mxu1 %v10311_v43  ;;  %v333_v42 = vld [vmem:[#allocation5 + $0x910] sm:$0xff] }
 0x236   :  { %v397_v43 = vld [vmem:[#allocation5 + $0xb10] sm:$0xff] }
 0x237   :  { %v10184_v54 = vcombine.low %v333_v42, %v397_v43 }
 0x238   :  { %7576 = vmatpush1.bf16.msra.mxu0 %v10308_v48  ;;  %7619 = vmatpush1.bf16.msra.mxu1 %v10310_v49  ;;  %v10185_v48 = vcombine.high %v333_v42, %v397_v43  ;;  %v10187_v49 = vcombine.high %v334_v44, %v398_v45  ;;  %v80_v42 = vld [vmem:[#allocation5 + $0x128] sm:$0xff]  ;;  %v10826_v45 = vcombine.low %v974_v25, %v1038_v26 }
 0x239   :  { %7577 = vmatprep.subr.bf16.mxu0 %v10437_v50  ;;  %7620 = vmatprep.subr.bf16.mxu1 %v10439_v51  ;;  %v461_v50 = vld [vmem:[#allocation5 + $0xd10] sm:$0xff]  ;;  %v144_v43 = vld [vmem:[#allocation5 + $0x328] sm:$0xff] }
 0x23a   :  { %v525_v51 = vld [vmem:[#allocation5 + $0xf10] sm:$0xff] }
 0x23b   :  { %v10312_v62 = vcombine.low %v461_v50, %v525_v51 }
 0x23c   :  { %7578 = vmatpush1.bf16.msra.mxu0 %v10436_v56  ;;  %7621 = vmatpush1.bf16.msra.mxu1 %v10438_v57  ;;  %v10313_v56 = vcombine.high %v461_v50, %v525_v51  ;;  %v10315_v57 = vcombine.high %v462_v52, %v526_v53  ;;  %v208_v50 = vld [vmem:[#allocation5 + $0x528] sm:$0xff]  ;;  %v9934_v53 = vcombine.low %v80_v42, %v144_v43 }
 0x23d   :  { %7579 = vmatprep.subr.bf16.mxu0 %v10565_v58  ;;  %7622 = vmatprep.subr.bf16.mxu1 %v10567_v59  ;;  %v589_v58 = vld [vmem:[#allocation5 + $0x1110] sm:$0xff]  ;;  %v272_v51 = vld [vmem:[#allocation5 + $0x728] sm:$0xff] }
 0x23e   :  { %v7001_v4 = vpop.f32.mrb[36].mxu0  ;;  %v7044_v8 = vpop.f32.mrb[36].mxu1  ;;  %v653_v59 = vld [vmem:[#allocation5 + $0x1310] sm:$0xff] }
 0x23f   :  { %v7003_v9 = vpop.f32.mrb[37].mxu0  ;;  %v7046_v14 = vpop.f32.mrb[37].mxu1  ;;  %v10440_v7 = vcombine.low %v589_v58, %v653_v59 }
 0x240   :  { %v11030_v13 = vpack.c.bf16 %v7003_v9, %v7001_v4  ;;  %v7005_v15 = vpop.f32.mrb[38].mxu0  ;;  %7580 = vmatpush1.bf16.msra.mxu0 %v10564_v1  ;;  %v11031_v17 = vpack.c.bf16 %v7046_v14, %v7044_v8  ;;  %v7048_v18 = vpop.f32.mrb[38].mxu1  ;;  %7623 = vmatpush1.bf16.msra.mxu1 %v10566_v2  ;;  %v10441_v1 = vcombine.high %v589_v58, %v653_v59  ;;  %v781_v4 = vld [vmem:[#allocation5 + $0x1710] sm:$0xff]  ;;  %v846_v14 = vld [vmem:[#allocation5 + $0x1918] sm:$0xff]  ;;  %v336_v58 = vld [vmem:[#allocation5 + $0x928] sm:$0xff] }
 0x241   :  { %v7007_v19 = vpop.f32.mrb[39].mxu0  ;;  %7581 = vmatprep.subr.bf16.mxu0 %v10693_v3  ;;  %v7050_v23 = vpop.f32.mrb[39].mxu1  ;;  %7624 = vmatprep.subr.bf16.mxu1 %v10695_v5  ;;  %v10443_v2 = vcombine.high %v590_v60, %v654_v61  ;;  %v717_v3 = vld [vmem:[#allocation5 + $0x1510] sm:$0xff]  ;;  %v718_v5 = vld [vmem:[#allocation5 + $0x1518] sm:$0xff]  ;;  %v10442_v8 = vcombine.low %v590_v60, %v654_v61  ;;  %v400_v59 = vld [vmem:[#allocation5 + $0xb28] sm:$0xff]  ;;  %v10062_v61 = vcombine.low %v208_v50, %v272_v51 }
 0x242   :  { %9731 = vst [vmem:[#allocation7 + $0x90] sm:$0xff] %v11030_v13  ;;  %v11094_v21 = vpack.c.bf16 %v7007_v19, %v7005_v15  ;;  %9732 = vst [vmem:[#allocation7 + $0x98] sm:$0xff] %v11031_v17  ;;  %v11095_v27 = vpack.c.bf16 %v7050_v23, %v7048_v18  ;;  %v10569_v9 = vcombine.high %v717_v3, %v781_v4  ;;  %v909_v13 = vld [vmem:[#allocation5 + $0x1b10] sm:$0xff]  ;;  %v910_v15 = vld [vmem:[#allocation5 + $0x1b18] sm:$0xff] }
 0x243   :  { %v10571_v11 = vcombine.high %v718_v5, %v782_v6  ;;  %v10570_v17 = vcombine.low %v718_v5, %v782_v6  ;;  %v10697_v18 = vcombine.high %v845_v12, %v909_v13  ;;  %v10698_v35 = vcombine.low %v846_v14, %v910_v15 }
 0x244   :  { %9795 = vst [vmem:[#allocation7 + $0x290] sm:$0xff] %v11094_v21  ;;  %7582 = vmatpush1.bf16.msra.mxu0 %v10692_v16  ;;  %9796 = vst [vmem:[#allocation7 + $0x298] sm:$0xff] %v11095_v27  ;;  %7625 = vmatpush1.bf16.msra.mxu1 %v10694_v20  ;;  %v10568_v16 = vcombine.low %v717_v3, %v781_v4  ;;  %v10699_v20 = vcombine.high %v846_v14, %v910_v15  ;;  %v1037_v21 = vld [vmem:[#allocation5 + $0x1f10] sm:$0xff]  ;;  %v464_v3 = vld [vmem:[#allocation5 + $0xd28] sm:$0xff] }
 0x245   :  { %7583 = vmatprep.subr.bf16.mxu0 %v10821_v28  ;;  %7626 = vmatprep.subr.bf16.mxu1 %v10823_v24  ;;  %v973_v28 = vld [vmem:[#allocation5 + $0x1d10] sm:$0xff]  ;;  %v528_v4 = vld [vmem:[#allocation5 + $0xf28] sm:$0xff]  ;;  %v10190_v6 = vcombine.low %v336_v58, %v400_v59 }
 0x246   :  { %v10825_v36 = vcombine.high %v973_v28, %v1037_v21  ;;  %v10824_v44 = vcombine.low %v973_v28, %v1037_v21  ;;  %v10318_v15 = vcombine.low %v464_v3, %v528_v4  ;;  %v784_v28 = vld [vmem:[#allocation5 + $0x1728] sm:$0xff] }
 0x248   :  { %7584 = vmatpush1.bf16.msra.mxu0 %v10820_v31  ;;  %7627 = vmatpush1.bf16.msra.mxu1 %v10822_v32  ;;  %v10696_v31 = vcombine.low %v845_v12, %v909_v13  ;;  %v592_v12 = vld [vmem:[#allocation5 + $0x1128] sm:$0xff] }
 0x249   :  { %7655 = vmatprep.subr.bf16.mxu0 %v9929_v33  ;;  %7698 = vmatprep.subr.bf16.mxu1 %v9931_v34  ;;  %v656_v13 = vld [vmem:[#allocation5 + $0x1328] sm:$0xff] }
 0x24b   :  { %7602 = vmatmul.mubr.bf16.vlgmr.msra.gmra.mrb[64].mxu0 %v11345_v30  ;;  %7645 = vmatmul.mubr.bf16.vlgmr.msra.gmra.mrb[64].mxu1 %v11345_v30 }
 0x24c   :  { %7656 = vmatpush1.bf16.msra.mxu0 %v9928_v38  ;;  %7699 = vmatpush1.bf16.msra.mxu1 %v9930_v39  ;;  %v10827_v38 = vcombine.high %v974_v25, %v1038_v26  ;;  %v79_v39 = vld [vmem:[#allocation5 + $0x120] sm:$0xff] }
 0x24d   :  { %7657 = vmatprep.subr.bf16.mxu0 %v10057_v40  ;;  %7700 = vmatprep.subr.bf16.mxu1 %v10059_v41  ;;  %v143_v40 = vld [vmem:[#allocation5 + $0x320] sm:$0xff] }
 0x24e   :  { %7687 = vmatprep.mubr.bf16.mxu0 %v11233_v0  ;;  %7730 = vmatprep.mubr.bf16.mxu1 %v11233_v0  ;;  %v9932_v52 = vcombine.low %v79_v39, %v143_v40  ;;  %v847_v26 = vld [vmem:[#allocation5 + $0x1920] sm:$0xff] }
 0x250   :  { %7658 = vmatpush1.bf16.msra.mxu0 %v10056_v46  ;;  %7701 = vmatpush1.bf16.msra.mxu1 %v10058_v47  ;;  %v9933_v46 = vcombine.high %v79_v39, %v143_v40  ;;  %v9935_v47 = vcombine.high %v80_v42, %v144_v43  ;;  %v976_v39 = vld [vmem:[#allocation5 + $0x1d28] sm:$0xff] }
 0x251   :  { %7659 = vmatprep.subr.bf16.mxu0 %v10185_v48  ;;  %7702 = vmatprep.subr.bf16.mxu1 %v10187_v49  ;;  %v207_v48 = vld [vmem:[#allocation5 + $0x520] sm:$0xff]  ;;  %v1040_v40 = vld [vmem:[#allocation5 + $0x1f28] sm:$0xff] }
 0x252   :  { %v271_v49 = vld [vmem:[#allocation5 + $0x720] sm:$0xff] }
 0x253   :  { %v10060_v60 = vcombine.low %v207_v48, %v271_v49 }
 0x254   :  { %7660 = vmatpush1.bf16.msra.mxu0 %v10184_v54  ;;  %7703 = vmatpush1.bf16.msra.mxu1 %v10186_v55  ;;  %v10061_v54 = vcombine.high %v207_v48, %v271_v49  ;;  %v10063_v55 = vcombine.high %v208_v50, %v272_v51 }
 0x255   :  { %7661 = vmatprep.subr.bf16.mxu0 %v10313_v56  ;;  %7704 = vmatprep.subr.bf16.mxu1 %v10315_v57  ;;  %v335_v56 = vld [vmem:[#allocation5 + $0x920] sm:$0xff] }
 0x256   :  { %v399_v57 = vld [vmem:[#allocation5 + $0xb20] sm:$0xff] }
 0x257   :  { %v10188_v5 = vcombine.low %v335_v56, %v399_v57 }
 0x258   :  { %7662 = vmatpush1.bf16.msra.mxu0 %v10312_v62  ;;  %7705 = vmatpush1.bf16.msra.mxu1 %v10314_v63  ;;  %v10189_v62 = vcombine.high %v335_v56, %v399_v57  ;;  %v10191_v63 = vcombine.high %v336_v58, %v400_v59  ;;  %v82_v56 = vld [vmem:[#allocation5 + $0x138] sm:$0xff]  ;;  %v10830_v59 = vcombine.low %v976_v39, %v1040_v40 }
 0x259   :  { %7663 = vmatprep.subr.bf16.mxu0 %v10441_v1  ;;  %7706 = vmatprep.subr.bf16.mxu1 %v10443_v2  ;;  %v463_v1 = vld [vmem:[#allocation5 + $0xd20] sm:$0xff]  ;;  %v146_v57 = vld [vmem:[#allocation5 + $0x338] sm:$0xff] }
 0x25a   :  { %v527_v2 = vld [vmem:[#allocation5 + $0xf20] sm:$0xff] }
 0x25b   :  { %v10316_v14 = vcombine.low %v463_v1, %v527_v2 }
 0x25c   :  { %7664 = vmatpush1.bf16.msra.mxu0 %v10440_v7  ;;  %7707 = vmatpush1.bf16.msra.mxu1 %v10442_v8  ;;  %v10317_v7 = vcombine.high %v463_v1, %v527_v2  ;;  %v10319_v8 = vcombine.high %v464_v3, %v528_v4  ;;  %v210_v1 = vld [vmem:[#allocation5 + $0x538] sm:$0xff]  ;;  %v9938_v4 = vcombine.low %v82_v56, %v146_v57 }
 0x25d   :  { %7665 = vmatprep.subr.bf16.mxu0 %v10569_v9  ;;  %7708 = vmatprep.subr.bf16.mxu1 %v10571_v11  ;;  %v591_v9 = vld [vmem:[#allocation5 + $0x1120] sm:$0xff]  ;;  %v274_v2 = vld [vmem:[#allocation5 + $0x738] sm:$0xff] }
 0x25e   :  { %v7087_v19 = vpop.f32.mrb[40].mxu0  ;;  %v7130_v23 = vpop.f32.mrb[40].mxu1  ;;  %v655_v11 = vld [vmem:[#allocation5 + $0x1320] sm:$0xff] }
 0x25f   :  { %v7089_v24 = vpop.f32.mrb[41].mxu0  ;;  %v7132_v22 = vpop.f32.mrb[41].mxu1  ;;  %v10444_v21 = vcombine.low %v591_v9, %v655_v11 }
 0x260   :  { %v11032_v27 = vpack.c.bf16 %v7089_v24, %v7087_v19  ;;  %v7091_v29 = vpop.f32.mrb[42].mxu0  ;;  %7666 = vmatpush1.bf16.msra.mxu0 %v10568_v16  ;;  %v11033_v32 = vpack.c.bf16 %v7132_v22, %v7130_v23  ;;  %v7134_v33 = vpop.f32.mrb[42].mxu1  ;;  %7709 = vmatpush1.bf16.msra.mxu1 %v10570_v17  ;;  %v10445_v16 = vcombine.high %v591_v9, %v655_v11  ;;  %v783_v19 = vld [vmem:[#allocation5 + $0x1720] sm:$0xff]  ;;  %v848_v22 = vld [vmem:[#allocation5 + $0x1928] sm:$0xff]  ;;  %v338_v9 = vld [vmem:[#allocation5 + $0x938] sm:$0xff] }
 0x261   :  { %v7093_v34 = vpop.f32.mrb[43].mxu0  ;;  %7667 = vmatprep.subr.bf16.mxu0 %v10697_v18  ;;  %v7136_v10 = vpop.f32.mrb[43].mxu1  ;;  %7710 = vmatprep.subr.bf16.mxu1 %v10699_v20  ;;  %v10447_v17 = vcombine.high %v592_v12, %v656_v13  ;;  %v719_v18 = vld [vmem:[#allocation5 + $0x1520] sm:$0xff]  ;;  %v720_v20 = vld [vmem:[#allocation5 + $0x1528] sm:$0xff]  ;;  %v10446_v23 = vcombine.low %v592_v12, %v656_v13  ;;  %v402_v11 = vld [vmem:[#allocation5 + $0xb38] sm:$0xff]  ;;  %v10066_v13 = vcombine.low %v210_v1, %v274_v2 }
 0x262   :  { %9733 = vst [vmem:[#allocation7 + $0xa0] sm:$0xff] %v11032_v27  ;;  %v11096_v37 = vpack.c.bf16 %v7093_v34, %v7091_v29  ;;  %9734 = vst [vmem:[#allocation7 + $0xa8] sm:$0xff] %v11033_v32  ;;  %v11097_v41 = vpack.c.bf16 %v7136_v10, %v7134_v33  ;;  %v10573_v24 = vcombine.high %v719_v18, %v783_v19  ;;  %v911_v27 = vld [vmem:[#allocation5 + $0x1b20] sm:$0xff]  ;;  %v912_v29 = vld [vmem:[#allocation5 + $0x1b28] sm:$0xff] }
 0x263   :  { %v10575_v25 = vcombine.high %v720_v20, %v784_v28  ;;  %v10574_v32 = vcombine.low %v720_v20, %v784_v28  ;;  %v10701_v33 = vcombine.high %v847_v26, %v911_v27  ;;  %v10702_v48 = vcombine.low %v848_v22, %v912_v29 }
 0x264   :  { %9797 = vst [vmem:[#allocation7 + $0x2a0] sm:$0xff] %v11096_v37  ;;  %7668 = vmatpush1.bf16.msra.mxu0 %v10696_v31  ;;  %9798 = vst [vmem:[#allocation7 + $0x2a8] sm:$0xff] %v11097_v41  ;;  %7711 = vmatpush1.bf16.msra.mxu1 %v10698_v35  ;;  %v10572_v31 = vcombine.low %v719_v18, %v783_v19  ;;  %v10703_v35 = vcombine.high %v848_v22, %v912_v29  ;;  %v1039_v37 = vld [vmem:[#allocation5 + $0x1f20] sm:$0xff]  ;;  %v466_v18 = vld [vmem:[#allocation5 + $0xd38] sm:$0xff] }
 0x265   :  { %7669 = vmatprep.subr.bf16.mxu0 %v10825_v36  ;;  %7712 = vmatprep.subr.bf16.mxu1 %v10827_v38  ;;  %v975_v36 = vld [vmem:[#allocation5 + $0x1d20] sm:$0xff]  ;;  %v530_v19 = vld [vmem:[#allocation5 + $0xf38] sm:$0xff]  ;;  %v10194_v28 = vcombine.low %v338_v9, %v402_v11 }
 0x266   :  { %v10829_v49 = vcombine.high %v975_v36, %v1039_v37  ;;  %v10828_v58 = vcombine.low %v975_v36, %v1039_v37  ;;  %v10322_v29 = vcombine.low %v466_v18, %v530_v19  ;;  %v786_v36 = vld [vmem:[#allocation5 + $0x1738] sm:$0xff] }
 0x268   :  { %7670 = vmatpush1.bf16.msra.mxu0 %v10824_v44  ;;  %7713 = vmatpush1.bf16.msra.mxu1 %v10826_v45  ;;  %v10700_v44 = vcombine.low %v847_v26, %v911_v27  ;;  %v594_v26 = vld [vmem:[#allocation5 + $0x1138] sm:$0xff] }
 0x269   :  { %7741 = vmatprep.subr.bf16.mxu0 %v9933_v46  ;;  %7784 = vmatprep.subr.bf16.mxu1 %v9935_v47  ;;  %v658_v27 = vld [vmem:[#allocation5 + $0x1338] sm:$0xff] }
 0x26b   :  { %7688 = vmatmul.mubr.bf16.vlgmr.msra.gmra.mrb[68].mxu0 %v11345_v30  ;;  %7731 = vmatmul.mubr.bf16.vlgmr.msra.gmra.mrb[68].mxu1 %v11345_v30 }
 0x26c   :  { %7742 = vmatpush1.bf16.msra.mxu0 %v9932_v52  ;;  %7785 = vmatpush1.bf16.msra.mxu1 %v9934_v53  ;;  %v10831_v52 = vcombine.high %v976_v39, %v1040_v40  ;;  %v81_v53 = vld [vmem:[#allocation5 + $0x130] sm:$0xff] }
 0x26d   :  { %7743 = vmatprep.subr.bf16.mxu0 %v10061_v54  ;;  %7786 = vmatprep.subr.bf16.mxu1 %v10063_v55  ;;  %v145_v54 = vld [vmem:[#allocation5 + $0x330] sm:$0xff] }
 0x26e   :  { %7773 = vmatprep.mubr.bf16.mxu0 %v11233_v0  ;;  %7816 = vmatprep.mubr.bf16.mxu1 %v11233_v0  ;;  %v9936_v3 = vcombine.low %v81_v53, %v145_v54  ;;  %v849_v40 = vld [vmem:[#allocation5 + $0x1930] sm:$0xff] }
 0x270   :  { %7744 = vmatpush1.bf16.msra.mxu0 %v10060_v60  ;;  %7787 = vmatpush1.bf16.msra.mxu1 %v10062_v61  ;;  %v9937_v60 = vcombine.high %v81_v53, %v145_v54  ;;  %v9939_v61 = vcombine.high %v82_v56, %v146_v57  ;;  %v978_v53 = vld [vmem:[#allocation5 + $0x1d38] sm:$0xff] }
 0x271   :  { %7745 = vmatprep.subr.bf16.mxu0 %v10189_v62  ;;  %7788 = vmatprep.subr.bf16.mxu1 %v10191_v63  ;;  %v209_v62 = vld [vmem:[#allocation5 + $0x530] sm:$0xff]  ;;  %v1042_v54 = vld [vmem:[#allocation5 + $0x1f38] sm:$0xff] }
 0x272   :  { %v273_v63 = vld [vmem:[#allocation5 + $0x730] sm:$0xff] }
 0x273   :  { %v10064_v12 = vcombine.low %v209_v62, %v273_v63 }
 0x274   :  { %7746 = vmatpush1.bf16.msra.mxu0 %v10188_v5  ;;  %7789 = vmatpush1.bf16.msra.mxu1 %v10190_v6  ;;  %v10065_v5 = vcombine.high %v209_v62, %v273_v63  ;;  %v10067_v6 = vcombine.high %v210_v1, %v274_v2 }
 0x275   :  { %7747 = vmatprep.subr.bf16.mxu0 %v10317_v7  ;;  %7790 = vmatprep.subr.bf16.mxu1 %v10319_v8  ;;  %v337_v7 = vld [vmem:[#allocation5 + $0x930] sm:$0xff] }
 0x276   :  { %v401_v8 = vld [vmem:[#allocation5 + $0xb30] sm:$0xff] }
 0x277   :  { %v10192_v20 = vcombine.low %v337_v7, %v401_v8 }
 0x278   :  { %7748 = vmatpush1.bf16.msra.mxu0 %v10316_v14  ;;  %7791 = vmatpush1.bf16.msra.mxu1 %v10318_v15  ;;  %v10193_v14 = vcombine.high %v337_v7, %v401_v8  ;;  %v10195_v15 = vcombine.high %v338_v9, %v402_v11  ;;  %v84_v7 = vld [vmem:[#allocation5 + $0x148] sm:$0xff]  ;;  %v10834_v11 = vcombine.low %v978_v53, %v1042_v54 }
 0x279   :  { %7749 = vmatprep.subr.bf16.mxu0 %v10445_v16  ;;  %7792 = vmatprep.subr.bf16.mxu1 %v10447_v17  ;;  %v465_v16 = vld [vmem:[#allocation5 + $0xd30] sm:$0xff]  ;;  %v148_v8 = vld [vmem:[#allocation5 + $0x348] sm:$0xff] }
 0x27a   :  { %v529_v17 = vld [vmem:[#allocation5 + $0xf30] sm:$0xff] }
 0x27b   :  { %v10320_v22 = vcombine.low %v465_v16, %v529_v17 }
 0x27c   :  { %7750 = vmatpush1.bf16.msra.mxu0 %v10444_v21  ;;  %7793 = vmatpush1.bf16.msra.mxu1 %v10446_v23  ;;  %v10321_v21 = vcombine.high %v465_v16, %v529_v17  ;;  %v10323_v23 = vcombine.high %v466_v18, %v530_v19  ;;  %v212_v16 = vld [vmem:[#allocation5 + $0x548] sm:$0xff]  ;;  %v9942_v19 = vcombine.low %v84_v7, %v148_v8 }
 0x27d   :  { %7751 = vmatprep.subr.bf16.mxu0 %v10573_v24  ;;  %7794 = vmatprep.subr.bf16.mxu1 %v10575_v25  ;;  %v593_v24 = vld [vmem:[#allocation5 + $0x1130] sm:$0xff]  ;;  %v276_v17 = vld [vmem:[#allocation5 + $0x748] sm:$0xff] }
 0x27e   :  { %v7173_v34 = vpop.f32.mrb[44].mxu0  ;;  %v7216_v10 = vpop.f32.mrb[44].mxu1  ;;  %v657_v25 = vld [vmem:[#allocation5 + $0x1330] sm:$0xff] }
 0x27f   :  { %v7175_v38 = vpop.f32.mrb[45].mxu0  ;;  %v7218_v42 = vpop.f32.mrb[45].mxu1  ;;  %v10448_v37 = vcombine.low %v593_v24, %v657_v25 }
 0x280   :  { %v11034_v41 = vpack.c.bf16 %v7175_v38, %v7173_v34  ;;  %v7177_v43 = vpop.f32.mrb[46].mxu0  ;;  %7752 = vmatpush1.bf16.msra.mxu0 %v10572_v31  ;;  %v11035_v45 = vpack.c.bf16 %v7218_v42, %v7216_v10  ;;  %v7220_v46 = vpop.f32.mrb[46].mxu1  ;;  %7795 = vmatpush1.bf16.msra.mxu1 %v10574_v32  ;;  %v10449_v31 = vcombine.high %v593_v24, %v657_v25  ;;  %v785_v34 = vld [vmem:[#allocation5 + $0x1730] sm:$0xff]  ;;  %v850_v42 = vld [vmem:[#allocation5 + $0x1938] sm:$0xff]  ;;  %v340_v24 = vld [vmem:[#allocation5 + $0x948] sm:$0xff] }
 0x281   :  { %v7179_v47 = vpop.f32.mrb[47].mxu0  ;;  %7753 = vmatprep.subr.bf16.mxu0 %v10701_v33  ;;  %v7222_v51 = vpop.f32.mrb[47].mxu1  ;;  %7796 = vmatprep.subr.bf16.mxu1 %v10703_v35  ;;  %v10451_v32 = vcombine.high %v594_v26, %v658_v27  ;;  %v721_v33 = vld [vmem:[#allocation5 + $0x1530] sm:$0xff]  ;;  %v722_v35 = vld [vmem:[#allocation5 + $0x1538] sm:$0xff]  ;;  %v10450_v10 = vcombine.low %v594_v26, %v658_v27  ;;  %v404_v25 = vld [vmem:[#allocation5 + $0xb48] sm:$0xff]  ;;  %v10070_v27 = vcombine.low %v212_v16, %v276_v17 }
 0x282   :  { %9735 = vst [vmem:[#allocation7 + $0xb0] sm:$0xff] %v11034_v41  ;;  %v11098_v50 = vpack.c.bf16 %v7179_v47, %v7177_v43  ;;  %9736 = vst [vmem:[#allocation7 + $0xb8] sm:$0xff] %v11035_v45  ;;  %v11099_v55 = vpack.c.bf16 %v7222_v51, %v7220_v46  ;;  %v10577_v38 = vcombine.high %v721_v33, %v785_v34  ;;  %v913_v41 = vld [vmem:[#allocation5 + $0x1b30] sm:$0xff]  ;;  %v914_v43 = vld [vmem:[#allocation5 + $0x1b38] sm:$0xff] }
 0x283   :  { %v10579_v39 = vcombine.high %v722_v35, %v786_v36  ;;  %v10578_v45 = vcombine.low %v722_v35, %v786_v36  ;;  %v10705_v46 = vcombine.high %v849_v40, %v913_v41  ;;  %v10706_v62 = vcombine.low %v850_v42, %v914_v43 }
 0x284   :  { %9799 = vst [vmem:[#allocation7 + $0x2b0] sm:$0xff] %v11098_v50  ;;  %7754 = vmatpush1.bf16.msra.mxu0 %v10700_v44  ;;  %9800 = vst [vmem:[#allocation7 + $0x2b8] sm:$0xff] %v11099_v55  ;;  %7797 = vmatpush1.bf16.msra.mxu1 %v10702_v48  ;;  %v10576_v44 = vcombine.low %v721_v33, %v785_v34  ;;  %v10707_v48 = vcombine.high %v850_v42, %v914_v43  ;;  %v1041_v50 = vld [vmem:[#allocation5 + $0x1f30] sm:$0xff]  ;;  %v468_v33 = vld [vmem:[#allocation5 + $0xd48] sm:$0xff] }
 0x285   :  { %7755 = vmatprep.subr.bf16.mxu0 %v10829_v49  ;;  %7798 = vmatprep.subr.bf16.mxu1 %v10831_v52  ;;  %v977_v49 = vld [vmem:[#allocation5 + $0x1d30] sm:$0xff]  ;;  %v532_v34 = vld [vmem:[#allocation5 + $0xf48] sm:$0xff] }
 0x286   :  { %v10833_v63 = vcombine.high %v977_v49, %v1041_v50  ;;  %v10832_v9 = vcombine.low %v977_v49, %v1041_v50  ;;  %v10326_v42 = vcombine.low %v468_v33, %v532_v34 }
 0x288   :  { %7756 = vmatpush1.bf16.msra.mxu0 %v10828_v58  ;;  %7799 = vmatpush1.bf16.msra.mxu1 %v10830_v59  ;;  %v10704_v58 = vcombine.low %v849_v40, %v913_v41  ;;  %v660_v40 = vld [vmem:[#allocation5 + $0x1348] sm:$0xff] }
 0x289   :  { %7827 = vmatprep.subr.bf16.mxu0 %v9937_v60  ;;  %7870 = vmatprep.subr.bf16.mxu1 %v9939_v61 }
 0x28b   :  { %7774 = vmatmul.mubr.bf16.vlgmr.msra.gmra.mrb[72].mxu0 %v11345_v30  ;;  %7817 = vmatmul.mubr.bf16.vlgmr.msra.gmra.mrb[72].mxu1 %v11345_v30 }
 0x28c   :  { %7828 = vmatpush1.bf16.msra.mxu0 %v9936_v3  ;;  %7871 = vmatpush1.bf16.msra.mxu1 %v9938_v4  ;;  %v10835_v3 = vcombine.high %v978_v53, %v1042_v54  ;;  %v83_v4 = vld [vmem:[#allocation5 + $0x140] sm:$0xff] }
 0x28d   :  { %7829 = vmatprep.subr.bf16.mxu0 %v10065_v5  ;;  %7872 = vmatprep.subr.bf16.mxu1 %v10067_v6  ;;  %v147_v5 = vld [vmem:[#allocation5 + $0x340] sm:$0xff] }
 0x28e   :  { %7859 = vmatprep.mubr.bf16.mxu0 %v11233_v0  ;;  %7902 = vmatprep.mubr.bf16.mxu1 %v11233_v0  ;;  %v9940_v18 = vcombine.low %v83_v4, %v147_v5  ;;  %v851_v53 = vld [vmem:[#allocation5 + $0x1940] sm:$0xff] }
 0x28f   :  { %v915_v54 = vld [vmem:[#allocation5 + $0x1b40] sm:$0xff] }
 0x290   :  { %7830 = vmatpush1.bf16.msra.mxu0 %v10064_v12  ;;  %7873 = vmatpush1.bf16.msra.mxu1 %v10066_v13  ;;  %v9941_v12 = vcombine.high %v83_v4, %v147_v5  ;;  %v9943_v13 = vcombine.high %v84_v7, %v148_v8  ;;  %v1044_v4 = vld [vmem:[#allocation5 + $0x1f48] sm:$0xff]  ;;  %v10708_v8 = vcombine.low %v851_v53, %v915_v54 }
 0x291   :  { %7831 = vmatprep.subr.bf16.mxu0 %v10193_v14  ;;  %7874 = vmatprep.subr.bf16.mxu1 %v10195_v15  ;;  %v211_v14 = vld [vmem:[#allocation5 + $0x540] sm:$0xff] }
 0x292   :  { %v275_v15 = vld [vmem:[#allocation5 + $0x740] sm:$0xff] }
 0x293   :  { %v10068_v26 = vcombine.low %v211_v14, %v275_v15 }
 0x294   :  { %7832 = vmatpush1.bf16.msra.mxu0 %v10192_v20  ;;  %7875 = vmatpush1.bf16.msra.mxu1 %v10194_v28  ;;  %v10069_v20 = vcombine.high %v211_v14, %v275_v15  ;;  %v10071_v28 = vcombine.high %v212_v16, %v276_v17 }
 0x295   :  { %7833 = vmatprep.subr.bf16.mxu0 %v10321_v21  ;;  %7876 = vmatprep.subr.bf16.mxu1 %v10323_v23  ;;  %v339_v21 = vld [vmem:[#allocation5 + $0x940] sm:$0xff] }
 0x296   :  { %v403_v23 = vld [vmem:[#allocation5 + $0xb40] sm:$0xff] }
 0x297   :  { %v10196_v35 = vcombine.low %v339_v21, %v403_v23 }
 0x298   :  { %7834 = vmatpush1.bf16.msra.mxu0 %v10320_v22  ;;  %7877 = vmatpush1.bf16.msra.mxu1 %v10322_v29  ;;  %v10197_v22 = vcombine.high %v339_v21, %v403_v23  ;;  %v10199_v29 = vcombine.high %v340_v24, %v404_v25  ;;  %v150_v21 = vld [vmem:[#allocation5 + $0x358] sm:$0xff] }
 0x299   :  { %7835 = vmatprep.subr.bf16.mxu0 %v10449_v31  ;;  %7878 = vmatprep.subr.bf16.mxu1 %v10451_v32  ;;  %v467_v31 = vld [vmem:[#allocation5 + $0xd40] sm:$0xff] }
 0x29a   :  { %v531_v32 = vld [vmem:[#allocation5 + $0xf40] sm:$0xff] }
 0x29b   :  { %v10325_v36 = vcombine.high %v467_v31, %v531_v32  ;;  %v10324_v41 = vcombine.low %v467_v31, %v531_v32  ;;  %v278_v31 = vld [vmem:[#allocation5 + $0x758] sm:$0xff] }
 0x29c   :  { %7836 = vmatpush1.bf16.msra.mxu0 %v10448_v37  ;;  %7879 = vmatpush1.bf16.msra.mxu1 %v10450_v10  ;;  %v10327_v37 = vcombine.high %v468_v33, %v532_v34  ;;  %v595_v10 = vld [vmem:[#allocation5 + $0x1140] sm:$0xff] }
 0x29d   :  { %7837 = vmatprep.subr.bf16.mxu0 %v10577_v38  ;;  %7880 = vmatprep.subr.bf16.mxu1 %v10579_v39  ;;  %v659_v38 = vld [vmem:[#allocation5 + $0x1340] sm:$0xff]  ;;  %v596_v39 = vld [vmem:[#allocation5 + $0x1148] sm:$0xff] }
 0x29e   :  { %v7259_v47 = vpop.f32.mrb[48].mxu0  ;;  %v7302_v51 = vpop.f32.mrb[48].mxu1  ;;  %v10453_v43 = vcombine.high %v595_v10, %v659_v38  ;;  %v10452_v49 = vcombine.low %v595_v10, %v659_v38  ;;  %v10454_v50 = vcombine.low %v596_v39, %v660_v40  ;;  %v342_v10 = vld [vmem:[#allocation5 + $0x958] sm:$0xff] }
 0x29f   :  { %v7261_v52 = vpop.f32.mrb[49].mxu0  ;;  %v7304_v56 = vpop.f32.mrb[49].mxu1  ;;  %v406_v38 = vld [vmem:[#allocation5 + $0xb58] sm:$0xff] }
 0x2a0   :  { %v11036_v55 = vpack.c.bf16 %v7261_v52, %v7259_v47  ;;  %v7263_v57 = vpop.f32.mrb[50].mxu0  ;;  %7838 = vmatpush1.bf16.msra.mxu0 %v10576_v44  ;;  %v11037_v59 = vpack.c.bf16 %v7304_v56, %v7302_v51  ;;  %v7306_v60 = vpop.f32.mrb[50].mxu1  ;;  %7881 = vmatpush1.bf16.msra.mxu1 %v10578_v45  ;;  %v10455_v44 = vcombine.high %v596_v39, %v660_v40  ;;  %v723_v45 = vld [vmem:[#allocation5 + $0x1540] sm:$0xff]  ;;  %v724_v47 = vld [vmem:[#allocation5 + $0x1548] sm:$0xff] }
 0x2a1   :  { %v7265_v61 = vpop.f32.mrb[51].mxu0  ;;  %7839 = vmatprep.subr.bf16.mxu0 %v10705_v46  ;;  %v7308_v2 = vpop.f32.mrb[51].mxu1  ;;  %7882 = vmatprep.subr.bf16.mxu1 %v10707_v48  ;;  %v787_v46 = vld [vmem:[#allocation5 + $0x1740] sm:$0xff]  ;;  %v788_v48 = vld [vmem:[#allocation5 + $0x1748] sm:$0xff] }
 0x2a2   :  { %9737 = vst [vmem:[#allocation7 + $0xc0] sm:$0xff] %v11036_v55  ;;  %v11100_v1 = vpack.c.bf16 %v7265_v61, %v7263_v57  ;;  %9738 = vst [vmem:[#allocation7 + $0xc8] sm:$0xff] %v11037_v59  ;;  %v11101_v6 = vpack.c.bf16 %v7308_v2, %v7306_v60  ;;  %v10581_v51 = vcombine.high %v723_v45, %v787_v46  ;;  %v852_v55 = vld [vmem:[#allocation5 + $0x1948] sm:$0xff] }
 0x2a3   :  { %v10583_v52 = vcombine.high %v724_v47, %v788_v48  ;;  %v916_v56 = vld [vmem:[#allocation5 + $0x1b48] sm:$0xff]  ;;  %v10580_v57 = vcombine.low %v723_v45, %v787_v46  ;;  %v10709_v59 = vcombine.high %v851_v53, %v915_v54  ;;  %v470_v45 = vld [vmem:[#allocation5 + $0xd58] sm:$0xff] }
 0x2a4   :  { %9801 = vst [vmem:[#allocation7 + $0x2c0] sm:$0xff] %v11100_v1  ;;  %7840 = vmatpush1.bf16.msra.mxu0 %v10704_v58  ;;  %9802 = vst [vmem:[#allocation7 + $0x2c8] sm:$0xff] %v11101_v6  ;;  %7883 = vmatpush1.bf16.msra.mxu1 %v10706_v62  ;;  %v10582_v58 = vcombine.low %v724_v47, %v788_v48  ;;  %v10711_v61 = vcombine.high %v852_v55, %v916_v56  ;;  %v979_v62 = vld [vmem:[#allocation5 + $0x1d40] sm:$0xff]  ;;  %v534_v46 = vld [vmem:[#allocation5 + $0xf58] sm:$0xff] }
 0x2a5   :  { %7841 = vmatprep.subr.bf16.mxu0 %v10833_v63  ;;  %7884 = vmatprep.subr.bf16.mxu1 %v10835_v3  ;;  %v1043_v63 = vld [vmem:[#allocation5 + $0x1f40] sm:$0xff]  ;;  %v980_v3 = vld [vmem:[#allocation5 + $0x1d48] sm:$0xff]  ;;  %v10202_v48 = vcombine.low %v342_v10, %v406_v38  ;;  %v598_v53 = vld [vmem:[#allocation5 + $0x1158] sm:$0xff] }
 0x2a6   :  { %v10837_v14 = vcombine.high %v979_v62, %v1043_v63  ;;  %v10839_v17 = vcombine.high %v980_v3, %v1044_v4  ;;  %v10836_v23 = vcombine.low %v979_v62, %v1043_v63  ;;  %v662_v54 = vld [vmem:[#allocation5 + $0x1358] sm:$0xff] }
 0x2a7   :  { %v790_v62 = vld [vmem:[#allocation5 + $0x1758] sm:$0xff] }
 0x2a8   :  { %7842 = vmatpush1.bf16.msra.mxu0 %v10832_v9  ;;  %7885 = vmatpush1.bf16.msra.mxu1 %v10834_v11 }
 0x2a9   :  { %7913 = vmatprep.subr.bf16.mxu0 %v9941_v12  ;;  %7956 = vmatprep.subr.bf16.mxu1 %v9943_v13  ;;  %v10710_v13 = vcombine.low %v852_v55, %v916_v56  ;;  %v10330_v56 = vcombine.low %v470_v45, %v534_v46 }
 0x2ab   :  { %7860 = vmatmul.mubr.bf16.vlgmr.msra.gmra.mrb[76].mxu0 %v11345_v30  ;;  %7903 = vmatmul.mubr.bf16.vlgmr.msra.gmra.mrb[76].mxu1 %v11345_v30  ;;  %v10198_v30 = vcombine.low %v340_v24, %v404_v25  ;;  %v10838_v24 = vcombine.low %v980_v3, %v1044_v4  ;;  %v853_v4 = vld [vmem:[#allocation5 + $0x1950] sm:$0xff] }
 0x2ac   :  { %7914 = vmatpush1.bf16.msra.mxu0 %v9940_v18  ;;  %7957 = vmatpush1.bf16.msra.mxu1 %v9942_v19  ;;  %v85_v18 = vld [vmem:[#allocation5 + $0x150] sm:$0xff] }
 0x2ad   :  { %7915 = vmatprep.subr.bf16.mxu0 %v10069_v20  ;;  %7958 = vmatprep.subr.bf16.mxu1 %v10071_v28  ;;  %v149_v19 = vld [vmem:[#allocation5 + $0x350] sm:$0xff]  ;;  %v86_v28 = vld [vmem:[#allocation5 + $0x158] sm:$0xff] }
 0x2ae   :  { %7945 = vmatprep.mubr.bf16.mxu0 %v11233_v0  ;;  %7988 = vmatprep.mubr.bf16.mxu1 %v11233_v0  ;;  %v9945_v25 = vcombine.high %v85_v18, %v149_v19  ;;  %v9944_v32 = vcombine.low %v85_v18, %v149_v19  ;;  %v9946_v33 = vcombine.low %v86_v28, %v150_v21  ;;  %v982_v18 = vld [vmem:[#allocation5 + $0x1d58] sm:$0xff] }
 0x2af   :  { %v1046_v19 = vld [vmem:[#allocation5 + $0x1f58] sm:$0xff] }
 0x2b0   :  { %7916 = vmatpush1.bf16.msra.mxu0 %v10068_v26  ;;  %7959 = vmatpush1.bf16.msra.mxu1 %v10070_v27  ;;  %v9947_v26 = vcombine.high %v86_v28, %v150_v21  ;;  %v213_v27 = vld [vmem:[#allocation5 + $0x550] sm:$0xff] }
 0x2b1   :  { %7917 = vmatprep.subr.bf16.mxu0 %v10197_v22  ;;  %7960 = vmatprep.subr.bf16.mxu1 %v10199_v29  ;;  %v277_v22 = vld [vmem:[#allocation5 + $0x750] sm:$0xff]  ;;  %v214_v29 = vld [vmem:[#allocation5 + $0x558] sm:$0xff] }
 0x2b2   :  { %v10073_v34 = vcombine.high %v213_v27, %v277_v22  ;;  %v10072_v39 = vcombine.low %v213_v27, %v277_v22  ;;  %v10074_v40 = vcombine.low %v214_v29, %v278_v31 }
 0x2b4   :  { %7918 = vmatpush1.bf16.msra.mxu0 %v10196_v35  ;;  %7961 = vmatpush1.bf16.msra.mxu1 %v10198_v30  ;;  %v10075_v35 = vcombine.high %v214_v29, %v278_v31  ;;  %v341_v30 = vld [vmem:[#allocation5 + $0x950] sm:$0xff] }
 0x2b5   :  { %7919 = vmatprep.subr.bf16.mxu0 %v10325_v36  ;;  %7962 = vmatprep.subr.bf16.mxu1 %v10327_v37  ;;  %v405_v36 = vld [vmem:[#allocation5 + $0xb50] sm:$0xff]  ;;  %v11367_v37 = vld [vmem:[#allocation2] sm:$0xff]  }
 0x2b6   :  { %v10200_v47 = vcombine.low %v341_v30, %v405_v36 }
 0x2b8   :  { %7920 = vmatpush1.bf16.msra.mxu0 %v10324_v41  ;;  %7963 = vmatpush1.bf16.msra.mxu1 %v10326_v42  ;;  %v10201_v41 = vcombine.high %v341_v30, %v405_v36  ;;  %v10203_v42 = vcombine.high %v342_v10, %v406_v38  ;;  %v88_v30 = vld [vmem:[#allocation5 + $0x168] sm:$0xff]  ;;  %v10842_v38 = vcombine.low %v982_v18, %v1046_v19 }
 0x2b9   :  { %7921 = vmatprep.subr.bf16.mxu0 %v10453_v43  ;;  %7964 = vmatprep.subr.bf16.mxu1 %v10455_v44  ;;  %v469_v43 = vld [vmem:[#allocation5 + $0xd50] sm:$0xff]  ;;  %v152_v36 = vld [vmem:[#allocation5 + $0x368] sm:$0xff] }
 0x2ba   :  { %v533_v44 = vld [vmem:[#allocation5 + $0xf50] sm:$0xff] }
 0x2bb   :  { %v10328_v55 = vcombine.low %v469_v43, %v533_v44 }
 0x2bc   :  { %7922 = vmatpush1.bf16.msra.mxu0 %v10452_v49  ;;  %7965 = vmatpush1.bf16.msra.mxu1 %v10454_v50  ;;  %v10329_v49 = vcombine.high %v469_v43, %v533_v44  ;;  %v10331_v50 = vcombine.high %v470_v45, %v534_v46  ;;  %v216_v43 = vld [vmem:[#allocation5 + $0x568] sm:$0xff]  ;;  %v9950_v46 = vcombine.low %v88_v30, %v152_v36 }
 0x2bd   :  { %7923 = vmatprep.subr.bf16.mxu0 %v10581_v51  ;;  %7966 = vmatprep.subr.bf16.mxu1 %v10583_v52  ;;  %v597_v51 = vld [vmem:[#allocation5 + $0x1150] sm:$0xff]  ;;  %v280_v44 = vld [vmem:[#allocation5 + $0x768] sm:$0xff] }
 0x2be   :  { %v7345_v60 = vpop.f32.mrb[52].mxu0  ;;  %v7388_v1 = vpop.f32.mrb[52].mxu1  ;;  %v661_v52 = vld [vmem:[#allocation5 + $0x1350] sm:$0xff] }
 0x2bf   :  { %v7347_v2 = vpop.f32.mrb[53].mxu0  ;;  %v7390_v6 = vpop.f32.mrb[53].mxu1  ;;  %v10456_v63 = vcombine.low %v597_v51, %v661_v52 }
 0x2c0   :  { %v11038_v5 = vpack.c.bf16 %v7347_v2, %v7345_v60  ;;  %v7349_v7 = vpop.f32.mrb[54].mxu0  ;;  %7924 = vmatpush1.bf16.msra.mxu0 %v10580_v57  ;;  %v11039_v9 = vpack.c.bf16 %v7390_v6, %v7388_v1  ;;  %v7392_v11 = vpop.f32.mrb[54].mxu1  ;;  %7967 = vmatpush1.bf16.msra.mxu1 %v10582_v58  ;;  %v10457_v57 = vcombine.high %v597_v51, %v661_v52  ;;  %v789_v60 = vld [vmem:[#allocation5 + $0x1750] sm:$0xff]  ;;  %v854_v6 = vld [vmem:[#allocation5 + $0x1958] sm:$0xff]  ;;  %v344_v51 = vld [vmem:[#allocation5 + $0x968] sm:$0xff] }
 0x2c1   :  { %v7351_v12 = vpop.f32.mrb[55].mxu0  ;;  %7925 = vmatprep.subr.bf16.mxu0 %v10709_v59  ;;  %v7394_v16 = vpop.f32.mrb[55].mxu1  ;;  %7968 = vmatprep.subr.bf16.mxu1 %v10711_v61  ;;  %v10459_v58 = vcombine.high %v598_v53, %v662_v54  ;;  %v725_v59 = vld [vmem:[#allocation5 + $0x1550] sm:$0xff]  ;;  %v726_v61 = vld [vmem:[#allocation5 + $0x1558] sm:$0xff]  ;;  %v10458_v1 = vcombine.low %v598_v53, %v662_v54  ;;  %v408_v52 = vld [vmem:[#allocation5 + $0xb68] sm:$0xff]  ;;  %v10078_v54 = vcombine.low %v216_v43, %v280_v44 }
 0x2c2   :  { %9739 = vst [vmem:[#allocation7 + $0xd0] sm:$0xff] %v11038_v5  ;;  %v11102_v15 = vpack.c.bf16 %v7351_v12, %v7349_v7  ;;  %9740 = vst [vmem:[#allocation7 + $0xd8] sm:$0xff] %v11039_v9  ;;  %v11103_v20 = vpack.c.bf16 %v7394_v16, %v7392_v11  ;;  %v10585_v2 = vcombine.high %v725_v59, %v789_v60  ;;  %v917_v5 = vld [vmem:[#allocation5 + $0x1b50] sm:$0xff]  ;;  %v918_v7 = vld [vmem:[#allocation5 + $0x1b58] sm:$0xff] }
 0x2c3   :  { %v10587_v3 = vcombine.high %v726_v61, %v790_v62  ;;  %v10586_v9 = vcombine.low %v726_v61, %v790_v62  ;;  %v10713_v11 = vcombine.high %v853_v4, %v917_v5  ;;  %v10714_v27 = vcombine.low %v854_v6, %v918_v7 }
 0x2c4   :  { %9803 = vst [vmem:[#allocation7 + $0x2d0] sm:$0xff] %v11102_v15  ;;  %7926 = vmatpush1.bf16.msra.mxu0 %v10708_v8  ;;  %9804 = vst [vmem:[#allocation7 + $0x2d8] sm:$0xff] %v11103_v20  ;;  %7969 = vmatpush1.bf16.msra.mxu1 %v10710_v13  ;;  %v10584_v8 = vcombine.low %v725_v59, %v789_v60  ;;  %v10715_v13 = vcombine.high %v854_v6, %v918_v7  ;;  %v1045_v15 = vld [vmem:[#allocation5 + $0x1f50] sm:$0xff]  ;;  %v472_v59 = vld [vmem:[#allocation5 + $0xd68] sm:$0xff] }
 0x2c5   :  { %7927 = vmatprep.subr.bf16.mxu0 %v10837_v14  ;;  %7970 = vmatprep.subr.bf16.mxu1 %v10839_v17  ;;  %v981_v14 = vld [vmem:[#allocation5 + $0x1d50] sm:$0xff]  ;;  %v536_v60 = vld [vmem:[#allocation5 + $0xf68] sm:$0xff]  ;;  %v10206_v62 = vcombine.low %v344_v51, %v408_v52 }
 0x2c6   :  { %v10841_v22 = vcombine.high %v981_v14, %v1045_v15  ;;  %v10840_v10 = vcombine.low %v981_v14, %v1045_v15  ;;  %v10334_v7 = vcombine.low %v472_v59, %v536_v60  ;;  %v792_v14 = vld [vmem:[#allocation5 + $0x1768] sm:$0xff] }
 0x2c8   :  { %7928 = vmatpush1.bf16.msra.mxu0 %v10836_v23  ;;  %7971 = vmatpush1.bf16.msra.mxu1 %v10838_v24  ;;  %v10712_v23 = vcombine.low %v853_v4, %v917_v5  ;;  %v600_v4 = vld [vmem:[#allocation5 + $0x1168] sm:$0xff] }
 0x2c9   :  { %7999 = vmatprep.subr.bf16.mxu0 %v9945_v25  ;;  %8042 = vmatprep.subr.bf16.mxu1 %v9947_v26  ;;  %v664_v5 = vld [vmem:[#allocation5 + $0x1368] sm:$0xff] }
 0x2cb   :  { %7946 = vmatmul.mubr.bf16.vlgmr.msra.gmra.mrb[80].mxu0 %v11367_v37  ;;  %7989 = vmatmul.mubr.bf16.vlgmr.msra.gmra.mrb[80].mxu1 %v11367_v37 }
 0x2cc   :  { %8000 = vmatpush1.bf16.msra.mxu0 %v9944_v32  ;;  %8043 = vmatpush1.bf16.msra.mxu1 %v9946_v33  ;;  %v10843_v32 = vcombine.high %v982_v18, %v1046_v19  ;;  %v87_v33 = vld [vmem:[#allocation5 + $0x160] sm:$0xff] }
 0x2cd   :  { %8001 = vmatprep.subr.bf16.mxu0 %v10073_v34  ;;  %8044 = vmatprep.subr.bf16.mxu1 %v10075_v35  ;;  %v151_v34 = vld [vmem:[#allocation5 + $0x360] sm:$0xff] }
 0x2ce   :  { %8031 = vmatprep.mubr.bf16.mxu0 %v11233_v0  ;;  %8074 = vmatprep.mubr.bf16.mxu1 %v11233_v0  ;;  %v9948_v45 = vcombine.low %v87_v33, %v151_v34  ;;  %v855_v19 = vld [vmem:[#allocation5 + $0x1960] sm:$0xff] }
 0x2d0   :  { %8002 = vmatpush1.bf16.msra.mxu0 %v10072_v39  ;;  %8045 = vmatpush1.bf16.msra.mxu1 %v10074_v40  ;;  %v9949_v39 = vcombine.high %v87_v33, %v151_v34  ;;  %v9951_v40 = vcombine.high %v88_v30, %v152_v36  ;;  %v984_v33 = vld [vmem:[#allocation5 + $0x1d68] sm:$0xff] }
 0x2d1   :  { %8003 = vmatprep.subr.bf16.mxu0 %v10201_v41  ;;  %8046 = vmatprep.subr.bf16.mxu1 %v10203_v42  ;;  %v215_v41 = vld [vmem:[#allocation5 + $0x560] sm:$0xff]  ;;  %v1048_v34 = vld [vmem:[#allocation5 + $0x1f68] sm:$0xff] }
 0x2d2   :  { %v279_v42 = vld [vmem:[#allocation5 + $0x760] sm:$0xff] }
 0x2d3   :  { %v10076_v53 = vcombine.low %v215_v41, %v279_v42 }
 0x2d4   :  { %8004 = vmatpush1.bf16.msra.mxu0 %v10200_v47  ;;  %8047 = vmatpush1.bf16.msra.mxu1 %v10202_v48  ;;  %v10077_v47 = vcombine.high %v215_v41, %v279_v42  ;;  %v10079_v48 = vcombine.high %v216_v43, %v280_v44 }
 0x2d5   :  { %8005 = vmatprep.subr.bf16.mxu0 %v10329_v49  ;;  %8048 = vmatprep.subr.bf16.mxu1 %v10331_v50  ;;  %v343_v49 = vld [vmem:[#allocation5 + $0x960] sm:$0xff] }
 0x2d6   :  { %v407_v50 = vld [vmem:[#allocation5 + $0xb60] sm:$0xff] }
 0x2d7   :  { %v10204_v61 = vcombine.low %v343_v49, %v407_v50 }
 0x2d8   :  { %8006 = vmatpush1.bf16.msra.mxu0 %v10328_v55  ;;  %8049 = vmatpush1.bf16.msra.mxu1 %v10330_v56  ;;  %v10205_v55 = vcombine.high %v343_v49, %v407_v50  ;;  %v10207_v56 = vcombine.high %v344_v51, %v408_v52  ;;  %v90_v49 = vld [vmem:[#allocation5 + $0x178] sm:$0xff]  ;;  %v10846_v52 = vcombine.low %v984_v33, %v1048_v34 }
 0x2d9   :  { %8007 = vmatprep.subr.bf16.mxu0 %v10457_v57  ;;  %8050 = vmatprep.subr.bf16.mxu1 %v10459_v58  ;;  %v471_v57 = vld [vmem:[#allocation5 + $0xd60] sm:$0xff]  ;;  %v154_v50 = vld [vmem:[#allocation5 + $0x378] sm:$0xff] }
 0x2da   :  { %v535_v58 = vld [vmem:[#allocation5 + $0xf60] sm:$0xff] }
 0x2db   :  { %v10332_v6 = vcombine.low %v471_v57, %v535_v58 }
 0x2dc   :  { %8008 = vmatpush1.bf16.msra.mxu0 %v10456_v63  ;;  %8051 = vmatpush1.bf16.msra.mxu1 %v10458_v1  ;;  %v10333_v63 = vcombine.high %v471_v57, %v535_v58  ;;  %v10335_v1 = vcombine.high %v472_v59, %v536_v60  ;;  %v218_v57 = vld [vmem:[#allocation5 + $0x578] sm:$0xff]  ;;  %v9954_v60 = vcombine.low %v90_v49, %v154_v50 }
 0x2dd   :  { %8009 = vmatprep.subr.bf16.mxu0 %v10585_v2  ;;  %8052 = vmatprep.subr.bf16.mxu1 %v10587_v3  ;;  %v599_v2 = vld [vmem:[#allocation5 + $0x1160] sm:$0xff]  ;;  %v282_v58 = vld [vmem:[#allocation5 + $0x778] sm:$0xff] }
 0x2de   :  { %v7431_v12 = vpop.f32.mrb[56].mxu0  ;;  %v7474_v16 = vpop.f32.mrb[56].mxu1  ;;  %v663_v3 = vld [vmem:[#allocation5 + $0x1360] sm:$0xff] }
 0x2df   :  { %v7433_v17 = vpop.f32.mrb[57].mxu0  ;;  %v7476_v28 = vpop.f32.mrb[57].mxu1  ;;  %v10460_v15 = vcombine.low %v599_v2, %v663_v3 }
 0x2e0   :  { %v11040_v20 = vpack.c.bf16 %v7433_v17, %v7431_v12  ;;  %v7435_v21 = vpop.f32.mrb[58].mxu0  ;;  %8010 = vmatpush1.bf16.msra.mxu0 %v10584_v8  ;;  %v11041_v24 = vpack.c.bf16 %v7476_v28, %v7474_v16  ;;  %v7478_v25 = vpop.f32.mrb[58].mxu1  ;;  %8053 = vmatpush1.bf16.msra.mxu1 %v10586_v9  ;;  %v10461_v8 = vcombine.high %v599_v2, %v663_v3  ;;  %v791_v12 = vld [vmem:[#allocation5 + $0x1760] sm:$0xff]  ;;  %v856_v28 = vld [vmem:[#allocation5 + $0x1968] sm:$0xff]  ;;  %v346_v2 = vld [vmem:[#allocation5 + $0x978] sm:$0xff] }
 0x2e1   :  { %v7437_v26 = vpop.f32.mrb[59].mxu0  ;;  %8011 = vmatprep.subr.bf16.mxu0 %v10713_v11  ;;  %v7480_v31 = vpop.f32.mrb[59].mxu1  ;;  %8054 = vmatprep.subr.bf16.mxu1 %v10715_v13  ;;  %v10463_v9 = vcombine.high %v600_v4, %v664_v5  ;;  %v727_v11 = vld [vmem:[#allocation5 + $0x1560] sm:$0xff]  ;;  %v728_v13 = vld [vmem:[#allocation5 + $0x1568] sm:$0xff]  ;;  %v10462_v16 = vcombine.low %v600_v4, %v664_v5  ;;  %v410_v3 = vld [vmem:[#allocation5 + $0xb78] sm:$0xff]  ;;  %v10082_v5 = vcombine.low %v218_v57, %v282_v58 }
 0x2e2   :  { %9741 = vst [vmem:[#allocation7 + $0xe0] sm:$0xff] %v11040_v20  ;;  %v11104_v29 = vpack.c.bf16 %v7437_v26, %v7435_v21  ;;  %9742 = vst [vmem:[#allocation7 + $0xe8] sm:$0xff] %v11041_v24  ;;  %v11105_v35 = vpack.c.bf16 %v7480_v31, %v7478_v25  ;;  %v10589_v17 = vcombine.high %v727_v11, %v791_v12  ;;  %v919_v20 = vld [vmem:[#allocation5 + $0x1b60] sm:$0xff]  ;;  %v920_v21 = vld [vmem:[#allocation5 + $0x1b68] sm:$0xff] }
 0x2e3   :  { %v10591_v18 = vcombine.high %v728_v13, %v792_v14  ;;  %v10590_v24 = vcombine.low %v728_v13, %v792_v14  ;;  %v10717_v25 = vcombine.high %v855_v19, %v919_v20  ;;  %v10718_v41 = vcombine.low %v856_v28, %v920_v21 }
 0x2e4   :  { %9805 = vst [vmem:[#allocation7 + $0x2e0] sm:$0xff] %v11104_v29  ;;  %8012 = vmatpush1.bf16.msra.mxu0 %v10712_v23  ;;  %9806 = vst [vmem:[#allocation7 + $0x2e8] sm:$0xff] %v11105_v35  ;;  %8055 = vmatpush1.bf16.msra.mxu1 %v10714_v27  ;;  %v10588_v23 = vcombine.low %v727_v11, %v791_v12  ;;  %v10719_v27 = vcombine.high %v856_v28, %v920_v21  ;;  %v1047_v29 = vld [vmem:[#allocation5 + $0x1f60] sm:$0xff]  ;;  %v474_v11 = vld [vmem:[#allocation5 + $0xd78] sm:$0xff] }
 0x2e5   :  { %8013 = vmatprep.subr.bf16.mxu0 %v10841_v22  ;;  %8056 = vmatprep.subr.bf16.mxu1 %v10843_v32  ;;  %v983_v22 = vld [vmem:[#allocation5 + $0x1d60] sm:$0xff]  ;;  %v538_v12 = vld [vmem:[#allocation5 + $0xf78] sm:$0xff]  ;;  %v10210_v14 = vcombine.low %v346_v2, %v410_v3 }
 0x2e6   :  { %v10845_v42 = vcombine.high %v983_v22, %v1047_v29  ;;  %v10844_v51 = vcombine.low %v983_v22, %v1047_v29  ;;  %v10338_v21 = vcombine.low %v474_v11, %v538_v12  ;;  %v794_v22 = vld [vmem:[#allocation5 + $0x1778] sm:$0xff] }
 0x2e8   :  { %8014 = vmatpush1.bf16.msra.mxu0 %v10840_v10  ;;  %8057 = vmatpush1.bf16.msra.mxu1 %v10842_v38  ;;  %v10716_v10 = vcombine.low %v855_v19, %v919_v20  ;;  %v602_v19 = vld [vmem:[#allocation5 + $0x1178] sm:$0xff] }
 0x2e9   :  { %8085 = vmatprep.subr.bf16.mxu0 %v9949_v39  ;;  %8128 = vmatprep.subr.bf16.mxu1 %v9951_v40  ;;  %v666_v20 = vld [vmem:[#allocation5 + $0x1378] sm:$0xff] }
 0x2eb   :  { %8032 = vmatmul.mubr.bf16.vlgmr.msra.gmra.mrb[84].mxu0 %v11367_v37  ;;  %8075 = vmatmul.mubr.bf16.vlgmr.msra.gmra.mrb[84].mxu1 %v11367_v37 }
 0x2ec   :  { %8086 = vmatpush1.bf16.msra.mxu0 %v9948_v45  ;;  %8129 = vmatpush1.bf16.msra.mxu1 %v9950_v46  ;;  %v10847_v45 = vcombine.high %v984_v33, %v1048_v34  ;;  %v89_v46 = vld [vmem:[#allocation5 + $0x170] sm:$0xff] }
 0x2ed   :  { %8087 = vmatprep.subr.bf16.mxu0 %v10077_v47  ;;  %8130 = vmatprep.subr.bf16.mxu1 %v10079_v48  ;;  %v153_v47 = vld [vmem:[#allocation5 + $0x370] sm:$0xff] }
 0x2ee   :  { %8117 = vmatprep.mubr.bf16.mxu0 %v11233_v0  ;;  %8160 = vmatprep.mubr.bf16.mxu1 %v11233_v0  ;;  %v9952_v59 = vcombine.low %v89_v46, %v153_v47  ;;  %v857_v34 = vld [vmem:[#allocation5 + $0x1970] sm:$0xff] }
 0x2f0   :  { %8088 = vmatpush1.bf16.msra.mxu0 %v10076_v53  ;;  %8131 = vmatpush1.bf16.msra.mxu1 %v10078_v54  ;;  %v9953_v53 = vcombine.high %v89_v46, %v153_v47  ;;  %v9955_v54 = vcombine.high %v90_v49, %v154_v50  ;;  %v986_v46 = vld [vmem:[#allocation5 + $0x1d78] sm:$0xff] }
 0x2f1   :  { %8089 = vmatprep.subr.bf16.mxu0 %v10205_v55  ;;  %8132 = vmatprep.subr.bf16.mxu1 %v10207_v56  ;;  %v217_v55 = vld [vmem:[#allocation5 + $0x570] sm:$0xff]  ;;  %v1050_v47 = vld [vmem:[#allocation5 + $0x1f78] sm:$0xff] }
 0x2f2   :  { %v281_v56 = vld [vmem:[#allocation5 + $0x770] sm:$0xff] }
 0x2f3   :  { %v10080_v4 = vcombine.low %v217_v55, %v281_v56 }
 0x2f4   :  { %8090 = vmatpush1.bf16.msra.mxu0 %v10204_v61  ;;  %8133 = vmatpush1.bf16.msra.mxu1 %v10206_v62  ;;  %v10081_v61 = vcombine.high %v217_v55, %v281_v56  ;;  %v10083_v62 = vcombine.high %v218_v57, %v282_v58 }
 0x2f5   :  { %8091 = vmatprep.subr.bf16.mxu0 %v10333_v63  ;;  %8134 = vmatprep.subr.bf16.mxu1 %v10335_v1  ;;  %v345_v63 = vld [vmem:[#allocation5 + $0x970] sm:$0xff] }
 0x2f6   :  { %v409_v1 = vld [vmem:[#allocation5 + $0xb70] sm:$0xff] }
 0x2f7   :  { %v10208_v13 = vcombine.low %v345_v63, %v409_v1 }
 0x2f8   :  { %8092 = vmatpush1.bf16.msra.mxu0 %v10332_v6  ;;  %8135 = vmatpush1.bf16.msra.mxu1 %v10334_v7  ;;  %v10209_v6 = vcombine.high %v345_v63, %v409_v1  ;;  %v10211_v7 = vcombine.high %v346_v2, %v410_v3  ;;  %v92_v63 = vld [vmem:[#allocation5 + $0x188] sm:$0xff]  ;;  %v10850_v3 = vcombine.low %v986_v46, %v1050_v47 }
 0x2f9   :  { %8093 = vmatprep.subr.bf16.mxu0 %v10461_v8  ;;  %8136 = vmatprep.subr.bf16.mxu1 %v10463_v9  ;;  %v473_v8 = vld [vmem:[#allocation5 + $0xd70] sm:$0xff]  ;;  %v156_v1 = vld [vmem:[#allocation5 + $0x388] sm:$0xff] }
 0x2fa   :  { %v537_v9 = vld [vmem:[#allocation5 + $0xf70] sm:$0xff] }
 0x2fb   :  { %v10336_v28 = vcombine.low %v473_v8, %v537_v9 }
 0x2fc   :  { %8094 = vmatpush1.bf16.msra.mxu0 %v10460_v15  ;;  %8137 = vmatpush1.bf16.msra.mxu1 %v10462_v16  ;;  %v10337_v15 = vcombine.high %v473_v8, %v537_v9  ;;  %v10339_v16 = vcombine.high %v474_v11, %v538_v12  ;;  %v220_v8 = vld [vmem:[#allocation5 + $0x588] sm:$0xff]  ;;  %v9958_v12 = vcombine.low %v92_v63, %v156_v1 }
 0x2fd   :  { %8095 = vmatprep.subr.bf16.mxu0 %v10589_v17  ;;  %8138 = vmatprep.subr.bf16.mxu1 %v10591_v18  ;;  %v601_v17 = vld [vmem:[#allocation5 + $0x1170] sm:$0xff]  ;;  %v284_v9 = vld [vmem:[#allocation5 + $0x788] sm:$0xff] }
 0x2fe   :  { %v7517_v26 = vpop.f32.mrb[60].mxu0  ;;  %v7560_v31 = vpop.f32.mrb[60].mxu1  ;;  %v665_v18 = vld [vmem:[#allocation5 + $0x1370] sm:$0xff] }
 0x2ff   :  { %v7519_v32 = vpop.f32.mrb[61].mxu0  ;;  %v7562_v30 = vpop.f32.mrb[61].mxu1  ;;  %v10464_v29 = vcombine.low %v601_v17, %v665_v18 }
 0x300   :  { %v11042_v35 = vpack.c.bf16 %v7519_v32, %v7517_v26  ;;  %v7521_v36 = vpop.f32.mrb[62].mxu0  ;;  %8096 = vmatpush1.bf16.msra.mxu0 %v10588_v23  ;;  %v11043_v38 = vpack.c.bf16 %v7562_v30, %v7560_v31  ;;  %v7564_v39 = vpop.f32.mrb[62].mxu1  ;;  %8139 = vmatpush1.bf16.msra.mxu1 %v10590_v24  ;;  %v10465_v23 = vcombine.high %v601_v17, %v665_v18  ;;  %v793_v26 = vld [vmem:[#allocation5 + $0x1770] sm:$0xff]  ;;  %v858_v30 = vld [vmem:[#allocation5 + $0x1978] sm:$0xff]  ;;  %v348_v17 = vld [vmem:[#allocation5 + $0x988] sm:$0xff] }
 0x301   :  { %v7523_v40 = vpop.f32.mrb[63].mxu0  ;;  %8097 = vmatprep.subr.bf16.mxu0 %v10717_v25  ;;  %v7566_v44 = vpop.f32.mrb[63].mxu1  ;;  %8140 = vmatprep.subr.bf16.mxu1 %v10719_v27  ;;  %v10467_v24 = vcombine.high %v602_v19, %v666_v20  ;;  %v729_v25 = vld [vmem:[#allocation5 + $0x1570] sm:$0xff]  ;;  %v730_v27 = vld [vmem:[#allocation5 + $0x1578] sm:$0xff]  ;;  %v10466_v31 = vcombine.low %v602_v19, %v666_v20  ;;  %v412_v18 = vld [vmem:[#allocation5 + $0xb88] sm:$0xff]  ;;  %v10086_v20 = vcombine.low %v220_v8, %v284_v9 }
 0x302   :  { %9743 = vst [vmem:[#allocation7 + $0xf0] sm:$0xff] %v11042_v35  ;;  %v11106_v43 = vpack.c.bf16 %v7523_v40, %v7521_v36  ;;  %9744 = vst [vmem:[#allocation7 + $0xf8] sm:$0xff] %v11043_v38  ;;  %v11107_v48 = vpack.c.bf16 %v7566_v44, %v7564_v39  ;;  %v10593_v32 = vcombine.high %v729_v25, %v793_v26  ;;  %v921_v35 = vld [vmem:[#allocation5 + $0x1b70] sm:$0xff]  ;;  %v922_v36 = vld [vmem:[#allocation5 + $0x1b78] sm:$0xff] }
 0x303   :  { %v10595_v33 = vcombine.high %v730_v27, %v794_v22  ;;  %v10594_v38 = vcombine.low %v730_v27, %v794_v22  ;;  %v10721_v39 = vcombine.high %v857_v34, %v921_v35  ;;  %v10722_v55 = vcombine.low %v858_v30, %v922_v36 }
 0x304   :  { %9807 = vst [vmem:[#allocation7 + $0x2f0] sm:$0xff] %v11106_v43  ;;  %8098 = vmatpush1.bf16.msra.mxu0 %v10716_v10  ;;  %9808 = vst [vmem:[#allocation7 + $0x2f8] sm:$0xff] %v11107_v48  ;;  %8141 = vmatpush1.bf16.msra.mxu1 %v10718_v41  ;;  %v10592_v10 = vcombine.low %v729_v25, %v793_v26  ;;  %v10723_v41 = vcombine.high %v858_v30, %v922_v36  ;;  %v1049_v43 = vld [vmem:[#allocation5 + $0x1f70] sm:$0xff]  ;;  %v476_v25 = vld [vmem:[#allocation5 + $0xd88] sm:$0xff] }
 0x305   :  { %8099 = vmatprep.subr.bf16.mxu0 %v10845_v42  ;;  %8142 = vmatprep.subr.bf16.mxu1 %v10847_v45  ;;  %v985_v42 = vld [vmem:[#allocation5 + $0x1d70] sm:$0xff]  ;;  %v540_v26 = vld [vmem:[#allocation5 + $0xf88] sm:$0xff]  ;;  %v10214_v22 = vcombine.low %v348_v17, %v412_v18 }
 0x306   :  { %v10849_v56 = vcombine.high %v985_v42, %v1049_v43  ;;  %v10848_v2 = vcombine.low %v985_v42, %v1049_v43  ;;  %v10342_v36 = vcombine.low %v476_v25, %v540_v26  ;;  %v796_v42 = vld [vmem:[#allocation5 + $0x1788] sm:$0xff] }
 0x308   :  { %8100 = vmatpush1.bf16.msra.mxu0 %v10844_v51  ;;  %8143 = vmatpush1.bf16.msra.mxu1 %v10846_v52  ;;  %v10720_v51 = vcombine.low %v857_v34, %v921_v35  ;;  %v604_v34 = vld [vmem:[#allocation5 + $0x1188] sm:$0xff] }
 0x309   :  { %8171 = vmatprep.subr.bf16.mxu0 %v9953_v53  ;;  %8214 = vmatprep.subr.bf16.mxu1 %v9955_v54  ;;  %v668_v35 = vld [vmem:[#allocation5 + $0x1388] sm:$0xff] }
 0x30b   :  { %8118 = vmatmul.mubr.bf16.vlgmr.msra.gmra.mrb[88].mxu0 %v11367_v37  ;;  %8161 = vmatmul.mubr.bf16.vlgmr.msra.gmra.mrb[88].mxu1 %v11367_v37 }
 0x30c   :  { %8172 = vmatpush1.bf16.msra.mxu0 %v9952_v59  ;;  %8215 = vmatpush1.bf16.msra.mxu1 %v9954_v60  ;;  %v10851_v59 = vcombine.high %v986_v46, %v1050_v47  ;;  %v91_v60 = vld [vmem:[#allocation5 + $0x180] sm:$0xff] }
 0x30d   :  { %8173 = vmatprep.subr.bf16.mxu0 %v10081_v61  ;;  %8216 = vmatprep.subr.bf16.mxu1 %v10083_v62  ;;  %v155_v61 = vld [vmem:[#allocation5 + $0x380] sm:$0xff] }
 0x30e   :  { %8203 = vmatprep.mubr.bf16.mxu0 %v11233_v0  ;;  %8246 = vmatprep.mubr.bf16.mxu1 %v11233_v0  ;;  %v9956_v11 = vcombine.low %v91_v60, %v155_v61  ;;  %v859_v47 = vld [vmem:[#allocation5 + $0x1980] sm:$0xff] }
 0x310   :  { %8174 = vmatpush1.bf16.msra.mxu0 %v10080_v4  ;;  %8217 = vmatpush1.bf16.msra.mxu1 %v10082_v5  ;;  %v9957_v4 = vcombine.high %v91_v60, %v155_v61  ;;  %v9959_v5 = vcombine.high %v92_v63, %v156_v1  ;;  %v988_v60 = vld [vmem:[#allocation5 + $0x1d88] sm:$0xff] }
 0x311   :  { %8175 = vmatprep.subr.bf16.mxu0 %v10209_v6  ;;  %8218 = vmatprep.subr.bf16.mxu1 %v10211_v7  ;;  %v219_v6 = vld [vmem:[#allocation5 + $0x580] sm:$0xff]  ;;  %v1052_v61 = vld [vmem:[#allocation5 + $0x1f88] sm:$0xff] }
 0x312   :  { %v283_v7 = vld [vmem:[#allocation5 + $0x780] sm:$0xff] }
 0x313   :  { %v10084_v19 = vcombine.low %v219_v6, %v283_v7 }
 0x314   :  { %8176 = vmatpush1.bf16.msra.mxu0 %v10208_v13  ;;  %8219 = vmatpush1.bf16.msra.mxu1 %v10210_v14  ;;  %v10085_v13 = vcombine.high %v219_v6, %v283_v7  ;;  %v10087_v14 = vcombine.high %v220_v8, %v284_v9 }
 0x315   :  { %8177 = vmatprep.subr.bf16.mxu0 %v10337_v15  ;;  %8220 = vmatprep.subr.bf16.mxu1 %v10339_v16  ;;  %v347_v15 = vld [vmem:[#allocation5 + $0x980] sm:$0xff] }
 0x316   :  { %v411_v16 = vld [vmem:[#allocation5 + $0xb80] sm:$0xff] }
 0x317   :  { %v10212_v27 = vcombine.low %v347_v15, %v411_v16 }
 0x318   :  { %8178 = vmatpush1.bf16.msra.mxu0 %v10336_v28  ;;  %8221 = vmatpush1.bf16.msra.mxu1 %v10338_v21  ;;  %v10213_v28 = vcombine.high %v347_v15, %v411_v16  ;;  %v10215_v21 = vcombine.high %v348_v17, %v412_v18  ;;  %v94_v15 = vld [vmem:[#allocation5 + $0x198] sm:$0xff]  ;;  %v10854_v18 = vcombine.low %v988_v60, %v1052_v61 }
 0x319   :  { %8179 = vmatprep.subr.bf16.mxu0 %v10465_v23  ;;  %8222 = vmatprep.subr.bf16.mxu1 %v10467_v24  ;;  %v475_v23 = vld [vmem:[#allocation5 + $0xd80] sm:$0xff]  ;;  %v158_v16 = vld [vmem:[#allocation5 + $0x398] sm:$0xff] }
 0x31a   :  { %v539_v24 = vld [vmem:[#allocation5 + $0xf80] sm:$0xff] }
 0x31b   :  { %v10340_v30 = vcombine.low %v475_v23, %v539_v24 }
 0x31c   :  { %8180 = vmatpush1.bf16.msra.mxu0 %v10464_v29  ;;  %8223 = vmatpush1.bf16.msra.mxu1 %v10466_v31  ;;  %v10341_v29 = vcombine.high %v475_v23, %v539_v24  ;;  %v10343_v31 = vcombine.high %v476_v25, %v540_v26  ;;  %v222_v23 = vld [vmem:[#allocation5 + $0x598] sm:$0xff]  ;;  %v9962_v26 = vcombine.low %v94_v15, %v158_v16 }
 0x31d   :  { %8181 = vmatprep.subr.bf16.mxu0 %v10593_v32  ;;  %8224 = vmatprep.subr.bf16.mxu1 %v10595_v33  ;;  %v603_v32 = vld [vmem:[#allocation5 + $0x1180] sm:$0xff]  ;;  %v286_v24 = vld [vmem:[#allocation5 + $0x798] sm:$0xff] }
 0x31e   :  { %v7603_v40 = vpop.f32.mrb[64].mxu0  ;;  %v7646_v44 = vpop.f32.mrb[64].mxu1  ;;  %v667_v33 = vld [vmem:[#allocation5 + $0x1380] sm:$0xff] }
 0x31f   :  { %v7605_v45 = vpop.f32.mrb[65].mxu0  ;;  %v7648_v49 = vpop.f32.mrb[65].mxu1  ;;  %v10468_v43 = vcombine.low %v603_v32, %v667_v33 }
 0x320   :  { %v11044_v48 = vpack.c.bf16 %v7605_v45, %v7603_v40  ;;  %v7607_v50 = vpop.f32.mrb[66].mxu0  ;;  %8182 = vmatpush1.bf16.msra.mxu0 %v10592_v10  ;;  %v11045_v52 = vpack.c.bf16 %v7648_v49, %v7646_v44  ;;  %v7650_v53 = vpop.f32.mrb[66].mxu1  ;;  %8225 = vmatpush1.bf16.msra.mxu1 %v10594_v38  ;;  %v10469_v10 = vcombine.high %v603_v32, %v667_v33  ;;  %v795_v40 = vld [vmem:[#allocation5 + $0x1780] sm:$0xff]  ;;  %v860_v49 = vld [vmem:[#allocation5 + $0x1988] sm:$0xff]  ;;  %v350_v32 = vld [vmem:[#allocation5 + $0x998] sm:$0xff] }
 0x321   :  { %v7609_v54 = vpop.f32.mrb[67].mxu0  ;;  %8183 = vmatprep.subr.bf16.mxu0 %v10721_v39  ;;  %v7652_v58 = vpop.f32.mrb[67].mxu1  ;;  %8226 = vmatprep.subr.bf16.mxu1 %v10723_v41  ;;  %v10471_v38 = vcombine.high %v604_v34, %v668_v35  ;;  %v731_v39 = vld [vmem:[#allocation5 + $0x1580] sm:$0xff]  ;;  %v732_v41 = vld [vmem:[#allocation5 + $0x1588] sm:$0xff]  ;;  %v10470_v44 = vcombine.low %v604_v34, %v668_v35  ;;  %v414_v33 = vld [vmem:[#allocation5 + $0xb98] sm:$0xff]  ;;  %v10090_v35 = vcombine.low %v222_v23, %v286_v24 }
 0x322   :  { %9745 = vst [vmem:[#allocation7 + $0x100] sm:$0xff] %v11044_v48  ;;  %v11108_v57 = vpack.c.bf16 %v7609_v54, %v7607_v50  ;;  %9746 = vst [vmem:[#allocation7 + $0x108] sm:$0xff] %v11045_v52  ;;  %v11109_v62 = vpack.c.bf16 %v7652_v58, %v7650_v53  ;;  %v10597_v45 = vcombine.high %v731_v39, %v795_v40  ;;  %v923_v48 = vld [vmem:[#allocation5 + $0x1b80] sm:$0xff]  ;;  %v924_v50 = vld [vmem:[#allocation5 + $0x1b88] sm:$0xff] }
 0x323   :  { %v10599_v46 = vcombine.high %v732_v41, %v796_v42  ;;  %v10598_v52 = vcombine.low %v732_v41, %v796_v42  ;;  %v10725_v53 = vcombine.high %v859_v47, %v923_v48  ;;  %v10726_v6 = vcombine.low %v860_v49, %v924_v50 }
 0x324   :  { %9809 = vst [vmem:[#allocation7 + $0x300] sm:$0xff] %v11108_v57  ;;  %8184 = vmatpush1.bf16.msra.mxu0 %v10720_v51  ;;  %9810 = vst [vmem:[#allocation7 + $0x308] sm:$0xff] %v11109_v62  ;;  %8227 = vmatpush1.bf16.msra.mxu1 %v10722_v55  ;;  %v10596_v51 = vcombine.low %v731_v39, %v795_v40  ;;  %v10727_v55 = vcombine.high %v860_v49, %v924_v50  ;;  %v1051_v57 = vld [vmem:[#allocation5 + $0x1f80] sm:$0xff]  ;;  %v478_v39 = vld [vmem:[#allocation5 + $0xd98] sm:$0xff] }
 0x325   :  { %8185 = vmatprep.subr.bf16.mxu0 %v10849_v56  ;;  %8228 = vmatprep.subr.bf16.mxu1 %v10851_v59  ;;  %v987_v56 = vld [vmem:[#allocation5 + $0x1d80] sm:$0xff]  ;;  %v542_v40 = vld [vmem:[#allocation5 + $0xf98] sm:$0xff] }
 0x326   :  { %v10853_v7 = vcombine.high %v987_v56, %v1051_v57  ;;  %v10852_v17 = vcombine.low %v987_v56, %v1051_v57  ;;  %v10346_v49 = vcombine.low %v478_v39, %v542_v40 }
 0x328   :  { %8186 = vmatpush1.bf16.msra.mxu0 %v10848_v2  ;;  %8229 = vmatpush1.bf16.msra.mxu1 %v10850_v3  ;;  %v10724_v2 = vcombine.low %v859_v47, %v923_v48  ;;  %v670_v47 = vld [vmem:[#allocation5 + $0x1398] sm:$0xff] }
 0x329   :  { %8257 = vmatprep.subr.bf16.mxu0 %v9957_v4  ;;  %8300 = vmatprep.subr.bf16.mxu1 %v9959_v5 }
 0x32b   :  { %8204 = vmatmul.mubr.bf16.vlgmr.msra.gmra.mrb[92].mxu0 %v11367_v37  ;;  %8247 = vmatmul.mubr.bf16.vlgmr.msra.gmra.mrb[92].mxu1 %v11367_v37 }
 0x32c   :  { %8258 = vmatpush1.bf16.msra.mxu0 %v9956_v11  ;;  %8301 = vmatpush1.bf16.msra.mxu1 %v9958_v12  ;;  %v10855_v11 = vcombine.high %v988_v60, %v1052_v61  ;;  %v93_v12 = vld [vmem:[#allocation5 + $0x190] sm:$0xff] }
 0x32d   :  { %8259 = vmatprep.subr.bf16.mxu0 %v10085_v13  ;;  %8302 = vmatprep.subr.bf16.mxu1 %v10087_v14  ;;  %v157_v13 = vld [vmem:[#allocation5 + $0x390] sm:$0xff] }
 0x32e   :  { %8289 = vmatprep.mubr.bf16.mxu0 %v11233_v0  ;;  %8332 = vmatprep.mubr.bf16.mxu1 %v11233_v0  ;;  %v9960_v25 = vcombine.low %v93_v12, %v157_v13  ;;  %v861_v60 = vld [vmem:[#allocation5 + $0x1990] sm:$0xff] }
 0x32f   :  { %v925_v61 = vld [vmem:[#allocation5 + $0x1b90] sm:$0xff] }
 0x330   :  { %8260 = vmatpush1.bf16.msra.mxu0 %v10084_v19  ;;  %8303 = vmatpush1.bf16.msra.mxu1 %v10086_v20  ;;  %v9961_v19 = vcombine.high %v93_v12, %v157_v13  ;;  %v9963_v20 = vcombine.high %v94_v15, %v158_v16  ;;  %v1054_v12 = vld [vmem:[#allocation5 + $0x1f98] sm:$0xff]  ;;  %v10728_v16 = vcombine.low %v861_v60, %v925_v61 }
 0x331   :  { %8261 = vmatprep.subr.bf16.mxu0 %v10213_v28  ;;  %8304 = vmatprep.subr.bf16.mxu1 %v10215_v21  ;;  %v221_v28 = vld [vmem:[#allocation5 + $0x590] sm:$0xff] }
 0x332   :  { %v285_v21 = vld [vmem:[#allocation5 + $0x790] sm:$0xff] }
 0x333   :  { %v10088_v34 = vcombine.low %v221_v28, %v285_v21 }
 0x334   :  { %8262 = vmatpush1.bf16.msra.mxu0 %v10212_v27  ;;  %8305 = vmatpush1.bf16.msra.mxu1 %v10214_v22  ;;  %v10089_v27 = vcombine.high %v221_v28, %v285_v21  ;;  %v10091_v22 = vcombine.high %v222_v23, %v286_v24 }
 0x335   :  { %8263 = vmatprep.subr.bf16.mxu0 %v10341_v29  ;;  %8306 = vmatprep.subr.bf16.mxu1 %v10343_v31  ;;  %v349_v29 = vld [vmem:[#allocation5 + $0x990] sm:$0xff] }
 0x336   :  { %v413_v31 = vld [vmem:[#allocation5 + $0xb90] sm:$0xff] }
 0x337   :  { %v10216_v41 = vcombine.low %v349_v29, %v413_v31 }
 0x338   :  { %8264 = vmatpush1.bf16.msra.mxu0 %v10340_v30  ;;  %8307 = vmatpush1.bf16.msra.mxu1 %v10342_v36  ;;  %v10217_v30 = vcombine.high %v349_v29, %v413_v31  ;;  %v10219_v36 = vcombine.high %v350_v32, %v414_v33  ;;  %v160_v29 = vld [vmem:[#allocation5 + $0x3a8] sm:$0xff] }
 0x339   :  { %8265 = vmatprep.subr.bf16.mxu0 %v10469_v10  ;;  %8308 = vmatprep.subr.bf16.mxu1 %v10471_v38  ;;  %v477_v10 = vld [vmem:[#allocation5 + $0xd90] sm:$0xff] }
 0x33a   :  { %v541_v38 = vld [vmem:[#allocation5 + $0xf90] sm:$0xff] }
 0x33b   :  { %v10345_v42 = vcombine.high %v477_v10, %v541_v38  ;;  %v10344_v48 = vcombine.low %v477_v10, %v541_v38  ;;  %v288_v10 = vld [vmem:[#allocation5 + $0x7a8] sm:$0xff] }
 0x33c   :  { %8266 = vmatpush1.bf16.msra.mxu0 %v10468_v43  ;;  %8309 = vmatpush1.bf16.msra.mxu1 %v10470_v44  ;;  %v10347_v43 = vcombine.high %v478_v39, %v542_v40  ;;  %v605_v44 = vld [vmem:[#allocation5 + $0x1190] sm:$0xff] }
 0x33d   :  { %8267 = vmatprep.subr.bf16.mxu0 %v10597_v45  ;;  %8310 = vmatprep.subr.bf16.mxu1 %v10599_v46  ;;  %v669_v45 = vld [vmem:[#allocation5 + $0x1390] sm:$0xff]  ;;  %v606_v46 = vld [vmem:[#allocation5 + $0x1198] sm:$0xff] }
 0x33e   :  { %v7689_v54 = vpop.f32.mrb[68].mxu0  ;;  %v7732_v58 = vpop.f32.mrb[68].mxu1  ;;  %v10473_v50 = vcombine.high %v605_v44, %v669_v45  ;;  %v10472_v56 = vcombine.low %v605_v44, %v669_v45  ;;  %v10474_v57 = vcombine.low %v606_v46, %v670_v47  ;;  %v352_v44 = vld [vmem:[#allocation5 + $0x9a8] sm:$0xff] }
 0x33f   :  { %v7691_v59 = vpop.f32.mrb[69].mxu0  ;;  %v7734_v63 = vpop.f32.mrb[69].mxu1  ;;  %v416_v45 = vld [vmem:[#allocation5 + $0xba8] sm:$0xff] }
 0x340   :  { %v11046_v62 = vpack.c.bf16 %v7691_v59, %v7689_v54  ;;  %v7693_v1 = vpop.f32.mrb[70].mxu0  ;;  %8268 = vmatpush1.bf16.msra.mxu0 %v10596_v51  ;;  %v11047_v3 = vpack.c.bf16 %v7734_v63, %v7732_v58  ;;  %v7736_v4 = vpop.f32.mrb[70].mxu1  ;;  %8311 = vmatpush1.bf16.msra.mxu1 %v10598_v52  ;;  %v10475_v51 = vcombine.high %v606_v46, %v670_v47  ;;  %v733_v52 = vld [vmem:[#allocation5 + $0x1590] sm:$0xff]  ;;  %v734_v54 = vld [vmem:[#allocation5 + $0x1598] sm:$0xff] }
 0x341   :  { %v7695_v5 = vpop.f32.mrb[71].mxu0  ;;  %8269 = vmatprep.subr.bf16.mxu0 %v10725_v53  ;;  %v7738_v9 = vpop.f32.mrb[71].mxu1  ;;  %8312 = vmatprep.subr.bf16.mxu1 %v10727_v55  ;;  %v797_v53 = vld [vmem:[#allocation5 + $0x1790] sm:$0xff]  ;;  %v798_v55 = vld [vmem:[#allocation5 + $0x1798] sm:$0xff] }
 0x342   :  { %9747 = vst [vmem:[#allocation7 + $0x110] sm:$0xff] %v11046_v62  ;;  %v11110_v8 = vpack.c.bf16 %v7695_v5, %v7693_v1  ;;  %9748 = vst [vmem:[#allocation7 + $0x118] sm:$0xff] %v11047_v3  ;;  %v11111_v14 = vpack.c.bf16 %v7738_v9, %v7736_v4  ;;  %v10601_v58 = vcombine.high %v733_v52, %v797_v53  ;;  %v862_v62 = vld [vmem:[#allocation5 + $0x1998] sm:$0xff] }
 0x343   :  { %v10603_v59 = vcombine.high %v734_v54, %v798_v55  ;;  %v926_v63 = vld [vmem:[#allocation5 + $0x1b98] sm:$0xff]  ;;  %v10600_v1 = vcombine.low %v733_v52, %v797_v53  ;;  %v10729_v3 = vcombine.high %v861_v60, %v925_v61  ;;  %v480_v52 = vld [vmem:[#allocation5 + $0xda8] sm:$0xff] }
 0x344   :  { %9811 = vst [vmem:[#allocation7 + $0x310] sm:$0xff] %v11110_v8  ;;  %8270 = vmatpush1.bf16.msra.mxu0 %v10724_v2  ;;  %9812 = vst [vmem:[#allocation7 + $0x318] sm:$0xff] %v11111_v14  ;;  %8313 = vmatpush1.bf16.msra.mxu1 %v10726_v6  ;;  %v10602_v2 = vcombine.low %v734_v54, %v798_v55  ;;  %v10731_v5 = vcombine.high %v862_v62, %v926_v63  ;;  %v989_v6 = vld [vmem:[#allocation5 + $0x1d90] sm:$0xff]  ;;  %v544_v53 = vld [vmem:[#allocation5 + $0xfa8] sm:$0xff] }
 0x345   :  { %8271 = vmatprep.subr.bf16.mxu0 %v10853_v7  ;;  %8314 = vmatprep.subr.bf16.mxu1 %v10855_v11  ;;  %v1053_v7 = vld [vmem:[#allocation5 + $0x1f90] sm:$0xff]  ;;  %v990_v11 = vld [vmem:[#allocation5 + $0x1d98] sm:$0xff]  ;;  %v10222_v55 = vcombine.low %v352_v44, %v416_v45  ;;  %v608_v60 = vld [vmem:[#allocation5 + $0x11a8] sm:$0xff] }
 0x346   :  { %v10857_v28 = vcombine.high %v989_v6, %v1053_v7  ;;  %v10859_v24 = vcombine.high %v990_v11, %v1054_v12  ;;  %v10856_v31 = vcombine.low %v989_v6, %v1053_v7  ;;  %v672_v61 = vld [vmem:[#allocation5 + $0x13a8] sm:$0xff] }
 0x347   :  { %v800_v6 = vld [vmem:[#allocation5 + $0x17a8] sm:$0xff] }
 0x348   :  { %8272 = vmatpush1.bf16.msra.mxu0 %v10852_v17  ;;  %8315 = vmatpush1.bf16.msra.mxu1 %v10854_v18 }
 0x349   :  { %8343 = vmatprep.subr.bf16.mxu0 %v9961_v19  ;;  %8386 = vmatprep.subr.bf16.mxu1 %v9963_v20  ;;  %v10730_v20 = vcombine.low %v862_v62, %v926_v63  ;;  %v10350_v63 = vcombine.low %v480_v52, %v544_v53 }
 0x34b   :  { %8290 = vmatmul.mubr.bf16.vlgmr.msra.gmra.mrb[96].mxu0 %v11367_v37  ;;  %8333 = vmatmul.mubr.bf16.vlgmr.msra.gmra.mrb[96].mxu1 %v11367_v37  ;;  %v10218_v37 = vcombine.low %v350_v32, %v414_v33  ;;  %v10858_v32 = vcombine.low %v990_v11, %v1054_v12  ;;  %v863_v12 = vld [vmem:[#allocation5 + $0x19a0] sm:$0xff] }
 0x34c   :  { %8344 = vmatpush1.bf16.msra.mxu0 %v9960_v25  ;;  %8387 = vmatpush1.bf16.msra.mxu1 %v9962_v26  ;;  %v95_v25 = vld [vmem:[#allocation5 + $0x1a0] sm:$0xff] }
 0x34d   :  { %8345 = vmatprep.subr.bf16.mxu0 %v10089_v27  ;;  %8388 = vmatprep.subr.bf16.mxu1 %v10091_v22  ;;  %v159_v26 = vld [vmem:[#allocation5 + $0x3a0] sm:$0xff]  ;;  %v96_v22 = vld [vmem:[#allocation5 + $0x1a8] sm:$0xff] }
 0x34e   :  { %8375 = vmatprep.mubr.bf16.mxu0 %v11233_v0  ;;  %8418 = vmatprep.mubr.bf16.mxu1 %v11233_v0  ;;  %v9965_v33 = vcombine.high %v95_v25, %v159_v26  ;;  %v9964_v38 = vcombine.low %v95_v25, %v159_v26  ;;  %v9966_v39 = vcombine.low %v96_v22, %v160_v29  ;;  %v992_v25 = vld [vmem:[#allocation5 + $0x1da8] sm:$0xff] }
 0x34f   :  { %v1056_v26 = vld [vmem:[#allocation5 + $0x1fa8] sm:$0xff] }
 0x350   :  { %8346 = vmatpush1.bf16.msra.mxu0 %v10088_v34  ;;  %8389 = vmatpush1.bf16.msra.mxu1 %v10090_v35  ;;  %v9967_v34 = vcombine.high %v96_v22, %v160_v29  ;;  %v223_v35 = vld [vmem:[#allocation5 + $0x5a0] sm:$0xff] }
 0x351   :  { %8347 = vmatprep.subr.bf16.mxu0 %v10217_v30  ;;  %8390 = vmatprep.subr.bf16.mxu1 %v10219_v36  ;;  %v287_v30 = vld [vmem:[#allocation5 + $0x7a0] sm:$0xff]  ;;  %v224_v36 = vld [vmem:[#allocation5 + $0x5a8] sm:$0xff] }
 0x352   :  { %v10093_v40 = vcombine.high %v223_v35, %v287_v30  ;;  %v10092_v46 = vcombine.low %v223_v35, %v287_v30  ;;  %v10094_v47 = vcombine.low %v224_v36, %v288_v10 }
 0x354   :  { %8348 = vmatpush1.bf16.msra.mxu0 %v10216_v41  ;;  %8391 = vmatpush1.bf16.msra.mxu1 %v10218_v37  ;;  %v10095_v41 = vcombine.high %v224_v36, %v288_v10  ;;  %v351_v37 = vld [vmem:[#allocation5 + $0x9a0] sm:$0xff] }
 0x355   :  { %8349 = vmatprep.subr.bf16.mxu0 %v10345_v42  ;;  %8392 = vmatprep.subr.bf16.mxu1 %v10347_v43  ;;  %v415_v42 = vld [vmem:[#allocation5 + $0xba0] sm:$0xff]  ;;  %v11389_v43 = vld [vmem:[#allocation2] sm:$0xff]  }
 0x356   :  { %v10220_v54 = vcombine.low %v351_v37, %v415_v42 }
 0x358   :  { %8350 = vmatpush1.bf16.msra.mxu0 %v10344_v48  ;;  %8393 = vmatpush1.bf16.msra.mxu1 %v10346_v49  ;;  %v10221_v48 = vcombine.high %v351_v37, %v415_v42  ;;  %v10223_v49 = vcombine.high %v352_v44, %v416_v45  ;;  %v98_v37 = vld [vmem:[#allocation5 + $0x1b8] sm:$0xff]  ;;  %v10862_v45 = vcombine.low %v992_v25, %v1056_v26 }
 0x359   :  { %8351 = vmatprep.subr.bf16.mxu0 %v10473_v50  ;;  %8394 = vmatprep.subr.bf16.mxu1 %v10475_v51  ;;  %v479_v50 = vld [vmem:[#allocation5 + $0xda0] sm:$0xff]  ;;  %v162_v42 = vld [vmem:[#allocation5 + $0x3b8] sm:$0xff] }
 0x35a   :  { %v543_v51 = vld [vmem:[#allocation5 + $0xfa0] sm:$0xff] }
 0x35b   :  { %v10348_v62 = vcombine.low %v479_v50, %v543_v51 }
 0x35c   :  { %8352 = vmatpush1.bf16.msra.mxu0 %v10472_v56  ;;  %8395 = vmatpush1.bf16.msra.mxu1 %v10474_v57  ;;  %v10349_v56 = vcombine.high %v479_v50, %v543_v51  ;;  %v10351_v57 = vcombine.high %v480_v52, %v544_v53  ;;  %v226_v50 = vld [vmem:[#allocation5 + $0x5b8] sm:$0xff]  ;;  %v9970_v53 = vcombine.low %v98_v37, %v162_v42 }
 0x35d   :  { %8353 = vmatprep.subr.bf16.mxu0 %v10601_v58  ;;  %8396 = vmatprep.subr.bf16.mxu1 %v10603_v59  ;;  %v607_v58 = vld [vmem:[#allocation5 + $0x11a0] sm:$0xff]  ;;  %v290_v51 = vld [vmem:[#allocation5 + $0x7b8] sm:$0xff] }
 0x35e   :  { %v7775_v4 = vpop.f32.mrb[72].mxu0  ;;  %v7818_v8 = vpop.f32.mrb[72].mxu1  ;;  %v671_v59 = vld [vmem:[#allocation5 + $0x13a0] sm:$0xff] }
 0x35f   :  { %v7777_v9 = vpop.f32.mrb[73].mxu0  ;;  %v7820_v14 = vpop.f32.mrb[73].mxu1  ;;  %v10476_v7 = vcombine.low %v607_v58, %v671_v59 }
 0x360   :  { %v11048_v13 = vpack.c.bf16 %v7777_v9, %v7775_v4  ;;  %v7779_v15 = vpop.f32.mrb[74].mxu0  ;;  %8354 = vmatpush1.bf16.msra.mxu0 %v10600_v1  ;;  %v11049_v17 = vpack.c.bf16 %v7820_v14, %v7818_v8  ;;  %v7822_v18 = vpop.f32.mrb[74].mxu1  ;;  %8397 = vmatpush1.bf16.msra.mxu1 %v10602_v2  ;;  %v10477_v1 = vcombine.high %v607_v58, %v671_v59  ;;  %v799_v4 = vld [vmem:[#allocation5 + $0x17a0] sm:$0xff]  ;;  %v864_v14 = vld [vmem:[#allocation5 + $0x19a8] sm:$0xff]  ;;  %v354_v58 = vld [vmem:[#allocation5 + $0x9b8] sm:$0xff] }
 0x361   :  { %v7781_v19 = vpop.f32.mrb[75].mxu0  ;;  %8355 = vmatprep.subr.bf16.mxu0 %v10729_v3  ;;  %v7824_v23 = vpop.f32.mrb[75].mxu1  ;;  %8398 = vmatprep.subr.bf16.mxu1 %v10731_v5  ;;  %v10479_v2 = vcombine.high %v608_v60, %v672_v61  ;;  %v735_v3 = vld [vmem:[#allocation5 + $0x15a0] sm:$0xff]  ;;  %v736_v5 = vld [vmem:[#allocation5 + $0x15a8] sm:$0xff]  ;;  %v10478_v8 = vcombine.low %v608_v60, %v672_v61  ;;  %v418_v59 = vld [vmem:[#allocation5 + $0xbb8] sm:$0xff]  ;;  %v10098_v61 = vcombine.low %v226_v50, %v290_v51 }
 0x362   :  { %9749 = vst [vmem:[#allocation7 + $0x120] sm:$0xff] %v11048_v13  ;;  %v11112_v21 = vpack.c.bf16 %v7781_v19, %v7779_v15  ;;  %9750 = vst [vmem:[#allocation7 + $0x128] sm:$0xff] %v11049_v17  ;;  %v11113_v27 = vpack.c.bf16 %v7824_v23, %v7822_v18  ;;  %v10605_v9 = vcombine.high %v735_v3, %v799_v4  ;;  %v927_v13 = vld [vmem:[#allocation5 + $0x1ba0] sm:$0xff]  ;;  %v928_v15 = vld [vmem:[#allocation5 + $0x1ba8] sm:$0xff] }
 0x363   :  { %v10607_v11 = vcombine.high %v736_v5, %v800_v6  ;;  %v10606_v17 = vcombine.low %v736_v5, %v800_v6  ;;  %v10733_v18 = vcombine.high %v863_v12, %v927_v13  ;;  %v10734_v35 = vcombine.low %v864_v14, %v928_v15 }
 0x364   :  { %9813 = vst [vmem:[#allocation7 + $0x320] sm:$0xff] %v11112_v21  ;;  %8356 = vmatpush1.bf16.msra.mxu0 %v10728_v16  ;;  %9814 = vst [vmem:[#allocation7 + $0x328] sm:$0xff] %v11113_v27  ;;  %8399 = vmatpush1.bf16.msra.mxu1 %v10730_v20  ;;  %v10604_v16 = vcombine.low %v735_v3, %v799_v4  ;;  %v10735_v20 = vcombine.high %v864_v14, %v928_v15  ;;  %v1055_v21 = vld [vmem:[#allocation5 + $0x1fa0] sm:$0xff]  ;;  %v482_v3 = vld [vmem:[#allocation5 + $0xdb8] sm:$0xff] }
 0x365   :  { %8357 = vmatprep.subr.bf16.mxu0 %v10857_v28  ;;  %8400 = vmatprep.subr.bf16.mxu1 %v10859_v24  ;;  %v991_v28 = vld [vmem:[#allocation5 + $0x1da0] sm:$0xff]  ;;  %v546_v4 = vld [vmem:[#allocation5 + $0xfb8] sm:$0xff]  ;;  %v10226_v6 = vcombine.low %v354_v58, %v418_v59 }
 0x366   :  { %v10861_v30 = vcombine.high %v991_v28, %v1055_v21  ;;  %v10860_v44 = vcombine.low %v991_v28, %v1055_v21  ;;  %v10354_v15 = vcombine.low %v482_v3, %v546_v4  ;;  %v802_v28 = vld [vmem:[#allocation5 + $0x17b8] sm:$0xff] }
 0x368   :  { %8358 = vmatpush1.bf16.msra.mxu0 %v10856_v31  ;;  %8401 = vmatpush1.bf16.msra.mxu1 %v10858_v32  ;;  %v10732_v31 = vcombine.low %v863_v12, %v927_v13  ;;  %v610_v12 = vld [vmem:[#allocation5 + $0x11b8] sm:$0xff] }
 0x369   :  { %8429 = vmatprep.subr.bf16.mxu0 %v9965_v33  ;;  %8472 = vmatprep.subr.bf16.mxu1 %v9967_v34  ;;  %v674_v13 = vld [vmem:[#allocation5 + $0x13b8] sm:$0xff] }
 0x36b   :  { %8376 = vmatmul.mubr.bf16.vlgmr.msra.gmra.mrb[100].mxu0 %v11389_v43  ;;  %8419 = vmatmul.mubr.bf16.vlgmr.msra.gmra.mrb[100].mxu1 %v11389_v43 }
 0x36c   :  { %8430 = vmatpush1.bf16.msra.mxu0 %v9964_v38  ;;  %8473 = vmatpush1.bf16.msra.mxu1 %v9966_v39  ;;  %v10863_v38 = vcombine.high %v992_v25, %v1056_v26  ;;  %v97_v39 = vld [vmem:[#allocation5 + $0x1b0] sm:$0xff] }
 0x36d   :  { %8431 = vmatprep.subr.bf16.mxu0 %v10093_v40  ;;  %8474 = vmatprep.subr.bf16.mxu1 %v10095_v41  ;;  %v161_v40 = vld [vmem:[#allocation5 + $0x3b0] sm:$0xff] }
 0x36e   :  { %8461 = vmatprep.mubr.bf16.mxu0 %v11233_v0  ;;  %8504 = vmatprep.mubr.bf16.mxu1 %v11233_v0  ;;  %v9968_v52 = vcombine.low %v97_v39, %v161_v40  ;;  %v865_v26 = vld [vmem:[#allocation5 + $0x19b0] sm:$0xff] }
 0x370   :  { %8432 = vmatpush1.bf16.msra.mxu0 %v10092_v46  ;;  %8475 = vmatpush1.bf16.msra.mxu1 %v10094_v47  ;;  %v9969_v46 = vcombine.high %v97_v39, %v161_v40  ;;  %v9971_v47 = vcombine.high %v98_v37, %v162_v42  ;;  %v994_v39 = vld [vmem:[#allocation5 + $0x1db8] sm:$0xff] }
 0x371   :  { %8433 = vmatprep.subr.bf16.mxu0 %v10221_v48  ;;  %8476 = vmatprep.subr.bf16.mxu1 %v10223_v49  ;;  %v225_v48 = vld [vmem:[#allocation5 + $0x5b0] sm:$0xff]  ;;  %v1058_v40 = vld [vmem:[#allocation5 + $0x1fb8] sm:$0xff] }
 0x372   :  { %v289_v49 = vld [vmem:[#allocation5 + $0x7b0] sm:$0xff] }
 0x373   :  { %v10096_v60 = vcombine.low %v225_v48, %v289_v49 }
 0x374   :  { %8434 = vmatpush1.bf16.msra.mxu0 %v10220_v54  ;;  %8477 = vmatpush1.bf16.msra.mxu1 %v10222_v55  ;;  %v10097_v54 = vcombine.high %v225_v48, %v289_v49  ;;  %v10099_v55 = vcombine.high %v226_v50, %v290_v51 }
 0x375   :  { %8435 = vmatprep.subr.bf16.mxu0 %v10349_v56  ;;  %8478 = vmatprep.subr.bf16.mxu1 %v10351_v57  ;;  %v353_v56 = vld [vmem:[#allocation5 + $0x9b0] sm:$0xff] }
 0x376   :  { %v417_v57 = vld [vmem:[#allocation5 + $0xbb0] sm:$0xff] }
 0x377   :  { %v10224_v5 = vcombine.low %v353_v56, %v417_v57 }
 0x378   :  { %8436 = vmatpush1.bf16.msra.mxu0 %v10348_v62  ;;  %8479 = vmatpush1.bf16.msra.mxu1 %v10350_v63  ;;  %v10225_v62 = vcombine.high %v353_v56, %v417_v57  ;;  %v10227_v63 = vcombine.high %v354_v58, %v418_v59  ;;  %v100_v56 = vld [vmem:[#allocation5 + $0x1c8] sm:$0xff]  ;;  %v10866_v59 = vcombine.low %v994_v39, %v1058_v40 }
 0x379   :  { %8437 = vmatprep.subr.bf16.mxu0 %v10477_v1  ;;  %8480 = vmatprep.subr.bf16.mxu1 %v10479_v2  ;;  %v481_v1 = vld [vmem:[#allocation5 + $0xdb0] sm:$0xff]  ;;  %v164_v57 = vld [vmem:[#allocation5 + $0x3c8] sm:$0xff] }
 0x37a   :  { %v545_v2 = vld [vmem:[#allocation5 + $0xfb0] sm:$0xff] }
 0x37b   :  { %v10352_v14 = vcombine.low %v481_v1, %v545_v2 }
 0x37c   :  { %8438 = vmatpush1.bf16.msra.mxu0 %v10476_v7  ;;  %8481 = vmatpush1.bf16.msra.mxu1 %v10478_v8  ;;  %v10353_v7 = vcombine.high %v481_v1, %v545_v2  ;;  %v10355_v8 = vcombine.high %v482_v3, %v546_v4  ;;  %v228_v1 = vld [vmem:[#allocation5 + $0x5c8] sm:$0xff]  ;;  %v9974_v4 = vcombine.low %v100_v56, %v164_v57 }
 0x37d   :  { %8439 = vmatprep.subr.bf16.mxu0 %v10605_v9  ;;  %8482 = vmatprep.subr.bf16.mxu1 %v10607_v11  ;;  %v609_v9 = vld [vmem:[#allocation5 + $0x11b0] sm:$0xff]  ;;  %v292_v2 = vld [vmem:[#allocation5 + $0x7c8] sm:$0xff] }
 0x37e   :  { %v7861_v19 = vpop.f32.mrb[76].mxu0  ;;  %v7904_v23 = vpop.f32.mrb[76].mxu1  ;;  %v673_v11 = vld [vmem:[#allocation5 + $0x13b0] sm:$0xff] }
 0x37f   :  { %v7863_v24 = vpop.f32.mrb[77].mxu0  ;;  %v7906_v22 = vpop.f32.mrb[77].mxu1  ;;  %v10480_v21 = vcombine.low %v609_v9, %v673_v11 }
 0x380   :  { %v11050_v27 = vpack.c.bf16 %v7863_v24, %v7861_v19  ;;  %v7865_v29 = vpop.f32.mrb[78].mxu0  ;;  %8440 = vmatpush1.bf16.msra.mxu0 %v10604_v16  ;;  %v11051_v32 = vpack.c.bf16 %v7906_v22, %v7904_v23  ;;  %v7908_v33 = vpop.f32.mrb[78].mxu1  ;;  %8483 = vmatpush1.bf16.msra.mxu1 %v10606_v17  ;;  %v10481_v16 = vcombine.high %v609_v9, %v673_v11  ;;  %v801_v19 = vld [vmem:[#allocation5 + $0x17b0] sm:$0xff]  ;;  %v866_v22 = vld [vmem:[#allocation5 + $0x19b8] sm:$0xff]  ;;  %v356_v9 = vld [vmem:[#allocation5 + $0x9c8] sm:$0xff] }
 0x381   :  { %v7867_v34 = vpop.f32.mrb[79].mxu0  ;;  %8441 = vmatprep.subr.bf16.mxu0 %v10733_v18  ;;  %v7910_v10 = vpop.f32.mrb[79].mxu1  ;;  %8484 = vmatprep.subr.bf16.mxu1 %v10735_v20  ;;  %v10483_v17 = vcombine.high %v610_v12, %v674_v13  ;;  %v737_v18 = vld [vmem:[#allocation5 + $0x15b0] sm:$0xff]  ;;  %v738_v20 = vld [vmem:[#allocation5 + $0x15b8] sm:$0xff]  ;;  %v10482_v23 = vcombine.low %v610_v12, %v674_v13  ;;  %v420_v11 = vld [vmem:[#allocation5 + $0xbc8] sm:$0xff]  ;;  %v10102_v13 = vcombine.low %v228_v1, %v292_v2 }
 0x382   :  { %9751 = vst [vmem:[#allocation7 + $0x130] sm:$0xff] %v11050_v27  ;;  %v11114_v36 = vpack.c.bf16 %v7867_v34, %v7865_v29  ;;  %9752 = vst [vmem:[#allocation7 + $0x138] sm:$0xff] %v11051_v32  ;;  %v11115_v41 = vpack.c.bf16 %v7910_v10, %v7908_v33  ;;  %v10609_v24 = vcombine.high %v737_v18, %v801_v19  ;;  %v929_v27 = vld [vmem:[#allocation5 + $0x1bb0] sm:$0xff]  ;;  %v930_v29 = vld [vmem:[#allocation5 + $0x1bb8] sm:$0xff] }
 0x383   :  { %v10611_v25 = vcombine.high %v738_v20, %v802_v28  ;;  %v10610_v32 = vcombine.low %v738_v20, %v802_v28  ;;  %v10737_v33 = vcombine.high %v865_v26, %v929_v27  ;;  %v10738_v48 = vcombine.low %v866_v22, %v930_v29 }
 0x384   :  { %9815 = vst [vmem:[#allocation7 + $0x330] sm:$0xff] %v11114_v36  ;;  %8442 = vmatpush1.bf16.msra.mxu0 %v10732_v31  ;;  %9816 = vst [vmem:[#allocation7 + $0x338] sm:$0xff] %v11115_v41  ;;  %8485 = vmatpush1.bf16.msra.mxu1 %v10734_v35  ;;  %v10608_v31 = vcombine.low %v737_v18, %v801_v19  ;;  %v10739_v35 = vcombine.high %v866_v22, %v930_v29  ;;  %v1057_v36 = vld [vmem:[#allocation5 + $0x1fb0] sm:$0xff]  ;;  %v484_v18 = vld [vmem:[#allocation5 + $0xdc8] sm:$0xff] }
 0x385   :  { %8443 = vmatprep.subr.bf16.mxu0 %v10861_v30  ;;  %8486 = vmatprep.subr.bf16.mxu1 %v10863_v38  ;;  %v993_v30 = vld [vmem:[#allocation5 + $0x1db0] sm:$0xff]  ;;  %v548_v19 = vld [vmem:[#allocation5 + $0xfc8] sm:$0xff]  ;;  %v10230_v28 = vcombine.low %v356_v9, %v420_v11 }
 0x386   :  { %v10865_v49 = vcombine.high %v993_v30, %v1057_v36  ;;  %v10864_v58 = vcombine.low %v993_v30, %v1057_v36  ;;  %v10358_v29 = vcombine.low %v484_v18, %v548_v19  ;;  %v804_v30 = vld [vmem:[#allocation5 + $0x17c8] sm:$0xff] }
 0x388   :  { %8444 = vmatpush1.bf16.msra.mxu0 %v10860_v44  ;;  %8487 = vmatpush1.bf16.msra.mxu1 %v10862_v45  ;;  %v10736_v44 = vcombine.low %v865_v26, %v929_v27  ;;  %v612_v26 = vld [vmem:[#allocation5 + $0x11c8] sm:$0xff] }
 0x389   :  { %8515 = vmatprep.subr.bf16.mxu0 %v9969_v46  ;;  %8558 = vmatprep.subr.bf16.mxu1 %v9971_v47  ;;  %v676_v27 = vld [vmem:[#allocation5 + $0x13c8] sm:$0xff] }
 0x38b   :  { %8462 = vmatmul.mubr.bf16.vlgmr.msra.gmra.mrb[104].mxu0 %v11389_v43  ;;  %8505 = vmatmul.mubr.bf16.vlgmr.msra.gmra.mrb[104].mxu1 %v11389_v43 }
 0x38c   :  { %8516 = vmatpush1.bf16.msra.mxu0 %v9968_v52  ;;  %8559 = vmatpush1.bf16.msra.mxu1 %v9970_v53  ;;  %v10867_v52 = vcombine.high %v994_v39, %v1058_v40  ;;  %v99_v53 = vld [vmem:[#allocation5 + $0x1c0] sm:$0xff] }
 0x38d   :  { %8517 = vmatprep.subr.bf16.mxu0 %v10097_v54  ;;  %8560 = vmatprep.subr.bf16.mxu1 %v10099_v55  ;;  %v163_v54 = vld [vmem:[#allocation5 + $0x3c0] sm:$0xff] }
 0x38e   :  { %8547 = vmatprep.mubr.bf16.mxu0 %v11233_v0  ;;  %8590 = vmatprep.mubr.bf16.mxu1 %v11233_v0  ;;  %v9972_v3 = vcombine.low %v99_v53, %v163_v54  ;;  %v867_v40 = vld [vmem:[#allocation5 + $0x19c0] sm:$0xff] }
 0x390   :  { %8518 = vmatpush1.bf16.msra.mxu0 %v10096_v60  ;;  %8561 = vmatpush1.bf16.msra.mxu1 %v10098_v61  ;;  %v9973_v60 = vcombine.high %v99_v53, %v163_v54  ;;  %v9975_v61 = vcombine.high %v100_v56, %v164_v57  ;;  %v996_v53 = vld [vmem:[#allocation5 + $0x1dc8] sm:$0xff] }
 0x391   :  { %8519 = vmatprep.subr.bf16.mxu0 %v10225_v62  ;;  %8562 = vmatprep.subr.bf16.mxu1 %v10227_v63  ;;  %v227_v62 = vld [vmem:[#allocation5 + $0x5c0] sm:$0xff]  ;;  %v1060_v54 = vld [vmem:[#allocation5 + $0x1fc8] sm:$0xff] }
 0x392   :  { %v291_v63 = vld [vmem:[#allocation5 + $0x7c0] sm:$0xff] }
 0x393   :  { %v10100_v12 = vcombine.low %v227_v62, %v291_v63 }
 0x394   :  { %8520 = vmatpush1.bf16.msra.mxu0 %v10224_v5  ;;  %8563 = vmatpush1.bf16.msra.mxu1 %v10226_v6  ;;  %v10101_v5 = vcombine.high %v227_v62, %v291_v63  ;;  %v10103_v6 = vcombine.high %v228_v1, %v292_v2 }
 0x395   :  { %8521 = vmatprep.subr.bf16.mxu0 %v10353_v7  ;;  %8564 = vmatprep.subr.bf16.mxu1 %v10355_v8  ;;  %v355_v7 = vld [vmem:[#allocation5 + $0x9c0] sm:$0xff] }
 0x396   :  { %v419_v8 = vld [vmem:[#allocation5 + $0xbc0] sm:$0xff] }
 0x397   :  { %v10228_v20 = vcombine.low %v355_v7, %v419_v8 }
 0x398   :  { %8522 = vmatpush1.bf16.msra.mxu0 %v10352_v14  ;;  %8565 = vmatpush1.bf16.msra.mxu1 %v10354_v15  ;;  %v10229_v14 = vcombine.high %v355_v7, %v419_v8  ;;  %v10231_v15 = vcombine.high %v356_v9, %v420_v11  ;;  %v102_v7 = vld [vmem:[#allocation5 + $0x1d8] sm:$0xff]  ;;  %v10870_v11 = vcombine.low %v996_v53, %v1060_v54 }
 0x399   :  { %8523 = vmatprep.subr.bf16.mxu0 %v10481_v16  ;;  %8566 = vmatprep.subr.bf16.mxu1 %v10483_v17  ;;  %v483_v16 = vld [vmem:[#allocation5 + $0xdc0] sm:$0xff]  ;;  %v166_v8 = vld [vmem:[#allocation5 + $0x3d8] sm:$0xff] }
 0x39a   :  { %v547_v17 = vld [vmem:[#allocation5 + $0xfc0] sm:$0xff] }
 0x39b   :  { %v10356_v22 = vcombine.low %v483_v16, %v547_v17 }
 0x39c   :  { %8524 = vmatpush1.bf16.msra.mxu0 %v10480_v21  ;;  %8567 = vmatpush1.bf16.msra.mxu1 %v10482_v23  ;;  %v10357_v21 = vcombine.high %v483_v16, %v547_v17  ;;  %v10359_v23 = vcombine.high %v484_v18, %v548_v19  ;;  %v230_v16 = vld [vmem:[#allocation5 + $0x5d8] sm:$0xff]  ;;  %v9978_v19 = vcombine.low %v102_v7, %v166_v8 }
 0x39d   :  { %8525 = vmatprep.subr.bf16.mxu0 %v10609_v24  ;;  %8568 = vmatprep.subr.bf16.mxu1 %v10611_v25  ;;  %v611_v24 = vld [vmem:[#allocation5 + $0x11c0] sm:$0xff]  ;;  %v294_v17 = vld [vmem:[#allocation5 + $0x7d8] sm:$0xff] }
 0x39e   :  { %v7947_v34 = vpop.f32.mrb[80].mxu0  ;;  %v7990_v10 = vpop.f32.mrb[80].mxu1  ;;  %v675_v25 = vld [vmem:[#allocation5 + $0x13c0] sm:$0xff] }
 0x39f   :  { %v7949_v38 = vpop.f32.mrb[81].mxu0  ;;  %v7992_v37 = vpop.f32.mrb[81].mxu1  ;;  %v10484_v36 = vcombine.low %v611_v24, %v675_v25 }
 0x3a0   :  { %v11052_v41 = vpack.c.bf16 %v7949_v38, %v7947_v34  ;;  %v7951_v42 = vpop.f32.mrb[82].mxu0  ;;  %8526 = vmatpush1.bf16.msra.mxu0 %v10608_v31  ;;  %v11053_v45 = vpack.c.bf16 %v7992_v37, %v7990_v10  ;;  %v7994_v46 = vpop.f32.mrb[82].mxu1  ;;  %8569 = vmatpush1.bf16.msra.mxu1 %v10610_v32  ;;  %v10485_v31 = vcombine.high %v611_v24, %v675_v25  ;;  %v803_v34 = vld [vmem:[#allocation5 + $0x17c0] sm:$0xff]  ;;  %v868_v37 = vld [vmem:[#allocation5 + $0x19c8] sm:$0xff]  ;;  %v358_v24 = vld [vmem:[#allocation5 + $0x9d8] sm:$0xff] }
 0x3a1   :  { %v7953_v47 = vpop.f32.mrb[83].mxu0  ;;  %8527 = vmatprep.subr.bf16.mxu0 %v10737_v33  ;;  %v7996_v51 = vpop.f32.mrb[83].mxu1  ;;  %8570 = vmatprep.subr.bf16.mxu1 %v10739_v35  ;;  %v10487_v32 = vcombine.high %v612_v26, %v676_v27  ;;  %v739_v33 = vld [vmem:[#allocation5 + $0x15c0] sm:$0xff]  ;;  %v740_v35 = vld [vmem:[#allocation5 + $0x15c8] sm:$0xff]  ;;  %v10486_v10 = vcombine.low %v612_v26, %v676_v27  ;;  %v422_v25 = vld [vmem:[#allocation5 + $0xbd8] sm:$0xff]  ;;  %v10106_v27 = vcombine.low %v230_v16, %v294_v17 }
 0x3a2   :  { %9753 = vst [vmem:[#allocation7 + $0x140] sm:$0xff] %v11052_v41  ;;  %v11116_v50 = vpack.c.bf16 %v7953_v47, %v7951_v42  ;;  %9754 = vst [vmem:[#allocation7 + $0x148] sm:$0xff] %v11053_v45  ;;  %v11117_v55 = vpack.c.bf16 %v7996_v51, %v7994_v46  ;;  %v10613_v38 = vcombine.high %v739_v33, %v803_v34  ;;  %v931_v41 = vld [vmem:[#allocation5 + $0x1bc0] sm:$0xff]  ;;  %v932_v42 = vld [vmem:[#allocation5 + $0x1bc8] sm:$0xff] }
 0x3a3   :  { %v10615_v39 = vcombine.high %v740_v35, %v804_v30  ;;  %v10614_v45 = vcombine.low %v740_v35, %v804_v30  ;;  %v10741_v46 = vcombine.high %v867_v40, %v931_v41  ;;  %v10742_v62 = vcombine.low %v868_v37, %v932_v42 }
 0x3a4   :  { %9817 = vst [vmem:[#allocation7 + $0x340] sm:$0xff] %v11116_v50  ;;  %8528 = vmatpush1.bf16.msra.mxu0 %v10736_v44  ;;  %9818 = vst [vmem:[#allocation7 + $0x348] sm:$0xff] %v11117_v55  ;;  %8571 = vmatpush1.bf16.msra.mxu1 %v10738_v48  ;;  %v10612_v44 = vcombine.low %v739_v33, %v803_v34  ;;  %v10743_v48 = vcombine.high %v868_v37, %v932_v42  ;;  %v1059_v50 = vld [vmem:[#allocation5 + $0x1fc0] sm:$0xff]  ;;  %v486_v33 = vld [vmem:[#allocation5 + $0xdd8] sm:$0xff] }
 0x3a5   :  { %8529 = vmatprep.subr.bf16.mxu0 %v10865_v49  ;;  %8572 = vmatprep.subr.bf16.mxu1 %v10867_v52  ;;  %v995_v49 = vld [vmem:[#allocation5 + $0x1dc0] sm:$0xff]  ;;  %v550_v34 = vld [vmem:[#allocation5 + $0xfd8] sm:$0xff]  ;;  %v10234_v30 = vcombine.low %v358_v24, %v422_v25 }
 0x3a6   :  { %v10869_v63 = vcombine.high %v995_v49, %v1059_v50  ;;  %v10868_v9 = vcombine.low %v995_v49, %v1059_v50  ;;  %v10362_v42 = vcombine.low %v486_v33, %v550_v34  ;;  %v806_v49 = vld [vmem:[#allocation5 + $0x17d8] sm:$0xff] }
 0x3a8   :  { %8530 = vmatpush1.bf16.msra.mxu0 %v10864_v58  ;;  %8573 = vmatpush1.bf16.msra.mxu1 %v10866_v59  ;;  %v10740_v58 = vcombine.low %v867_v40, %v931_v41  ;;  %v614_v40 = vld [vmem:[#allocation5 + $0x11d8] sm:$0xff] }
 0x3a9   :  { %8601 = vmatprep.subr.bf16.mxu0 %v9973_v60  ;;  %8644 = vmatprep.subr.bf16.mxu1 %v9975_v61  ;;  %v678_v41 = vld [vmem:[#allocation5 + $0x13d8] sm:$0xff] }
 0x3ab   :  { %8548 = vmatmul.mubr.bf16.vlgmr.msra.gmra.mrb[108].mxu0 %v11389_v43  ;;  %8591 = vmatmul.mubr.bf16.vlgmr.msra.gmra.mrb[108].mxu1 %v11389_v43 }
 0x3ac   :  { %8602 = vmatpush1.bf16.msra.mxu0 %v9972_v3  ;;  %8645 = vmatpush1.bf16.msra.mxu1 %v9974_v4  ;;  %v10871_v3 = vcombine.high %v996_v53, %v1060_v54  ;;  %v101_v4 = vld [vmem:[#allocation5 + $0x1d0] sm:$0xff] }
 0x3ad   :  { %8603 = vmatprep.subr.bf16.mxu0 %v10101_v5  ;;  %8646 = vmatprep.subr.bf16.mxu1 %v10103_v6  ;;  %v165_v5 = vld [vmem:[#allocation5 + $0x3d0] sm:$0xff] }
 0x3ae   :  { %8633 = vmatprep.mubr.bf16.mxu0 %v11233_v0  ;;  %8676 = vmatprep.mubr.bf16.mxu1 %v11233_v0  ;;  %v9976_v18 = vcombine.low %v101_v4, %v165_v5  ;;  %v869_v54 = vld [vmem:[#allocation5 + $0x19d0] sm:$0xff] }
 0x3b0   :  { %8604 = vmatpush1.bf16.msra.mxu0 %v10100_v12  ;;  %8647 = vmatpush1.bf16.msra.mxu1 %v10102_v13  ;;  %v9977_v12 = vcombine.high %v101_v4, %v165_v5  ;;  %v9979_v13 = vcombine.high %v102_v7, %v166_v8  ;;  %v998_v4 = vld [vmem:[#allocation5 + $0x1dd8] sm:$0xff] }
 0x3b1   :  { %8605 = vmatprep.subr.bf16.mxu0 %v10229_v14  ;;  %8648 = vmatprep.subr.bf16.mxu1 %v10231_v15  ;;  %v229_v14 = vld [vmem:[#allocation5 + $0x5d0] sm:$0xff]  ;;  %v1062_v5 = vld [vmem:[#allocation5 + $0x1fd8] sm:$0xff] }
 0x3b2   :  { %v293_v15 = vld [vmem:[#allocation5 + $0x7d0] sm:$0xff] }
 0x3b3   :  { %v10104_v26 = vcombine.low %v229_v14, %v293_v15 }
 0x3b4   :  { %8606 = vmatpush1.bf16.msra.mxu0 %v10228_v20  ;;  %8649 = vmatpush1.bf16.msra.mxu1 %v10230_v28  ;;  %v10105_v20 = vcombine.high %v229_v14, %v293_v15  ;;  %v10107_v28 = vcombine.high %v230_v16, %v294_v17 }
 0x3b5   :  { %8607 = vmatprep.subr.bf16.mxu0 %v10357_v21  ;;  %8650 = vmatprep.subr.bf16.mxu1 %v10359_v23  ;;  %v357_v21 = vld [vmem:[#allocation5 + $0x9d0] sm:$0xff] }
 0x3b6   :  { %v421_v23 = vld [vmem:[#allocation5 + $0xbd0] sm:$0xff] }
 0x3b7   :  { %v10232_v35 = vcombine.low %v357_v21, %v421_v23 }
 0x3b8   :  { %8608 = vmatpush1.bf16.msra.mxu0 %v10356_v22  ;;  %8651 = vmatpush1.bf16.msra.mxu1 %v10358_v29  ;;  %v10233_v22 = vcombine.high %v357_v21, %v421_v23  ;;  %v10235_v29 = vcombine.high %v358_v24, %v422_v25  ;;  %v104_v21 = vld [vmem:[#allocation5 + $0x1e8] sm:$0xff]  ;;  %v10874_v25 = vcombine.low %v998_v4, %v1062_v5 }
 0x3b9   :  { %8609 = vmatprep.subr.bf16.mxu0 %v10485_v31  ;;  %8652 = vmatprep.subr.bf16.mxu1 %v10487_v32  ;;  %v485_v31 = vld [vmem:[#allocation5 + $0xdd0] sm:$0xff]  ;;  %v168_v23 = vld [vmem:[#allocation5 + $0x3e8] sm:$0xff] }
 0x3ba   :  { %v549_v32 = vld [vmem:[#allocation5 + $0xfd0] sm:$0xff] }
 0x3bb   :  { %v10360_v37 = vcombine.low %v485_v31, %v549_v32 }
 0x3bc   :  { %8610 = vmatpush1.bf16.msra.mxu0 %v10484_v36  ;;  %8653 = vmatpush1.bf16.msra.mxu1 %v10486_v10  ;;  %v10361_v36 = vcombine.high %v485_v31, %v549_v32  ;;  %v10363_v10 = vcombine.high %v486_v33, %v550_v34  ;;  %v232_v31 = vld [vmem:[#allocation5 + $0x5e8] sm:$0xff]  ;;  %v9982_v34 = vcombine.low %v104_v21, %v168_v23 }
 0x3bd   :  { %8611 = vmatprep.subr.bf16.mxu0 %v10613_v38  ;;  %8654 = vmatprep.subr.bf16.mxu1 %v10615_v39  ;;  %v613_v38 = vld [vmem:[#allocation5 + $0x11d0] sm:$0xff]  ;;  %v296_v32 = vld [vmem:[#allocation5 + $0x7e8] sm:$0xff] }
 0x3be   :  { %v8033_v47 = vpop.f32.mrb[84].mxu0  ;;  %v8076_v51 = vpop.f32.mrb[84].mxu1  ;;  %v677_v39 = vld [vmem:[#allocation5 + $0x13d0] sm:$0xff] }
 0x3bf   :  { %v8035_v52 = vpop.f32.mrb[85].mxu0  ;;  %v8078_v56 = vpop.f32.mrb[85].mxu1  ;;  %v10488_v50 = vcombine.low %v613_v38, %v677_v39 }
 0x3c0   :  { %v11054_v55 = vpack.c.bf16 %v8035_v52, %v8033_v47  ;;  %v8037_v57 = vpop.f32.mrb[86].mxu0  ;;  %8612 = vmatpush1.bf16.msra.mxu0 %v10612_v44  ;;  %v11055_v59 = vpack.c.bf16 %v8078_v56, %v8076_v51  ;;  %v8080_v60 = vpop.f32.mrb[86].mxu1  ;;  %8655 = vmatpush1.bf16.msra.mxu1 %v10614_v45  ;;  %v10489_v44 = vcombine.high %v613_v38, %v677_v39  ;;  %v805_v47 = vld [vmem:[#allocation5 + $0x17d0] sm:$0xff]  ;;  %v870_v56 = vld [vmem:[#allocation5 + $0x19d8] sm:$0xff]  ;;  %v360_v38 = vld [vmem:[#allocation5 + $0x9e8] sm:$0xff] }
 0x3c1   :  { %v8039_v61 = vpop.f32.mrb[87].mxu0  ;;  %8613 = vmatprep.subr.bf16.mxu0 %v10741_v46  ;;  %v8082_v2 = vpop.f32.mrb[87].mxu1  ;;  %8656 = vmatprep.subr.bf16.mxu1 %v10743_v48  ;;  %v10491_v45 = vcombine.high %v614_v40, %v678_v41  ;;  %v741_v46 = vld [vmem:[#allocation5 + $0x15d0] sm:$0xff]  ;;  %v742_v48 = vld [vmem:[#allocation5 + $0x15d8] sm:$0xff]  ;;  %v10490_v51 = vcombine.low %v614_v40, %v678_v41  ;;  %v424_v39 = vld [vmem:[#allocation5 + $0xbe8] sm:$0xff]  ;;  %v10110_v41 = vcombine.low %v232_v31, %v296_v32 }
 0x3c2   :  { %9755 = vst [vmem:[#allocation7 + $0x150] sm:$0xff] %v11054_v55  ;;  %v11118_v1 = vpack.c.bf16 %v8039_v61, %v8037_v57  ;;  %9756 = vst [vmem:[#allocation7 + $0x158] sm:$0xff] %v11055_v59  ;;  %v11119_v6 = vpack.c.bf16 %v8082_v2, %v8080_v60  ;;  %v10617_v52 = vcombine.high %v741_v46, %v805_v47  ;;  %v933_v55 = vld [vmem:[#allocation5 + $0x1bd0] sm:$0xff]  ;;  %v934_v57 = vld [vmem:[#allocation5 + $0x1bd8] sm:$0xff] }
 0x3c3   :  { %v10619_v53 = vcombine.high %v742_v48, %v806_v49  ;;  %v10618_v59 = vcombine.low %v742_v48, %v806_v49  ;;  %v10745_v60 = vcombine.high %v869_v54, %v933_v55  ;;  %v10746_v14 = vcombine.low %v870_v56, %v934_v57 }
 0x3c4   :  { %9819 = vst [vmem:[#allocation7 + $0x350] sm:$0xff] %v11118_v1  ;;  %8614 = vmatpush1.bf16.msra.mxu0 %v10740_v58  ;;  %9820 = vst [vmem:[#allocation7 + $0x358] sm:$0xff] %v11119_v6  ;;  %8657 = vmatpush1.bf16.msra.mxu1 %v10742_v62  ;;  %v10616_v58 = vcombine.low %v741_v46, %v805_v47  ;;  %v10747_v62 = vcombine.high %v870_v56, %v934_v57  ;;  %v1061_v1 = vld [vmem:[#allocation5 + $0x1fd0] sm:$0xff]  ;;  %v488_v46 = vld [vmem:[#allocation5 + $0xde8] sm:$0xff] }
 0x3c5   :  { %8615 = vmatprep.subr.bf16.mxu0 %v10869_v63  ;;  %8658 = vmatprep.subr.bf16.mxu1 %v10871_v3  ;;  %v997_v63 = vld [vmem:[#allocation5 + $0x1dd0] sm:$0xff]  ;;  %v552_v47 = vld [vmem:[#allocation5 + $0xfe8] sm:$0xff] }
 0x3c6   :  { %v10873_v15 = vcombine.high %v997_v63, %v1061_v1  ;;  %v10872_v24 = vcombine.low %v997_v63, %v1061_v1  ;;  %v10366_v56 = vcombine.low %v488_v46, %v552_v47 }
 0x3c8   :  { %8616 = vmatpush1.bf16.msra.mxu0 %v10868_v9  ;;  %8659 = vmatpush1.bf16.msra.mxu1 %v10870_v11  ;;  %v10744_v9 = vcombine.low %v869_v54, %v933_v55  ;;  %v680_v54 = vld [vmem:[#allocation5 + $0x13e8] sm:$0xff] }
 0x3c9   :  { %8687 = vmatprep.subr.bf16.mxu0 %v9977_v12  ;;  %8730 = vmatprep.subr.bf16.mxu1 %v9979_v13 }
 0x3cb   :  { %8634 = vmatmul.mubr.bf16.vlgmr.msra.gmra.mrb[112].mxu0 %v11389_v43  ;;  %8677 = vmatmul.mubr.bf16.vlgmr.msra.gmra.mrb[112].mxu1 %v11389_v43 }
 0x3cc   :  { %8688 = vmatpush1.bf16.msra.mxu0 %v9976_v18  ;;  %8731 = vmatpush1.bf16.msra.mxu1 %v9978_v19  ;;  %v10875_v18 = vcombine.high %v998_v4, %v1062_v5  ;;  %v103_v19 = vld [vmem:[#allocation5 + $0x1e0] sm:$0xff] }
 0x3cd   :  { %8689 = vmatprep.subr.bf16.mxu0 %v10105_v20  ;;  %8732 = vmatprep.subr.bf16.mxu1 %v10107_v28  ;;  %v167_v20 = vld [vmem:[#allocation5 + $0x3e0] sm:$0xff] }
 0x3ce   :  { %8719 = vmatprep.mubr.bf16.mxu0 %v11233_v0  ;;  %8762 = vmatprep.mubr.bf16.mxu1 %v11233_v0  ;;  %v9980_v33 = vcombine.low %v103_v19, %v167_v20  ;;  %v871_v4 = vld [vmem:[#allocation5 + $0x19e0] sm:$0xff] }
 0x3cf   :  { %v935_v5 = vld [vmem:[#allocation5 + $0x1be0] sm:$0xff] }
 0x3d0   :  { %8690 = vmatpush1.bf16.msra.mxu0 %v10104_v26  ;;  %8733 = vmatpush1.bf16.msra.mxu1 %v10106_v27  ;;  %v9981_v26 = vcombine.high %v103_v19, %v167_v20  ;;  %v9983_v27 = vcombine.high %v104_v21, %v168_v23  ;;  %v1064_v19 = vld [vmem:[#allocation5 + $0x1fe8] sm:$0xff]  ;;  %v10748_v23 = vcombine.low %v871_v4, %v935_v5 }
 0x3d1   :  { %8691 = vmatprep.subr.bf16.mxu0 %v10233_v22  ;;  %8734 = vmatprep.subr.bf16.mxu1 %v10235_v29  ;;  %v231_v22 = vld [vmem:[#allocation5 + $0x5e0] sm:$0xff] }
 0x3d2   :  { %v295_v29 = vld [vmem:[#allocation5 + $0x7e0] sm:$0xff] }
 0x3d3   :  { %v10108_v40 = vcombine.low %v231_v22, %v295_v29 }
 0x3d4   :  { %8692 = vmatpush1.bf16.msra.mxu0 %v10232_v35  ;;  %8735 = vmatpush1.bf16.msra.mxu1 %v10234_v30  ;;  %v10109_v35 = vcombine.high %v231_v22, %v295_v29  ;;  %v10111_v30 = vcombine.high %v232_v31, %v296_v32 }
 0x3d5   :  { %8693 = vmatprep.subr.bf16.mxu0 %v10361_v36  ;;  %8736 = vmatprep.subr.bf16.mxu1 %v10363_v10  ;;  %v359_v36 = vld [vmem:[#allocation5 + $0x9e0] sm:$0xff] }
 0x3d6   :  { %v423_v10 = vld [vmem:[#allocation5 + $0xbe0] sm:$0xff] }
 0x3d7   :  { %v10236_v48 = vcombine.low %v359_v36, %v423_v10 }
 0x3d8   :  { %8694 = vmatpush1.bf16.msra.mxu0 %v10360_v37  ;;  %8737 = vmatpush1.bf16.msra.mxu1 %v10362_v42  ;;  %v10237_v37 = vcombine.high %v359_v36, %v423_v10  ;;  %v10239_v42 = vcombine.high %v360_v38, %v424_v39  ;;  %v170_v36 = vld [vmem:[#allocation5 + $0x3f8] sm:$0xff] }
 0x3d9   :  { %8695 = vmatprep.subr.bf16.mxu0 %v10489_v44  ;;  %8738 = vmatprep.subr.bf16.mxu1 %v10491_v45  ;;  %v487_v44 = vld [vmem:[#allocation5 + $0xde0] sm:$0xff] }
 0x3da   :  { %v551_v45 = vld [vmem:[#allocation5 + $0xfe0] sm:$0xff] }
 0x3db   :  { %v10365_v49 = vcombine.high %v487_v44, %v551_v45  ;;  %v10364_v55 = vcombine.low %v487_v44, %v551_v45  ;;  %v298_v44 = vld [vmem:[#allocation5 + $0x7f8] sm:$0xff] }
 0x3dc   :  { %8696 = vmatpush1.bf16.msra.mxu0 %v10488_v50  ;;  %8739 = vmatpush1.bf16.msra.mxu1 %v10490_v51  ;;  %v10367_v50 = vcombine.high %v488_v46, %v552_v47  ;;  %v615_v51 = vld [vmem:[#allocation5 + $0x11e0] sm:$0xff] }
 0x3dd   :  { %8697 = vmatprep.subr.bf16.mxu0 %v10617_v52  ;;  %8740 = vmatprep.subr.bf16.mxu1 %v10619_v53  ;;  %v679_v52 = vld [vmem:[#allocation5 + $0x13e0] sm:$0xff]  ;;  %v616_v53 = vld [vmem:[#allocation5 + $0x11e8] sm:$0xff] }
 0x3de   :  { %v8119_v61 = vpop.f32.mrb[88].mxu0  ;;  %v8162_v2 = vpop.f32.mrb[88].mxu1  ;;  %v10493_v57 = vcombine.high %v615_v51, %v679_v52  ;;  %v10492_v63 = vcombine.low %v615_v51, %v679_v52  ;;  %v10494_v1 = vcombine.low %v616_v53, %v680_v54  ;;  %v362_v51 = vld [vmem:[#allocation5 + $0x9f8] sm:$0xff] }
 0x3df   :  { %v8121_v3 = vpop.f32.mrb[89].mxu0  ;;  %v8164_v7 = vpop.f32.mrb[89].mxu1  ;;  %v426_v52 = vld [vmem:[#allocation5 + $0xbf8] sm:$0xff] }
 0x3e0   :  { %v11056_v6 = vpack.c.bf16 %v8121_v3, %v8119_v61  ;;  %v8123_v8 = vpop.f32.mrb[90].mxu0  ;;  %8698 = vmatpush1.bf16.msra.mxu0 %v10616_v58  ;;  %v11057_v11 = vpack.c.bf16 %v8164_v7, %v8162_v2  ;;  %v8166_v12 = vpop.f32.mrb[90].mxu1  ;;  %8741 = vmatpush1.bf16.msra.mxu1 %v10618_v59  ;;  %v10495_v58 = vcombine.high %v616_v53, %v680_v54  ;;  %v743_v59 = vld [vmem:[#allocation5 + $0x15e0] sm:$0xff]  ;;  %v744_v61 = vld [vmem:[#allocation5 + $0x15e8] sm:$0xff] }
 0x3e1   :  { %v8125_v13 = vpop.f32.mrb[91].mxu0  ;;  %8699 = vmatprep.subr.bf16.mxu0 %v10745_v60  ;;  %v8168_v17 = vpop.f32.mrb[91].mxu1  ;;  %8742 = vmatprep.subr.bf16.mxu1 %v10747_v62  ;;  %v807_v60 = vld [vmem:[#allocation5 + $0x17e0] sm:$0xff]  ;;  %v808_v62 = vld [vmem:[#allocation5 + $0x17e8] sm:$0xff] }
 0x3e2   :  { %9757 = vst [vmem:[#allocation7 + $0x160] sm:$0xff] %v11056_v6  ;;  %v11120_v16 = vpack.c.bf16 %v8125_v13, %v8123_v8  ;;  %9758 = vst [vmem:[#allocation7 + $0x168] sm:$0xff] %v11057_v11  ;;  %v11121_v28 = vpack.c.bf16 %v8168_v17, %v8166_v12  ;;  %v10621_v2 = vcombine.high %v743_v59, %v807_v60  ;;  %v872_v6 = vld [vmem:[#allocation5 + $0x19e8] sm:$0xff] }
 0x3e3   :  { %v10623_v3 = vcombine.high %v744_v61, %v808_v62  ;;  %v936_v7 = vld [vmem:[#allocation5 + $0x1be8] sm:$0xff]  ;;  %v10620_v8 = vcombine.low %v743_v59, %v807_v60  ;;  %v10749_v11 = vcombine.high %v871_v4, %v935_v5  ;;  %v490_v59 = vld [vmem:[#allocation5 + $0xdf8] sm:$0xff] }
 0x3e4   :  { %9821 = vst [vmem:[#allocation7 + $0x360] sm:$0xff] %v11120_v16  ;;  %8700 = vmatpush1.bf16.msra.mxu0 %v10744_v9  ;;  %9822 = vst [vmem:[#allocation7 + $0x368] sm:$0xff] %v11121_v28  ;;  %8743 = vmatpush1.bf16.msra.mxu1 %v10746_v14  ;;  %v10622_v9 = vcombine.low %v744_v61, %v808_v62  ;;  %v10751_v13 = vcombine.high %v872_v6, %v936_v7  ;;  %v999_v14 = vld [vmem:[#allocation5 + $0x1de0] sm:$0xff]  ;;  %v554_v60 = vld [vmem:[#allocation5 + $0xff8] sm:$0xff] }
 0x3e5   :  { %8701 = vmatprep.subr.bf16.mxu0 %v10873_v15  ;;  %8744 = vmatprep.subr.bf16.mxu1 %v10875_v18  ;;  %v1063_v15 = vld [vmem:[#allocation5 + $0x1fe0] sm:$0xff]  ;;  %v1000_v18 = vld [vmem:[#allocation5 + $0x1de8] sm:$0xff]  ;;  %v10242_v62 = vcombine.low %v362_v51, %v426_v52  ;;  %v618_v4 = vld [vmem:[#allocation5 + $0x11f8] sm:$0xff] }
 0x3e6   :  { %v10877_v22 = vcombine.high %v999_v14, %v1063_v15  ;;  %v10879_v32 = vcombine.high %v1000_v18, %v1064_v19  ;;  %v10876_v10 = vcombine.low %v999_v14, %v1063_v15  ;;  %v682_v5 = vld [vmem:[#allocation5 + $0x13f8] sm:$0xff] }
 0x3e7   :  { %v10498_v15 = vcombine.low %v618_v4, %v682_v5 }
 0x3e8   :  { %8702 = vmatpush1.bf16.msra.mxu0 %v10872_v24  ;;  %8745 = vmatpush1.bf16.msra.mxu1 %v10874_v25 }
 0x3e9   :  { %8773 = vmatprep.subr.bf16.mxu0 %v9981_v26  ;;  %8816 = vmatprep.subr.bf16.mxu1 %v9983_v27  ;;  %v10750_v27 = vcombine.low %v872_v6, %v936_v7  ;;  %v10370_v7 = vcombine.low %v490_v59, %v554_v60 }
 0x3eb   :  { %8720 = vmatmul.mubr.bf16.vlgmr.msra.gmra.mrb[116].mxu0 %v11389_v43  ;;  %8763 = vmatmul.mubr.bf16.vlgmr.msra.gmra.mrb[116].mxu1 %v11389_v43  ;;  %v10238_v43 = vcombine.low %v360_v38, %v424_v39  ;;  %v10878_v38 = vcombine.low %v1000_v18, %v1064_v19  ;;  %v873_v18 = vld [vmem:[#allocation5 + $0x19f0] sm:$0xff] }
 0x3ec   :  { %8774 = vmatpush1.bf16.msra.mxu0 %v9980_v33  ;;  %8817 = vmatpush1.bf16.msra.mxu1 %v9982_v34  ;;  %v105_v33 = vld [vmem:[#allocation5 + $0x1f0] sm:$0xff] }
 0x3ed   :  { %8775 = vmatprep.subr.bf16.mxu0 %v10109_v35  ;;  %8818 = vmatprep.subr.bf16.mxu1 %v10111_v30  ;;  %v169_v34 = vld [vmem:[#allocation5 + $0x3f0] sm:$0xff]  ;;  %v106_v30 = vld [vmem:[#allocation5 + $0x1f8] sm:$0xff] }
 0x3ee   :  { %8805 = vmatprep.mubr.bf16.mxu0 %v11233_v0  ;;  %8848 = vmatprep.mubr.bf16.mxu1 %v11233_v0  ;;  %v9985_v39 = vcombine.high %v105_v33, %v169_v34  ;;  %v9984_v45 = vcombine.low %v105_v33, %v169_v34  ;;  %v9986_v46 = vcombine.low %v106_v30, %v170_v36  ;;  %v937_v19 = vld [vmem:[#allocation5 + $0x1bf0] sm:$0xff]  ;;  %v1066_v33 = vld [vmem:[#allocation5 + $0x1ff8] sm:$0xff] }
 0x3f0   :  { %8776 = vmatpush1.bf16.msra.mxu0 %v10108_v40  ;;  %8819 = vmatpush1.bf16.msra.mxu1 %v10110_v41  ;;  %v9987_v40 = vcombine.high %v106_v30, %v170_v36  ;;  %v233_v41 = vld [vmem:[#allocation5 + $0x5f0] sm:$0xff]  ;;  %v10752_v36 = vcombine.low %v873_v18, %v937_v19 }
 0x3f1   :  { %8777 = vmatprep.subr.bf16.mxu0 %v10237_v37  ;;  %8820 = vmatprep.subr.bf16.mxu1 %v10239_v42  ;;  %v297_v37 = vld [vmem:[#allocation5 + $0x7f0] sm:$0xff]  ;;  %v234_v42 = vld [vmem:[#allocation5 + $0x5f8] sm:$0xff] }
 0x3f2   :  { %v10113_v47 = vcombine.high %v233_v41, %v297_v37  ;;  %v10112_v53 = vcombine.low %v233_v41, %v297_v37  ;;  %v10114_v54 = vcombine.low %v234_v42, %v298_v44 }
 0x3f4   :  { %8778 = vmatpush1.bf16.msra.mxu0 %v10236_v48  ;;  %8821 = vmatpush1.bf16.msra.mxu1 %v10238_v43  ;;  %v10115_v48 = vcombine.high %v234_v42, %v298_v44  ;;  %v361_v43 = vld [vmem:[#allocation5 + $0x9f0] sm:$0xff] }
 0x3f5   :  { %8779 = vmatprep.subr.bf16.mxu0 %v10365_v49  ;;  %8822 = vmatprep.subr.bf16.mxu1 %v10367_v50  ;;  %v425_v49 = vld [vmem:[#allocation5 + $0xbf0] sm:$0xff]  ;;  %v11411_v50 = vld [vmem:[#allocation2] sm:$0xff]  }
 0x3f6   :  { %v10240_v61 = vcombine.low %v361_v43, %v425_v49 }
 0x3f8   :  { %8780 = vmatpush1.bf16.msra.mxu0 %v10364_v55  ;;  %8823 = vmatpush1.bf16.msra.mxu1 %v10366_v56  ;;  %v10241_v55 = vcombine.high %v361_v43, %v425_v49  ;;  %v10243_v56 = vcombine.high %v362_v51, %v426_v52 }
 0x3f9   :  { %8781 = vmatprep.subr.bf16.mxu0 %v10493_v57  ;;  %8824 = vmatprep.subr.bf16.mxu1 %v10495_v58  ;;  %v489_v57 = vld [vmem:[#allocation5 + $0xdf0] sm:$0xff] }
 0x3fa   :  { %v553_v58 = vld [vmem:[#allocation5 + $0xff0] sm:$0xff] }
 0x3fb   :  { %v10368_v6 = vcombine.low %v489_v57, %v553_v58 }
 0x3fc   :  { %8782 = vmatpush1.bf16.msra.mxu0 %v10492_v63  ;;  %8825 = vmatpush1.bf16.msra.mxu1 %v10494_v1  ;;  %v10369_v63 = vcombine.high %v489_v57, %v553_v58  ;;  %v10371_v1 = vcombine.high %v490_v59, %v554_v60 }
 0x3fd   :  { %8783 = vmatprep.subr.bf16.mxu0 %v10621_v2  ;;  %8826 = vmatprep.subr.bf16.mxu1 %v10623_v3  ;;  %v617_v2 = vld [vmem:[#allocation5 + $0x11f0] sm:$0xff] }
 0x3fe   :  { %v8205_v12 = vpop.f32.mrb[92].mxu0  ;;  %v8248_v16 = vpop.f32.mrb[92].mxu1  ;;  %v681_v3 = vld [vmem:[#allocation5 + $0x13f0] sm:$0xff] }
 0x3ff   :  { %v8207_v17 = vpop.f32.mrb[93].mxu0  ;;  %v8250_v28 = vpop.f32.mrb[93].mxu1  ;;  %v10496_v14 = vcombine.low %v617_v2, %v681_v3 }
 0x400   :  { %v11058_v20 = vpack.c.bf16 %v8207_v17, %v8205_v12  ;;  %v8209_v21 = vpop.f32.mrb[94].mxu0  ;;  %8784 = vmatpush1.bf16.msra.mxu0 %v10620_v8  ;;  %v11059_v24 = vpack.c.bf16 %v8250_v28, %v8248_v16  ;;  %v8252_v25 = vpop.f32.mrb[94].mxu1  ;;  %8827 = vmatpush1.bf16.msra.mxu1 %v10622_v9  ;;  %v10497_v8 = vcombine.high %v617_v2, %v681_v3  ;;  %v745_v9 = vld [vmem:[#allocation5 + $0x15f0] sm:$0xff]  ;;  %v746_v12 = vld [vmem:[#allocation5 + $0x15f8] sm:$0xff] }
 0x401   :  { %v8211_v26 = vpop.f32.mrb[95].mxu0  ;;  %8785 = vmatprep.subr.bf16.mxu0 %v10749_v11  ;;  %v8254_v31 = vpop.f32.mrb[95].mxu1  ;;  %8828 = vmatprep.subr.bf16.mxu1 %v10751_v13  ;;  %v809_v11 = vld [vmem:[#allocation5 + $0x17f0] sm:$0xff]  ;;  %v810_v13 = vld [vmem:[#allocation5 + $0x17f8] sm:$0xff] }
 0x402   :  { %9759 = vst [vmem:[#allocation7 + $0x170] sm:$0xff] %v11058_v20  ;;  %v11122_v29 = vpack.c.bf16 %v8211_v26, %v8209_v21  ;;  %9760 = vst [vmem:[#allocation7 + $0x178] sm:$0xff] %v11059_v24  ;;  %v11123_v35 = vpack.c.bf16 %v8254_v31, %v8252_v25  ;;  %v10625_v16 = vcombine.high %v745_v9, %v809_v11  ;;  %v874_v20 = vld [vmem:[#allocation5 + $0x19f8] sm:$0xff] }
 0x403   :  { %v10627_v17 = vcombine.high %v746_v12, %v810_v13  ;;  %v938_v28 = vld [vmem:[#allocation5 + $0x1bf8] sm:$0xff]  ;;  %v10624_v21 = vcombine.low %v745_v9, %v809_v11  ;;  %v10753_v24 = vcombine.high %v873_v18, %v937_v19 }
 0x404   :  { %9823 = vst [vmem:[#allocation7 + $0x370] sm:$0xff] %v11122_v29  ;;  %8786 = vmatpush1.bf16.msra.mxu0 %v10748_v23  ;;  %9824 = vst [vmem:[#allocation7 + $0x378] sm:$0xff] %v11123_v35  ;;  %8829 = vmatpush1.bf16.msra.mxu1 %v10750_v27  ;;  %v10626_v23 = vcombine.low %v746_v12, %v810_v13  ;;  %v10755_v26 = vcombine.high %v874_v20, %v938_v28  ;;  %v1001_v27 = vld [vmem:[#allocation5 + $0x1df0] sm:$0xff] }
 0x405   :  { %8787 = vmatprep.subr.bf16.mxu0 %v10877_v22  ;;  %8830 = vmatprep.subr.bf16.mxu1 %v10879_v32  ;;  %v1065_v22 = vld [vmem:[#allocation5 + $0x1ff0] sm:$0xff]  ;;  %v1002_v32 = vld [vmem:[#allocation5 + $0x1df8] sm:$0xff] }
 0x406   :  { %v10881_v41 = vcombine.high %v1001_v27, %v1065_v22  ;;  %v10883_v44 = vcombine.high %v1002_v32, %v1066_v33 }
 0x408   :  { %8788 = vmatpush1.bf16.msra.mxu0 %v10876_v10  ;;  %8831 = vmatpush1.bf16.msra.mxu1 %v10878_v38 }
 0x409   :  { %8859 = vmatprep.subr.bf16.mxu0 %v9985_v39  ;;  %8902 = vmatprep.subr.bf16.mxu1 %v9987_v40  ;;  %v10754_v40 = vcombine.low %v874_v20, %v938_v28 }
 0x40b   :  { %8806 = vmatmul.mubr.bf16.vlgmr.msra.gmra.mrb[120].mxu0 %v11411_v50  ;;  %8849 = vmatmul.mubr.bf16.vlgmr.msra.gmra.mrb[120].mxu1 %v11411_v50 }
 0x40c   :  { %8860 = vmatpush1.bf16.msra.mxu0 %v9984_v45  ;;  %8903 = vmatpush1.bf16.msra.mxu1 %v9986_v46  ;;  %v10880_v46 = vcombine.low %v1001_v27, %v1065_v22 }
 0x40d   :  { %8861 = vmatprep.subr.bf16.mxu0 %v10113_v47  ;;  %8904 = vmatprep.subr.bf16.mxu1 %v10115_v48  ;;  %v10882_v47 = vcombine.low %v1002_v32, %v1066_v33 }
 0x40e   :  { %8891 = vmatprep.mubr.bf16.mxu0 %v11233_v0  ;;  %8934 = vmatprep.mubr.bf16.mxu1 %v11233_v0  ;;  %v10499_v0 = vcombine.high %v618_v4, %v682_v5 }
 0x410   :  { %8862 = vmatpush1.bf16.msra.mxu0 %v10112_v53  ;;  %8905 = vmatpush1.bf16.msra.mxu1 %v10114_v54 }
 0x411   :  { %8863 = vmatprep.subr.bf16.mxu0 %v10241_v55  ;;  %8906 = vmatprep.subr.bf16.mxu1 %v10243_v56 }
 0x414   :  { %8864 = vmatpush1.bf16.msra.mxu0 %v10240_v61  ;;  %8907 = vmatpush1.bf16.msra.mxu1 %v10242_v62 }
 0x415   :  { %8865 = vmatprep.subr.bf16.mxu0 %v10369_v63  ;;  %8908 = vmatprep.subr.bf16.mxu1 %v10371_v1 }
 0x418   :  { %8866 = vmatpush1.bf16.msra.mxu0 %v10368_v6  ;;  %8909 = vmatpush1.bf16.msra.mxu1 %v10370_v7 }
 0x419   :  { %8867 = vmatprep.subr.bf16.mxu0 %v10497_v8  ;;  %8910 = vmatprep.subr.bf16.mxu1 %v10499_v0 }
 0x41c   :  { %8868 = vmatpush1.bf16.msra.mxu0 %v10496_v14  ;;  %8911 = vmatpush1.bf16.msra.mxu1 %v10498_v15 }
 0x41d   :  { %8869 = vmatprep.subr.bf16.mxu0 %v10625_v16  ;;  %8912 = vmatprep.subr.bf16.mxu1 %v10627_v17 }
 0x41e   :  { %v8291_v25 = vpop.f32.mrb[96].mxu0  ;;  %v8334_v29 = vpop.f32.mrb[96].mxu1 }
 0x41f   :  { %v8293_v31 = vpop.f32.mrb[97].mxu0  ;;  %v8336_v35 = vpop.f32.mrb[97].mxu1 }
 0x420   :  { %v11060_v34 = vpack.c.bf16 %v8293_v31, %v8291_v25  ;;  %v8295_v30 = vpop.f32.mrb[98].mxu0  ;;  %8870 = vmatpush1.bf16.msra.mxu0 %v10624_v21  ;;  %v11061_v10 = vpack.c.bf16 %v8336_v35, %v8334_v29  ;;  %v8338_v38 = vpop.f32.mrb[98].mxu1  ;;  %8913 = vmatpush1.bf16.msra.mxu1 %v10626_v23 }
 0x421   :  { %v8297_v39 = vpop.f32.mrb[99].mxu0  ;;  %8871 = vmatprep.subr.bf16.mxu0 %v10753_v24  ;;  %v8340_v42 = vpop.f32.mrb[99].mxu1  ;;  %8914 = vmatprep.subr.bf16.mxu1 %v10755_v26 }
 0x422   :  { %9761 = vst [vmem:[#allocation7 + $0x180] sm:$0xff] %v11060_v34  ;;  %v11124_v37 = vpack.c.bf16 %v8297_v39, %v8295_v30  ;;  %9762 = vst [vmem:[#allocation7 + $0x188] sm:$0xff] %v11061_v10  ;;  %v11125_v45 = vpack.c.bf16 %v8340_v42, %v8338_v38 }
 0x424   :  { %9825 = vst [vmem:[#allocation7 + $0x380] sm:$0xff] %v11124_v37  ;;  %8872 = vmatpush1.bf16.msra.mxu0 %v10752_v36  ;;  %9826 = vst [vmem:[#allocation7 + $0x388] sm:$0xff] %v11125_v45  ;;  %8915 = vmatpush1.bf16.msra.mxu1 %v10754_v40 }
 0x425   :  { %8873 = vmatprep.subr.bf16.mxu0 %v10881_v41  ;;  %8916 = vmatprep.subr.bf16.mxu1 %v10883_v44 }
 0x428   :  { %8874 = vmatpush1.bf16.msra.mxu0 %v10880_v46  ;;  %8917 = vmatpush1.bf16.msra.mxu1 %v10882_v47 }
 0x42b   :  { %8892 = vmatmul.mubr.bf16.vlgmr.msra.gmra.mrb[124].mxu0 %v11411_v50  ;;  %8935 = vmatmul.mubr.bf16.vlgmr.msra.gmra.mrb[124].mxu1 %v11411_v50 }
 0x43e   :  { %v8377_v48 = vpop.f32.mrb[100].mxu0  ;;  %v8420_v43 = vpop.f32.mrb[100].mxu1 }
 0x43f   :  { %v8379_v49 = vpop.f32.mrb[101].mxu0  ;;  %v8422_v52 = vpop.f32.mrb[101].mxu1 }
 0x440   :  { %v11062_v51 = vpack.c.bf16 %v8379_v49, %v8377_v48  ;;  %v8381_v53 = vpop.f32.mrb[102].mxu0  ;;  %v11063_v54 = vpack.c.bf16 %v8422_v52, %v8420_v43  ;;  %v8424_v55 = vpop.f32.mrb[102].mxu1 }
 0x441   :  { %v8383_v56 = vpop.f32.mrb[103].mxu0  ;;  %v8426_v58 = vpop.f32.mrb[103].mxu1 }
 0x442   :  { %9763 = vst [vmem:[#allocation7 + $0x190] sm:$0xff] %v11062_v51  ;;  %v11126_v57 = vpack.c.bf16 %v8383_v56, %v8381_v53  ;;  %9764 = vst [vmem:[#allocation7 + $0x198] sm:$0xff] %v11063_v54  ;;  %v11127_v59 = vpack.c.bf16 %v8426_v58, %v8424_v55 }
 0x444   :  { %9827 = vst [vmem:[#allocation7 + $0x390] sm:$0xff] %v11126_v57  ;;  %9828 = vst [vmem:[#allocation7 + $0x398] sm:$0xff] %v11127_v59 }
 0x45e   :  { %v8463_v60 = vpop.f32.mrb[104].mxu0  ;;  %v8506_v61 = vpop.f32.mrb[104].mxu1 }
 0x45f   :  { %v8465_v62 = vpop.f32.mrb[105].mxu0  ;;  %v8508_v63 = vpop.f32.mrb[105].mxu1 }
 0x460   :  { %v11064_v50 = vpack.c.bf16 %v8465_v62, %v8463_v60  ;;  %v8467_v1 = vpop.f32.mrb[106].mxu0  ;;  %v11065_v2 = vpack.c.bf16 %v8508_v63, %v8506_v61  ;;  %v8510_v3 = vpop.f32.mrb[106].mxu1 }
 0x461   :  { %v8469_v4 = vpop.f32.mrb[107].mxu0  ;;  %v8512_v6 = vpop.f32.mrb[107].mxu1 }
 0x462   :  { %9765 = vst [vmem:[#allocation7 + $0x1a0] sm:$0xff] %v11064_v50  ;;  %v11128_v5 = vpack.c.bf16 %v8469_v4, %v8467_v1  ;;  %9766 = vst [vmem:[#allocation7 + $0x1a8] sm:$0xff] %v11065_v2  ;;  %v11129_v7 = vpack.c.bf16 %v8512_v6, %v8510_v3 }
 0x464   :  { %9829 = vst [vmem:[#allocation7 + $0x3a0] sm:$0xff] %v11128_v5  ;;  %9830 = vst [vmem:[#allocation7 + $0x3a8] sm:$0xff] %v11129_v7 }
 0x47e   :  { %v8549_v8 = vpop.f32.mrb[108].mxu0  ;;  %v8592_v0 = vpop.f32.mrb[108].mxu1 }
 0x47f   :  { %v8551_v9 = vpop.f32.mrb[109].mxu0  ;;  %v8594_v12 = vpop.f32.mrb[109].mxu1 }
 0x480   :  { %v11066_v11 = vpack.c.bf16 %v8551_v9, %v8549_v8  ;;  %v8553_v13 = vpop.f32.mrb[110].mxu0  ;;  %v11067_v14 = vpack.c.bf16 %v8594_v12, %v8592_v0  ;;  %v8596_v15 = vpop.f32.mrb[110].mxu1 }
 0x481   :  { %v8555_v16 = vpop.f32.mrb[111].mxu0  ;;  %v8598_v18 = vpop.f32.mrb[111].mxu1 }
 0x482   :  { %9767 = vst [vmem:[#allocation7 + $0x1b0] sm:$0xff] %v11066_v11  ;;  %v11130_v17 = vpack.c.bf16 %v8555_v16, %v8553_v13  ;;  %9768 = vst [vmem:[#allocation7 + $0x1b8] sm:$0xff] %v11067_v14  ;;  %v11131_v19 = vpack.c.bf16 %v8598_v18, %v8596_v15 }
 0x484   :  { %9831 = vst [vmem:[#allocation7 + $0x3b0] sm:$0xff] %v11130_v17  ;;  %9832 = vst [vmem:[#allocation7 + $0x3b8] sm:$0xff] %v11131_v19 }
 0x49e   :  { %v8635_v20 = vpop.f32.mrb[112].mxu0  ;;  %v8678_v28 = vpop.f32.mrb[112].mxu1 }
 0x49f   :  { %v8637_v21 = vpop.f32.mrb[113].mxu0  ;;  %v8680_v24 = vpop.f32.mrb[113].mxu1 }
 0x4a0   :  { %v11068_v23 = vpack.c.bf16 %v8637_v21, %v8635_v20  ;;  %v8639_v25 = vpop.f32.mrb[114].mxu0  ;;  %v11069_v26 = vpack.c.bf16 %v8680_v24, %v8678_v28  ;;  %v8682_v27 = vpop.f32.mrb[114].mxu1 }
 0x4a1   :  { %v8641_v22 = vpop.f32.mrb[115].mxu0  ;;  %v8684_v31 = vpop.f32.mrb[115].mxu1 }
 0x4a2   :  { %9769 = vst [vmem:[#allocation7 + $0x1c0] sm:$0xff] %v11068_v23  ;;  %v11132_v29 = vpack.c.bf16 %v8641_v22, %v8639_v25  ;;  %9770 = vst [vmem:[#allocation7 + $0x1c8] sm:$0xff] %v11069_v26  ;;  %v11133_v32 = vpack.c.bf16 %v8684_v31, %v8682_v27 }
 0x4a4   :  { %9833 = vst [vmem:[#allocation7 + $0x3c0] sm:$0xff] %v11132_v29  ;;  %9834 = vst [vmem:[#allocation7 + $0x3c8] sm:$0xff] %v11133_v32 }
 0x4be   :  { %v8721_v33 = vpop.f32.mrb[116].mxu0  ;;  %v8764_v34 = vpop.f32.mrb[116].mxu1 }
 0x4bf   :  { %v8723_v35 = vpop.f32.mrb[117].mxu0  ;;  %v8766_v36 = vpop.f32.mrb[117].mxu1 }
 0x4c0   :  { %v11070_v30 = vpack.c.bf16 %v8723_v35, %v8721_v33  ;;  %v8725_v10 = vpop.f32.mrb[118].mxu0  ;;  %v11071_v38 = vpack.c.bf16 %v8766_v36, %v8764_v34  ;;  %v8768_v39 = vpop.f32.mrb[118].mxu1 }
 0x4c1   :  { %v8727_v40 = vpop.f32.mrb[119].mxu0  ;;  %v8770_v37 = vpop.f32.mrb[119].mxu1 }
 0x4c2   :  { %9771 = vst [vmem:[#allocation7 + $0x1d0] sm:$0xff] %v11070_v30  ;;  %v11134_v41 = vpack.c.bf16 %v8727_v40, %v8725_v10  ;;  %9772 = vst [vmem:[#allocation7 + $0x1d8] sm:$0xff] %v11071_v38  ;;  %v11135_v42 = vpack.c.bf16 %v8770_v37, %v8768_v39 }
 0x4c4   :  { %9835 = vst [vmem:[#allocation7 + $0x3d0] sm:$0xff] %v11134_v41  ;;  %9836 = vst [vmem:[#allocation7 + $0x3d8] sm:$0xff] %v11135_v42 }
 0x4de   :  { %v8807_v44 = vpop.f32.mrb[120].mxu0  ;;  %v8850_v45 = vpop.f32.mrb[120].mxu1 }
 0x4df   :  { %v8809_v46 = vpop.f32.mrb[121].mxu0  ;;  %v8852_v48 = vpop.f32.mrb[121].mxu1 }
 0x4e0   :  { %v11072_v47 = vpack.c.bf16 %v8809_v46, %v8807_v44  ;;  %v8811_v43 = vpop.f32.mrb[122].mxu0  ;;  %v11073_v49 = vpack.c.bf16 %v8852_v48, %v8850_v45  ;;  %v8854_v51 = vpop.f32.mrb[122].mxu1 }
 0x4e1   :  { %v8813_v52 = vpop.f32.mrb[123].mxu0  ;;  %v8856_v54 = vpop.f32.mrb[123].mxu1 }
 0x4e2   :  { %9773 = vst [vmem:[#allocation7 + $0x1e0] sm:$0xff] %v11072_v47  ;;  %v11136_v53 = vpack.c.bf16 %v8813_v52, %v8811_v43  ;;  %9774 = vst [vmem:[#allocation7 + $0x1e8] sm:$0xff] %v11073_v49  ;;  %v11137_v55 = vpack.c.bf16 %v8856_v54, %v8854_v51 }
 0x4e4   :  { %9837 = vst [vmem:[#allocation7 + $0x3e0] sm:$0xff] %v11136_v53  ;;  %9838 = vst [vmem:[#allocation7 + $0x3e8] sm:$0xff] %v11137_v55 }
 0x4fe   :  { %v8893_v56 = vpop.f32.mrb[124].mxu0  ;;  %v8936_v57 = vpop.f32.mrb[124].mxu1 }
 0x4ff   :  { %v8895_v58 = vpop.f32.mrb[125].mxu0  ;;  %v8938_v60 = vpop.f32.mrb[125].mxu1 }
 0x500   :  { %v11074_v59 = vpack.c.bf16 %v8895_v58, %v8893_v56  ;;  %v8897_v61 = vpop.f32.mrb[126].mxu0  ;;  %v11075_v62 = vpack.c.bf16 %v8938_v60, %v8936_v57  ;;  %v8940_v50 = vpop.f32.mrb[126].mxu1 }
 0x501   :  { %v8899_v63 = vpop.f32.mrb[127].mxu0  ;;  %v8942_v2 = vpop.f32.mrb[127].mxu1 }
 0x502   :  { %9775 = vst [vmem:[#allocation7 + $0x1f0] sm:$0xff] %v11074_v59  ;;  %v11138_v1 = vpack.c.bf16 %v8899_v63, %v8897_v61  ;;  %9776 = vst [vmem:[#allocation7 + $0x1f8] sm:$0xff] %v11075_v62  ;;  %v11139_v3 = vpack.c.bf16 %v8942_v2, %v8940_v50 }
 0x504   :  { %9839 = vst [vmem:[#allocation7 + $0x3f0] sm:$0xff] %v11138_v1  ;;  %9840 = vst [vmem:[#allocation7 + $0x3f8] sm:$0xff] %v11139_v3 }
 0x505   :  { %11210 = shalt.err (!%p11207_p6)
}
 0x506   :  { %s11211_s12 = scalar_lea.hbm %s11436_s2, 16384 }
 0x507   :  { %p11212_p7 = scmp.ne.s32.totalorder %s11436_s2, %s11211_s12  ;;  %p11215_p8 = scmp.lt.u32.totalorder %s11211_s12, %s11436_s2 }
 0x509   :  { %p11217_p9 = pnand %p11215_p8, %p11212_p7 }
 0x50b   :  { %11220 = shalt.err (!%p11217_p9)
}
 0x50c   :  { %9852 = dma.vmem_to_hbm [thread:$0]  %s9847_s8, 16384, %s11436_s2, [#allocation4], %s11231_s0, %s11231_s0, %s11232_s5  }
 0x50d   :  { %11225 = dma.done.wait [#allocation4], 16384  }
 0x50e   :  { %11226 = vsyncadd [#allocation4], 4294950912 }
 0x50f   :  { %9856 = vsyncpa [#allocation3], 1 }
 0x510   :  { %9857 = vsyncpa [#allocation6], 1 }
 0x511   :  { %9858 = vsyncpa [#allocation4], 1 }

</bundles_post_ra>
